<compile_context>
chip_gen: v6e
topology: v6e:2x2x1
jax: 0.10.0
libtpu: 0.0.40
codegen_flags: <defaults>
</compile_context>

<pallas_src>
import functools
from math import sqrt

import jax
import jax.numpy as jnp
from jax.experimental import pallas as pl
from jax.experimental.pallas import tpu as pltpu

ACT_DTYPE = jnp.bfloat16   # activation storage / MXU operand dtype
LANE = 128                 # channel axes padded to a multiple of the lane width


def get_groups(channels: int) -> int:
    divisors = []
    for i in range(1, int(sqrt(channels)) + 1):
        if channels % i == 0:
            divisors.append(i)
            other = channels // i
            if i != other:
                divisors.append(other)
    return sorted(divisors)[len(divisors) // 2]


def _pad_to_lane(c: int) -> int:
    return ((c + LANE - 1) // LANE) * LANE


def _pick_tile(n: int, target: int) -> int:
    """Largest divisor of n that is <= target (>=1)."""
    target = max(1, min(n, target))
    for t in range(target, 0, -1):
        if n % t == 0:
            return t
    return 1


# ----------------------------- Pallas kernels -------------------------------

def _upconv_kernel(x_ref, w_ref, b_ref, o_ref, *, th, w_in):
    """ConvTranspose2d(k=2,s=2) as one matmul per (batch, row-tile) grid step.
    Output layout: (1, th, w_in, 4*Cout) with last dim = [(a,b) tap, cout];
    the spatial interleave is done later by conv1's input gather."""
    x = x_ref[0].reshape(th * w_in, -1)                       # (M, Cin) bf16
    y = jnp.dot(x, w_ref[...], preferred_element_type=jnp.float32) + b_ref[...]
    o_ref[0] = y.reshape(th, w_in, -1).astype(o_ref.dtype)


def _conv3x3_taps(xs, w_ref, th, ww, cout):
    """3x3 conv with the dx taps (and multiple input slabs) collapsed into the
    contraction: 3 dots of K = 3 * sum(Cin) instead of 9 * len(xs) dots."""
    acc = jnp.zeros((th * ww, cout), jnp.float32)
    for dy in range(3):
        taps = []
        for x in xs:
            c = x.shape[-1]
            for dx in range(3):
                taps.append(x[dy:dy + th, dx:dx + ww, :].reshape(th * ww, c))
        patch = jnp.concatenate(taps, axis=-1)                # (M, 3*sum(Cin))
        acc = acc + jnp.dot(patch, w_ref[dy],
                            preferred_element_type=jnp.float32)
    return acc


def _swish_stats_epilogue(acc, b_ref, y_ref, sum_ref, sq_ref, th, ww):
    acc = acc + b_ref[...]                                    # (M, Cout) f32
    # CustomSwish: x * sigmoid(x); approx reciprocal runs on the EUP slot.
    y = acc * pl.reciprocal(1.0 + jnp.exp(-acc), approx=True)
    # Lane-preserving per-channel partial sums for GroupNorm (sublane reduce).
    sum_ref[0, 0] = jnp.sum(y, axis=0, keepdims=True)         # (1, Cout)
    sq_ref[0, 0] = jnp.sum(y * y, axis=0, keepdims=True)
    y_ref[0] = y.reshape(th, ww, -1).astype(y_ref.dtype)


def _conv1_kernel(xa_ref, xb_ref, w_ref, b_ref, y_ref, sum_ref, sq_ref,
                  *, th, ww):
    # Two inputs (upsampled + cropped bridge): torch.cat(dim=1) folded into the
    # contraction; the concatenated tensor never exists in HBM.
    acc = _conv3x3_taps((xa_ref[0], xb_ref[0]), w_ref, th, ww, y_ref.shape[-1])
    _swish_stats_epilogue(acc, b_ref, y_ref, sum_ref, sq_ref, th, ww)


def _conv2_kernel(x_ref, scale_ref, shift_ref, w_ref, b_ref,
                  y_ref, sum_ref, sq_ref, *, th, ww):
    # GroupNorm #1 is fused into this conv's input read: the per-(image,channel)
    # affine commutes with reflection padding / halo-row duplication.
    x = x_ref[0].astype(jnp.float32) * scale_ref[0] + shift_ref[0]
    acc = _conv3x3_taps((x.astype(ACT_DTYPE),), w_ref, th, ww, y_ref.shape[-1])
    _swish_stats_epilogue(acc, b_ref, y_ref, sum_ref, sq_ref, th, ww)


def _gn_apply_kernel(x_ref, scale_ref, shift_ref, o_ref):
    x = x_ref[0].astype(jnp.float32)
    o_ref[0] = (x * scale_ref[0] + shift_ref[0]).astype(o_ref.dtype)


# ----------------------------- pallas_call wrappers --------------------------

_PARALLEL2 = pltpu.CompilerParams(dimension_semantics=("parallel", "parallel"))


def upconv2x2(x_nhwc, w_all, bias4, cout4, th):
    N, H, W, _ = x_nhwc.shape
    T = H // th
    kernel = functools.partial(_upconv_kernel, th=th, w_in=W)
    return pl.pallas_call(
        kernel,
        out_shape=jax.ShapeDtypeStruct((N, H, W, cout4), ACT_DTYPE),
        grid=(N, T),
        in_specs=[
            pl.BlockSpec((1, th, W, x_nhwc.shape[-1]), lambda n, t: (n, t, 0, 0)),
            pl.BlockSpec(w_all.shape, lambda n, t: (0, 0)),
            pl.BlockSpec((1, cout4), lambda n, t: (0, 0)),
        ],
        out_specs=pl.BlockSpec((1, th, W, cout4), lambda n, t: (n, t, 0, 0)),
        compiler_params=_PARALLEL2,
    )(x_nhwc, w_all, bias4)


def _conv_out_shapes(N, T, Hh, Ww, cpad):
    return (jax.ShapeDtypeStruct((N, Hh, Ww, cpad), ACT_DTYPE),
            jax.ShapeDtypeStruct((N, T, 1, cpad), jnp.float32),
            jax.ShapeDtypeStruct((N, T, 1, cpad), jnp.float32))


def _conv_out_specs(th, Ww, cpad):
    return (pl.BlockSpec((1, th, Ww, cpad), lambda n, t: (n, t, 0, 0)),
            pl.BlockSpec((1, 1, 1, cpad), lambda n, t: (n, t, 0, 0)),
            pl.BlockSpec((1, 1, 1, cpad), lambda n, t: (n, t, 0, 0)))


def conv_stage1(xa_tiles, xb_tiles, w, bias, N, T, Hh, Ww, th, cpad):
    kernel = functools.partial(_conv1_kernel, th=th, ww=Ww)
    return pl.pallas_call(
        kernel,
        out_shape=_conv_out_shapes(N, T, Hh, Ww, cpad),
        grid=(N, T),
        in_specs=[
            pl.BlockSpec((1, th + 2, Ww + 2, xa_tiles.shape[-1]),
                         lambda n, t, T=T: (n * T + t, 0, 0, 0)),
            pl.BlockSpec((1, th + 2, Ww + 2, xb_tiles.shape[-1]),
                         lambda n, t, T=T: (n * T + t, 0, 0, 0)),
            pl.BlockSpec(w.shape, lambda n, t: (0, 0, 0)),
            pl.BlockSpec((1, cpad), lambda n, t: (0, 0)),
        ],
        out_specs=_conv_out_specs(th, Ww, cpad),
        compiler_params=_PARALLEL2,
    )(xa_tiles, xb_tiles, w, bias)


def conv_stage2(x_tiles, scale, shift, w, bias, N, T, Hh, Ww, th, cpad):
    kernel = functools.partial(_conv2_kernel, th=th, ww=Ww)
    return pl.pallas_call(
        kernel,
        out_shape=_conv_out_shapes(N, T, Hh, Ww, cpad),
        grid=(N, T),
        in_specs=[
            pl.BlockSpec((1, th + 2, Ww + 2, cpad),
                         lambda n, t, T=T: (n * T + t, 0, 0, 0)),
            pl.BlockSpec((1, 1, cpad), lambda n, t: (n, 0, 0)),
            pl.BlockSpec((1, 1, cpad), lambda n, t: (n, 0, 0)),
            pl.BlockSpec(w.shape, lambda n, t: (0, 0, 0)),
            pl.BlockSpec((1, cpad), lambda n, t: (0, 0)),
        ],
        out_specs=_conv_out_specs(th, Ww, cpad),
        compiler_params=_PARALLEL2,
    )(x_tiles, scale, shift, w, bias)


def group_norm_apply(act, scale, shift, th):
    N, Hh, Ww, C = act.shape
    T = Hh // th
    return pl.pallas_call(
        _gn_apply_kernel,
        out_shape=jax.ShapeDtypeStruct((N, Hh, Ww, C), jnp.float32),
        grid=(N, T),
        in_specs=[
            pl.BlockSpec((1, th, Ww, C), lambda n, t: (n, t, 0, 0)),
            pl.BlockSpec((1, 1, C), lambda n, t: (n, 0, 0)),
            pl.BlockSpec((1, 1, C), lambda n, t: (n, 0, 0)),
        ],
        out_specs=pl.BlockSpec((1, th, Ww, C), lambda n, t: (n, t, 0, 0)),
        compiler_params=_PARALLEL2,
    )(act, scale, shift)


# ------------------------------- JAX glue -----------------------------------

def weight_norm(v, g):
    # torch weight_norm (dim=0): w = g * v / ||v||, norm over (Cin, kh, kw).
    norm = jnp.sqrt(jnp.sum(v * v, axis=(1, 2, 3), keepdims=True))
    return (g.reshape(-1, 1, 1, 1) / norm) * v


def _pad_channels(x, cpad):
    c = x.shape[-1]
    if c == cpad:
        return x
    return jnp.pad(x, [(0, 0)] * (x.ndim - 1) + [(0, cpad - c)])


def _reflect_index(n, pad_idx):
    return jnp.where(pad_idx < 0, -pad_idx,
                     jnp.where(pad_idx >= n, 2 * n - 2 - pad_idx, pad_idx))


def _reflect_halo_tiles(x_nhwc, th):
    """ReflectionPad2d(1) + overlapping row tiles of height th (+2 halo rows),
    done by a single gather: (N, H, W, C) -> (N*T, th+2, W+2, C), T = H//th."""
    N, H, W, C = x_nhwc.shape
    T = H // th
    r = _reflect_index(H, jnp.arange(T)[:, None] * th
                       + jnp.arange(th + 2)[None, :] - 1)          # (T, th+2)
    c = _reflect_index(W, jnp.arange(-1, W + 1))                   # (W+2,)
    tiles = x_nhwc[:, r[:, :, None], c[None, None, :], :]
    return tiles.reshape(N * T, th + 2, W + 2, C), T


def _reflect_halo_tiles_from_upconv(up_blocked, th, cpad):
    """Same as above but reads the up-conv's blocked (N, H, W, 4*C) output and
    performs the (2i+a, 2j+b) interleave inside the gather indices, so the
    interleaved (N,2H,2W,C) tensor is never materialised in HBM."""
    N, H, W, _ = up_blocked.shape
    Hh, Ww = 2 * H, 2 * W
    T = Hh // th
    up6 = up_blocked.reshape(N, H, W, 2, 2, cpad)
    r = _reflect_index(Hh, jnp.arange(T)[:, None] * th
                       + jnp.arange(th + 2)[None, :] - 1)          # (T, th+2)
    c = _reflect_index(Ww, jnp.arange(-1, Ww + 1))                 # (Ww+2,)
    i, a = r // 2, r % 2
    j, b = c // 2, c % 2
    tiles = up6[:, i[:, :, None], j[None, None, :],
                a[:, :, None], b[None, None, :], :]                # (N,T,th+2,Ww+2,C)
    return tiles.reshape(N * T, th + 2, Ww + 2, cpad), T


def _pack_conv_weight(v, g, in_splits, cout_pad):
    """WNConv2d weight (O, I, 3, 3): weight-norm, split along I into slabs,
    zero-pad each slab and the output channels to lane multiples, and collapse
    the 3x3 taps into the contraction -> (3, 3*sum(pad(slab)), cout_pad)."""
    w = weight_norm(v, g)                                   # (O, I, 3, 3)
    w = jnp.transpose(w, (2, 3, 1, 0))                      # (3, 3, I, O)
    O = v.shape[0]
    w = jnp.pad(w, ((0, 0), (0, 0), (0, 0), (0, cout_pad - O)))
    blocks, start = [], 0
    for cin in in_splits:
        cin_p = _pad_to_lane(cin)
        slab = w[:, :, start:start + cin, :]
        slab = jnp.pad(slab, ((0, 0), (0, 0), (0, cin_p - cin), (0, 0)))
        blocks.append(slab.reshape(3, 3 * cin_p, cout_pad))
        start += cin
    return jnp.concatenate(blocks, axis=1).astype(ACT_DTYPE)


def _gn_scale_shift(ch_sum, ch_sq, gamma, beta, group_mat, count, eps=1e-5):
    """Combine per-tile per-channel [sum, sumsq] partials into GroupNorm
    per-(image, channel) scale/shift (tiny tensors; plain JAX)."""
    s1 = jnp.sum(ch_sum, axis=(1, 2))                       # (N, Cpad)
    s2 = jnp.sum(ch_sq, axis=(1, 2))
    mean = (s1 @ group_mat) / count                         # (N, G)
    var = (s2 @ group_mat) / count - mean * mean
    inv = jax.lax.rsqrt(var + eps)
    mean_c = mean @ group_mat.T                             # (N, Cpad)
    inv_c = inv @ group_mat.T
    scale = gamma[None, :] * inv_c
    shift = beta[None, :] - mean_c * scale
    return scale[:, None, :], shift[:, None, :]             # (N, 1, Cpad) f32


def unet_up_block_forward(params, x_nchw, bridge_nchw):
    N, Cin, H, W = x_nchw.shape
    Cout = params["up_b"].shape[0]
    Cb = bridge_nchw.shape[1]
    cin_pad, cout_pad, cb_pad = _pad_to_lane(Cin), _pad_to_lane(Cout), _pad_to_lane(Cb)
    Hh, Ww = 2 * H, 2 * W

    # ---- up = ConvTranspose2d(Cin, Cout, k=2, s=2) -------------------------
    x_nhwc = _pad_channels(jnp.transpose(x_nchw, (0, 2, 3, 1)), cin_pad).astype(ACT_DTYPE)
    w_up = jnp.pad(params["up_w"], ((0, cin_pad - Cin), (0, cout_pad - Cout), (0, 0), (0, 0)))
    w_up = jnp.transpose(w_up, (0, 2, 3, 1)).reshape(cin_pad, 4 * cout_pad).astype(ACT_DTYPE)
    b_up = jnp.tile(jnp.pad(params["up_b"], (0, cout_pad - Cout)), 4)
    b_up = b_up.reshape(1, 4 * cout_pad).astype(jnp.float32)
    th_up = _pick_tile(H, max(1, 512 // W))                 # ~512-row matmul tiles
    up = upconv2x2(x_nhwc, w_up, b_up, 4 * cout_pad, th_up)  # (N, H, W, 4*cout_pad)

    # ---- center_crop(bridge) -> NHWC, channel padded -----------------------
    bh, bw = bridge_nchw.shape[2], bridge_nchw.shape[3]
    dy, dx = (bh - Hh) // 2, (bw - Ww) // 2
    crop = bridge_nchw[:, :, dy:dy + Hh, dx:dx + Ww]
    crop = _pad_channels(jnp.transpose(crop, (0, 2, 3, 1)), cb_pad).astype(ACT_DTYPE)

    # ---- GroupNorm bookkeeping ---------------------------------------------
    groups = get_groups(Cout)
    cg = Cout // groups
    ch = jnp.arange(cout_pad)
    group_mat = (((ch[:, None] // cg) == jnp.arange(groups)[None, :])
                 & (ch[:, None] < Cout)).astype(jnp.float32)
    count = float(Hh * Ww * cg)
    gamma1 = jnp.pad(params["gn1_w"], (0, cout_pad - Cout))
    beta1 = jnp.pad(params["gn1_b"], (0, cout_pad - Cout))
    gamma2 = jnp.pad(params["gn2_w"], (0, cout_pad - Cout))
    beta2 = jnp.pad(params["gn2_b"], (0, cout_pad - Cout))

    th = _pick_tile(Hh, max(1, min(max(Hh // 2, 1), 2048 // Ww)))  # rows per conv tile

    # ---- stage 1: ReflPad + WNConv3x3(cat[up,crop]) + Swish (+GN1 stats) ----
    w1 = _pack_conv_weight(params["conv1_v"], params["conv1_g"], (Cout, Cb), cout_pad)
    b1 = jnp.pad(params["conv1_b"], (0, cout_pad - Cout)).reshape(1, cout_pad).astype(jnp.float32)
    up_tiles, T = _reflect_halo_tiles_from_upconv(up, th, cout_pad)
    cr_tiles, _ = _reflect_halo_tiles(crop, th)
    act1, s1a, s1b = conv_stage1(up_tiles, cr_tiles, w1, b1, N, T, Hh, Ww, th, cout_pad)
    scale1, shift1 = _gn_scale_shift(s1a, s1b, gamma1, beta1, group_mat, count)

    # ---- stage 2: GN1 apply fused into ReflPad + WNConv3x3 + Swish (+GN2 stats)
    w2 = _pack_conv_weight(params["conv2_v"], params["conv2_g"], (Cout,), cout_pad)
    b2 = jnp.pad(params["conv2_b"], (0, cout_pad - Cout)).reshape(1, cout_pad).astype(jnp.float32)
    a1_tiles, _ = _reflect_halo_tiles(act1, th)
    act2, s2a, s2b = conv_stage2(a1_tiles, scale1, shift1, w2, b2, N, T, Hh, Ww, th, cout_pad)
    scale2, shift2 = _gn_scale_shift(s2a, s2b, gamma2, beta2, group_mat, count)

    # ---- final GN2 apply (lane-dense stores), back to NCHW ------------------
    out = group_norm_apply(act2, scale2, shift2, th)        # (N, Hh, Ww, cout_pad) f32
    return jnp.transpose(out[..., :Cout], (0, 3, 1, 2))


# --------------------------- pure-JAX reference ------------------------------

def _reference_forward(params, x, bridge, eps=1e-5):
    hi = jax.lax.Precision.HIGHEST
    N, Cin, H, W = x.shape
    Cout = params["up_b"].shape[0]

    t = jnp.einsum("ncij,coab->noiajb", x, params["up_w"], precision=hi)
    up = t.reshape(N, Cout, 2 * H, 2 * W) + params["up_b"][None, :, None, None]

    Hh, Ww = 2 * H, 2 * W
    bh, bw = bridge.shape[2], bridge.shape[3]
    dy, dx = (bh - Hh) // 2, (bw - Ww) // 2
    out = jnp.concatenate([up, bridge[:, :, dy:dy + Hh, dx:dx + Ww]], axis=1)

    def conv3x3(z, v, g, b):
        w = weight_norm(v, g)
        zp = jnp.pad(z, ((0, 0), (0, 0), (1, 1), (1, 1)), mode="reflect")
        y = jax.lax.conv_general_dilated(
            zp, w, window_strides=(1, 1), padding="VALID",
            dimension_numbers=("NCHW", "OIHW", "NCHW"), precision=hi)
        return y + b[None, :, None, None]

    def swish(z):
        return z * jax.nn.sigmoid(z)

    def gnorm(z, gamma, beta, groups):
        n, c, h, w = z.shape
        zg = z.reshape(n, groups, c // groups, h, w)
        mu = jnp.mean(zg, axis=(2, 3, 4), keepdims=True)
        var = jnp.mean((zg - mu) ** 2, axis=(2, 3, 4), keepdims=True)
        zn = ((zg - mu) / jnp.sqrt(var + eps)).reshape(n, c, h, w)
        return zn * gamma[None, :, None, None] + beta[None, :, None, None]

    groups = get_groups(Cout)
    out = swish(conv3x3(out, params["conv1_v"], params["conv1_g"], params["conv1_b"]))
    out = gnorm(out, params["gn1_w"], params["gn1_b"], groups)
    out = swish(conv3x3(out, params["conv2_v"], params["conv2_g"], params["conv2_b"]))
    out = gnorm(out, params["gn2_w"], params["gn2_b"], groups)
    return out


# --------------------------------- main --------------------------------------

if __name__ == "__main__":
    in_size, out_size = 8, 4
    N, H, W = 2, 8, 8
    Hb = Wb = 18  # bridge spatial > 2H so center_crop actually crops

    ks = jax.random.split(jax.random.PRNGKey(0), 14)
    params = {
        "up_w":    0.1 * jax.random.normal(ks[0], (in_size, out_size, 2, 2), jnp.float32),
        "up_b":    0.1 * jax.random.normal(ks[1], (out_size,), jnp.float32),
        "conv1_v": 0.1 * jax.random.normal(ks[2], (out_size, in_size, 3, 3), jnp.float32),
        "conv1_g": 1.0 + 0.1 * jax.random.normal(ks[3], (out_size,), jnp.float32),
        "conv1_b": 0.1 * jax.random.normal(ks[4], (out_size,), jnp.float32),
        "gn1_w":   1.0 + 0.1 * jax.random.normal(ks[5], (out_size,), jnp.float32),
        "gn1_b":   0.1 * jax.random.normal(ks[6], (out_size,), jnp.float32),
        "conv2_v": 0.1 * jax.random.normal(ks[7], (out_size, out_size, 3, 3), jnp.float32),
        "conv2_g": 1.0 + 0.1 * jax.random.normal(ks[8], (out_size,), jnp.float32),
        "conv2_b": 0.1 * jax.random.normal(ks[9], (out_size,), jnp.float32),
        "gn2_w":   1.0 + 0.1 * jax.random.normal(ks[10], (out_size,), jnp.float32),
        "gn2_b":   0.1 * jax.random.normal(ks[11], (out_size,), jnp.float32),
    }
    x = jax.random.normal(ks[12], (N, in_size, H, W), jnp.float32)
    bridge = jax.random.normal(ks[13], (N, in_size - out_size, Hb, Wb), jnp.float32)

    out = jax.jit(unet_up_block_forward)(params, x, bridge)
    out = jax.block_until_ready(out)
    assert out.shape == (N, out_size, 2 * H, 2 * W), out.shape
    assert bool(jnp.all(jnp.isfinite(out)))

    ref = _reference_forward(params, x, bridge)
    err = float(jnp.max(jnp.abs(out - ref)))
    assert err < 2e-1, f"max abs err vs reference: {err}"
    print("KERNEL_OK")
</pallas_src>

<mosaic_0001>
module attributes {stable_mosaic.version = 11 : i64} {
  func.func @_upconv_kernel(%arg0: i32, %arg1: i32, %arg2: memref<1x8x8x128xbf16, #tpu.memory_space<vmem>>, %arg3: memref<128x512xbf16, #tpu.memory_space<vmem>>, %arg4: memref<1x512xf32, #tpu.memory_space<vmem>>, %arg5: memref<1x8x8x512xbf16, #tpu.memory_space<vmem>>) attributes {dimension_semantics = [#tpu.dimension_semantics<parallel>, #tpu.dimension_semantics<parallel>], iteration_bounds = array<i64: 2, 1>, scalar_prefetch = 0 : i64, scratch_operands = 0 : i64, tpu.core_type = #tpu.core_type<tc>, window_params = [{transform_indices = @transform_0, window_bounds = array<i64: 1, 8, 8, 128>}, {pipeline_mode = #tpu.pipeline_mode<synchronous>, transform_indices = @transform_1, window_bounds = array<i64: 128, 512>}, {pipeline_mode = #tpu.pipeline_mode<synchronous>, transform_indices = @transform_2, window_bounds = array<i64: 1, 512>}, {transform_indices = @transform_3, window_bounds = array<i64: 1, 8, 8, 512>}]} {
    %c0 = arith.constant 0 : index
    %c0_0 = arith.constant 0 : index
    %c0_1 = arith.constant 0 : index
    %c0_2 = arith.constant 0 : index
    %0 = vector.load %arg2[%c0, %c0_0, %c0_1, %c0_2] : memref<1x8x8x128xbf16, #tpu.memory_space<vmem>>, vector<1x8x8x128xbf16>
    %1 = vector.shape_cast %0 : vector<1x8x8x128xbf16> to vector<8x8x128xbf16>
    %2 = vector.shape_cast %1 : vector<8x8x128xbf16> to vector<64x128xbf16>
    %c0_3 = arith.constant 0 : index
    %c0_4 = arith.constant 0 : index
    %3 = vector.load %arg3[%c0_3, %c0_4] : memref<128x512xbf16, #tpu.memory_space<vmem>>, vector<128x512xbf16>
    %cst = arith.constant dense<0.000000e+00> : vector<64x512xf32>
    %4 = tpu.matmul %2, %3, %cst {dimension_numbers = #tpu.dot_dimension_numbers<[1], [0], [0], [1], [0, 0, 1, 1], [], []>} : vector<64x128xbf16>, vector<128x512xbf16>, vector<64x512xf32> -> vector<64x512xf32>
    %c0_5 = arith.constant 0 : index
    %c0_6 = arith.constant 0 : index
    %5 = vector.load %arg4[%c0_5, %c0_6] : memref<1x512xf32, #tpu.memory_space<vmem>>, vector<1x512xf32>
    %6 = vector.broadcast %5 : vector<1x512xf32> to vector<64x512xf32>
    %7 = arith.addf %4, %6 : vector<64x512xf32>
    %8 = vector.shape_cast %7 : vector<64x512xf32> to vector<8x8x512xf32>
    %9 = arith.truncf %8 : vector<8x8x512xf32> to vector<8x8x512xbf16>
    %c0_7 = arith.constant 0 : index
    %c0_8 = arith.constant 0 : index
    %c0_9 = arith.constant 0 : index
    %c0_10 = arith.constant 0 : index
    %10 = vector.load %arg5[%c0_7, %c0_8, %c0_9, %c0_10] : memref<1x8x8x512xbf16, #tpu.memory_space<vmem>>, vector<1x8x8x512xbf16>
    %11 = vector.shape_cast %10 : vector<1x8x8x512xbf16> to vector<8x8x512xbf16>
    %12 = vector.shape_cast %9 : vector<8x8x512xbf16> to vector<1x8x8x512xbf16>
    tpu.vector_store %arg5[%c0_7, %c0_8, %c0_9, %c0_10], %12 {strides = array<i32>} : memref<1x8x8x512xbf16, #tpu.memory_space<vmem>>, vector<1x8x8x512xbf16>,
    return
  }
  func.func @transform_0(%arg0: i32, %arg1: i32) -> (i32, i32, i32, i32) {
    %c0_i32 = arith.constant 0 : i32
    %c0_i32_0 = arith.constant 0 : i32
    %c0_i32_1 = arith.constant 0 : i32
    return %arg0, %arg1, %c0_i32, %c0_i32_0 : i32, i32, i32, i32
  }
  func.func @transform_1(%arg0: i32, %arg1: i32) -> (i32, i32) {
    %c0_i32 = arith.constant 0 : i32
    %c0_i32_0 = arith.constant 0 : i32
    %c0_i32_1 = arith.constant 0 : i32
    return %c0_i32, %c0_i32_0 : i32, i32
  }
  func.func @transform_2(%arg0: i32, %arg1: i32) -> (i32, i32) {
    %c0_i32 = arith.constant 0 : i32
    %c0_i32_0 = arith.constant 0 : i32
    %c0_i32_1 = arith.constant 0 : i32
    return %c0_i32, %c0_i32_0 : i32, i32
  }
  func.func @transform_3(%arg0: i32, %arg1: i32) -> (i32, i32, i32, i32) {
    %c0_i32 = arith.constant 0 : i32
    %c0_i32_0 = arith.constant 0 : i32
    %c0_i32_1 = arith.constant 0 : i32
    return %arg0, %arg1, %c0_i32, %c0_i32_0 : i32, i32, i32, i32
  }
}

module attributes {stable_mosaic.version = 11 : i64} {
  func.func @_conv1_kernel(%arg0: i32, %arg1: i32, %arg2: memref<1x10x18x128xbf16, #tpu.memory_space<vmem>>, %arg3: memref<1x10x18x128xbf16, #tpu.memory_space<vmem>>, %arg4: memref<3x768x128xbf16, #tpu.memory_space<vmem>>, %arg5: memref<1x128xf32, #tpu.memory_space<vmem>>, %arg6: memref<1x8x16x128xbf16, #tpu.memory_space<vmem>>, %arg7: memref<1x1x1x128xf32, #tpu.memory_space<vmem>>, %arg8: memref<1x1x1x128xf32, #tpu.memory_space<vmem>>) attributes {dimension_semantics = [#tpu.dimension_semantics<parallel>, #tpu.dimension_semantics<parallel>], iteration_bounds = array<i64: 2, 2>, scalar_prefetch = 0 : i64, scratch_operands = 0 : i64, tpu.core_type = #tpu.core_type<tc>, window_params = [{transform_indices = @transform_0, window_bounds = array<i64: 1, 10, 18, 128>}, {transform_indices = @transform_1, window_bounds = array<i64: 1, 10, 18, 128>}, {pipeline_mode = #tpu.pipeline_mode<synchronous>, transform_indices = @transform_2, window_bounds = array<i64: 3, 768, 128>}, {pipeline_mode = #tpu.pipeline_mode<synchronous>, transform_indices = @transform_3, window_bounds = array<i64: 1, 128>}, {transform_indices = @transform_4, window_bounds = array<i64: 1, 8, 16, 128>}, {transform_indices = @transform_5, window_bounds = array<i64: 1, 1, 1, 128>}, {transform_indices = @transform_6, window_bounds = array<i64: 1, 1, 1, 128>}]} {
    %c0 = arith.constant 0 : index
    %c0_0 = arith.constant 0 : index
    %c0_1 = arith.constant 0 : index
    %c0_2 = arith.constant 0 : index
    %0 = vector.load %arg2[%c0, %c0_0, %c0_1, %c0_2] : memref<1x10x18x128xbf16, #tpu.memory_space<vmem>>, vector<1x10x18x128xbf16>
    %1 = vector.shape_cast %0 : vector<1x10x18x128xbf16> to vector<10x18x128xbf16>
    %c0_3 = arith.constant 0 : index
    %c0_4 = arith.constant 0 : index
    %c0_5 = arith.constant 0 : index
    %c0_6 = arith.constant 0 : index
    %2 = vector.load %arg3[%c0_3, %c0_4, %c0_5, %c0_6] : memref<1x10x18x128xbf16, #tpu.memory_space<vmem>>, vector<1x10x18x128xbf16>
    %3 = vector.shape_cast %2 : vector<1x10x18x128xbf16> to vector<10x18x128xbf16>
    %cst = arith.constant 0.000000e+00 : f32
    %4 = vector.broadcast %cst : f32 to vector<128x128xf32>
    %5 = vector.extract_strided_slice %1 {offsets = [0, 0, 0], sizes = [8, 16, 128], strides = [1, 1, 1]} : vector<10x18x128xbf16> to vector<8x16x128xbf16>
    %6 = vector.shape_cast %5 : vector<8x16x128xbf16> to vector<128x128xbf16>
    %7 = vector.extract_strided_slice %1 {offsets = [0, 1, 0], sizes = [8, 16, 128], strides = [1, 1, 1]} : vector<10x18x128xbf16> to vector<8x16x128xbf16>
    %8 = vector.shape_cast %7 : vector<8x16x128xbf16> to vector<128x128xbf16>
    %9 = vector.extract_strided_slice %1 {offsets = [0, 2, 0], sizes = [8, 16, 128], strides = [1, 1, 1]} : vector<10x18x128xbf16> to vector<8x16x128xbf16>
    %10 = vector.shape_cast %9 : vector<8x16x128xbf16> to vector<128x128xbf16>
    %11 = vector.extract_strided_slice %3 {offsets = [0, 0, 0], sizes = [8, 16, 128], strides = [1, 1, 1]} : vector<10x18x128xbf16> to vector<8x16x128xbf16>
    %12 = vector.shape_cast %11 : vector<8x16x128xbf16> to vector<128x128xbf16>
    %13 = vector.extract_strided_slice %3 {offsets = [0, 1, 0], sizes = [8, 16, 128], strides = [1, 1, 1]} : vector<10x18x128xbf16> to vector<8x16x128xbf16>
    %14 = vector.shape_cast %13 : vector<8x16x128xbf16> to vector<128x128xbf16>
    %15 = vector.extract_strided_slice %3 {offsets = [0, 2, 0], sizes = [8, 16, 128], strides = [1, 1, 1]} : vector<10x18x128xbf16> to vector<8x16x128xbf16>
    %16 = vector.shape_cast %15 : vector<8x16x128xbf16> to vector<128x128xbf16>
    %17 = tpu.concatenate %6, %8, %10, %12, %14, %16 in 1 : vector<128x128xbf16>, vector<128x128xbf16>, vector<128x128xbf16>, vector<128x128xbf16>, vector<128x128xbf16>, vector<128x128xbf16> -> vector<128x768xbf16>
    %c0_7 = arith.constant 0 : index
    %c0_8 = arith.constant 0 : index
    %c0_9 = arith.constant 0 : index
    %18 = vector.load %arg4[%c0_7, %c0_8, %c0_9] : memref<3x768x128xbf16, #tpu.memory_space<vmem>>, vector<1x768x128xbf16>
    %19 = vector.shape_cast %18 : vector<1x768x128xbf16> to vector<768x128xbf16>
    %cst_10 = arith.constant dense<0.000000e+00> : vector<128x128xf32>
    %20 = tpu.matmul %17, %19, %cst_10 {dimension_numbers = #tpu.dot_dimension_numbers<[1], [0], [0], [1], [0, 0, 1, 1], [], []>} : vector<128x768xbf16>, vector<768x128xbf16>, vector<128x128xf32> -> vector<128x128xf32>
    %21 = arith.addf %4, %20 : vector<128x128xf32>
    %22 = vector.extract_strided_slice %1 {offsets = [1, 0, 0], sizes = [8, 16, 128], strides = [1, 1, 1]} : vector<10x18x128xbf16> to vector<8x16x128xbf16>
    %23 = vector.shape_cast %22 : vector<8x16x128xbf16> to vector<128x128xbf16>
    %24 = vector.extract_strided_slice %1 {offsets = [1, 1, 0], sizes = [8, 16, 128], strides = [1, 1, 1]} : vector<10x18x128xbf16> to vector<8x16x128xbf16>
    %25 = vector.shape_cast %24 : vector<8x16x128xbf16> to vector<128x128xbf16>
    %26 = vector.extract_strided_slice %1 {offsets = [1, 2, 0], sizes = [8, 16, 128], strides = [1, 1, 1]} : vector<10x18x128xbf16> to vector<8x16x128xbf16>
    %27 = vector.shape_cast %26 : vector<8x16x128xbf16> to vector<128x128xbf16>
    %28 = vector.extract_strided_slice %3 {offsets = [1, 0, 0], sizes = [8, 16, 128], strides = [1, 1, 1]} : vector<10x18x128xbf16> to vector<8x16x128xbf16>
    %29 = vector.shape_cast %28 : vector<8x16x128xbf16> to vector<128x128xbf16>
    %30 = vector.extract_strided_slice %3 {offsets = [1, 1, 0], sizes = [8, 16, 128], strides = [1, 1, 1]} : vector<10x18x128xbf16> to vector<8x16x128xbf16>
    %31 = vector.shape_cast %30 : vector<8x16x128xbf16> to vector<128x128xbf16>
    %32 = vector.extract_strided_slice %3 {offsets = [1, 2, 0], sizes = [8, 16, 128], strides = [1, 1, 1]} : vector<10x18x128xbf16> to vector<8x16x128xbf16>
    %33 = vector.shape_cast %32 : vector<8x16x128xbf16> to vector<128x128xbf16>
    %34 = tpu.concatenate %23, %25, %27, %29, %31, %33 in 1 : vector<128x128xbf16>, vector<128x128xbf16>, vector<128x128xbf16>, vector<128x128xbf16>, vector<128x128xbf16>, vector<128x128xbf16> -> vector<128x768xbf16>
    %c1 = arith.constant 1 : index
    %c0_11 = arith.constant 0 : index
    %c0_12 = arith.constant 0 : index
    %35 = vector.load %arg4[%c1, %c0_11, %c0_12] : memref<3x768x128xbf16, #tpu.memory_space<vmem>>, vector<1x768x128xbf16>
    %36 = vector.shape_cast %35 : vector<1x768x128xbf16> to vector<768x128xbf16>
    %cst_13 = arith.constant dense<0.000000e+00> : vector<128x128xf32>
    %37 = tpu.matmul %34, %36, %cst_13 {dimension_numbers = #tpu.dot_dimension_numbers<[1], [0], [0], [1], [0, 0, 1, 1], [], []>} : vector<128x768xbf16>, vector<768x128xbf16>, vector<128x128xf32> -> vector<128x128xf32>
    %38 = arith.addf %21, %37 : vector<128x128xf32>
    %39 = vector.extract_strided_slice %1 {offsets = [2, 0, 0], sizes = [8, 16, 128], strides = [1, 1, 1]} : vector<10x18x128xbf16> to vector<8x16x128xbf16>
    %40 = vector.shape_cast %39 : vector<8x16x128xbf16> to vector<128x128xbf16>
    %41 = vector.extract_strided_slice %1 {offsets = [2, 1, 0], sizes = [8, 16, 128], strides = [1, 1, 1]} : vector<10x18x128xbf16> to vector<8x16x128xbf16>
    %42 = vector.shape_cast %41 : vector<8x16x128xbf16> to vector<128x128xbf16>
    %43 = vector.extract_strided_slice %1 {offsets = [2, 2, 0], sizes = [8, 16, 128], strides = [1, 1, 1]} : vector<10x18x128xbf16> to vector<8x16x128xbf16>
    %44 = vector.shape_cast %43 : vector<8x16x128xbf16> to vector<128x128xbf16>
    %45 = vector.extract_strided_slice %3 {offsets = [2, 0, 0], sizes = [8, 16, 128], strides = [1, 1, 1]} : vector<10x18x128xbf16> to vector<8x16x128xbf16>
    %46 = vector.shape_cast %45 : vector<8x16x128xbf16> to vector<128x128xbf16>
    %47 = vector.extract_strided_slice %3 {offsets = [2, 1, 0], sizes = [8, 16, 128], strides = [1, 1, 1]} : vector<10x18x128xbf16> to vector<8x16x128xbf16>
    %48 = vector.shape_cast %47 : vector<8x16x128xbf16> to vector<128x128xbf16>
    %49 = vector.extract_strided_slice %3 {offsets = [2, 2, 0], sizes = [8, 16, 128], strides = [1, 1, 1]} : vector<10x18x128xbf16> to vector<8x16x128xbf16>
    %50 = vector.shape_cast %49 : vector<8x16x128xbf16> to vector<128x128xbf16>
    %51 = tpu.concatenate %40, %42, %44, %46, %48, %50 in 1 : vector<128x128xbf16>, vector<128x128xbf16>, vector<128x128xbf16>, vector<128x128xbf16>, vector<128x128xbf16>, vector<128x128xbf16> -> vector<128x768xbf16>
    %c2 = arith.constant 2 : index
    %c0_14 = arith.constant 0 : index
    %c0_15 = arith.constant 0 : index
    %52 = vector.load %arg4[%c2, %c0_14, %c0_15] : memref<3x768x128xbf16, #tpu.memory_space<vmem>>, vector<1x768x128xbf16>
    %53 = vector.shape_cast %52 : vector<1x768x128xbf16> to vector<768x128xbf16>
    %cst_16 = arith.constant dense<0.000000e+00> : vector<128x128xf32>
    %54 = tpu.matmul %51, %53, %cst_16 {dimension_numbers = #tpu.dot_dimension_numbers<[1], [0], [0], [1], [0, 0, 1, 1], [], []>} : vector<128x768xbf16>, vector<768x128xbf16>, vector<128x128xf32> -> vector<128x128xf32>
    %55 = arith.addf %38, %54 : vector<128x128xf32>
    %c0_17 = arith.constant 0 : index
    %c0_18 = arith.constant 0 : index
    %56 = vector.load %arg5[%c0_17, %c0_18] : memref<1x128xf32, #tpu.memory_space<vmem>>, vector<1x128xf32>
    %57 = vector.broadcast %56 : vector<1x128xf32> to vector<128x128xf32>
    %58 = arith.addf %55, %57 : vector<128x128xf32>
    %cst_19 = arith.constant 0.000000e+00 : f32
    %59 = vector.broadcast %cst_19 : f32 to vector<128x128xf32>
    %60 = arith.subf %59, %58 : vector<128x128xf32>
    %61 = math.exp %60 : vector<128x128xf32>
    %cst_20 = arith.constant 1.000000e+00 : f32
    %62 = vector.broadcast %cst_20 : f32 to vector<128x128xf32>
    %63 = arith.addf %62, %61 : vector<128x128xf32>
    %64 = tpu.reciprocal %63 {approx = true} : vector<128x128xf32> -> vector<128x128xf32>
    %65 = arith.mulf %58, %64 : vector<128x128xf32>
    %cst_21 = arith.constant dense<0.000000e+00> : vector<128xf32>
    %66 = vector.multi_reduction <add>, %65, %cst_21 [0] : vector<128x128xf32> to vector<128xf32>
    %67 = vector.shape_cast %66 : vector<128xf32> to vector<1x128xf32>
    %c0_22 = arith.constant 0 : index
    %c0_23 = arith.constant 0 : index
    %c0_24 = arith.constant 0 : index
    %c0_25 = arith.constant 0 : index
    %68 = vector.load %arg7[%c0_22, %c0_23, %c0_24, %c0_25] : memref<1x1x1x128xf32, #tpu.memory_space<vmem>>, vector<1x1x1x128xf32>
    %69 = vector.shape_cast %68 : vector<1x1x1x128xf32> to vector<1x128xf32>
    %70 = vector.shape_cast %67 : vector<1x128xf32> to vector<1x1x1x128xf32>
    tpu.vector_store %arg7[%c0_22, %c0_23, %c0_24, %c0_25], %70 {strides = array<i32>} : memref<1x1x1x128xf32, #tpu.memory_space<vmem>>, vector<1x1x1x128xf32>,
    %71 = arith.mulf %65, %65 : vector<128x128xf32>
    %cst_26 = arith.constant dense<0.000000e+00> : vector<128xf32>
    %72 = vector.multi_reduction <add>, %71, %cst_26 [0] : vector<128x128xf32> to vector<128xf32>
    %73 = vector.shape_cast %72 : vector<128xf32> to vector<1x128xf32>
    %c0_27 = arith.constant 0 : index
    %c0_28 = arith.constant 0 : index
    %c0_29 = arith.constant 0 : index
    %c0_30 = arith.constant 0 : index
    %74 = vector.load %arg8[%c0_27, %c0_28, %c0_29, %c0_30] : memref<1x1x1x128xf32, #tpu.memory_space<vmem>>, vector<1x1x1x128xf32>
    %75 = vector.shape_cast %74 : vector<1x1x1x128xf32> to vector<1x128xf32>
    %76 = vector.shape_cast %73 : vector<1x128xf32> to vector<1x1x1x128xf32>
    tpu.vector_store %arg8[%c0_27, %c0_28, %c0_29, %c0_30], %76 {strides = array<i32>} : memref<1x1x1x128xf32, #tpu.memory_space<vmem>>, vector<1x1x1x128xf32>,
    %77 = vector.shape_cast %65 : vector<128x128xf32> to vector<8x16x128xf32>
    %78 = arith.truncf %77 : vector<8x16x128xf32> to vector<8x16x128xbf16>
    %c0_31 = arith.constant 0 : index
    %c0_32 = arith.constant 0 : index
    %c0_33 = arith.constant 0 : index
    %c0_34 = arith.constant 0 : index
    %79 = vector.load %arg6[%c0_31, %c0_32, %c0_33, %c0_34] : memref<1x8x16x128xbf16, #tpu.memory_space<vmem>>, vector<1x8x16x128xbf16>
    %80 = vector.shape_cast %79 : vector<1x8x16x128xbf16> to vector<8x16x128xbf16>
    %81 = vector.shape_cast %78 : vector<8x16x128xbf16> to vector<1x8x16x128xbf16>
    tpu.vector_store %arg6[%c0_31, %c0_32, %c0_33, %c0_34], %81 {strides = array<i32>} : memref<1x8x16x128xbf16, #tpu.memory_space<vmem>>, vector<1x8x16x128xbf16>,
    return
  }
  func.func @transform_0(%arg0: i32, %arg1: i32) -> (i32, i32, i32, i32) {
    %c2_i32 = arith.constant 2 : i32
    %0 = arith.muli %arg0, %c2_i32 : i32
    %1 = arith.addi %0, %arg1 : i32
    %c0_i32 = arith.constant 0 : i32
    %c0_i32_0 = arith.constant 0 : i32
    %c0_i32_1 = arith.constant 0 : i32
    %c0_i32_2 = arith.constant 0 : i32
    return %1, %c0_i32, %c0_i32_0, %c0_i32_1 : i32, i32, i32, i32
  }
  func.func @transform_1(%arg0: i32, %arg1: i32) -> (i32, i32, i32, i32) {
    %c2_i32 = arith.constant 2 : i32
    %0 = arith.muli %arg0, %c2_i32 : i32
    %1 = arith.addi %0, %arg1 : i32
    %c0_i32 = arith.constant 0 : i32
    %c0_i32_0 = arith.constant 0 : i32
    %c0_i32_1 = arith.constant 0 : i32
    %c0_i32_2 = arith.constant 0 : i32
    return %1, %c0_i32, %c0_i32_0, %c0_i32_1 : i32, i32, i32, i32
  }
  func.func @transform_2(%arg0: i32, %arg1: i32) -> (i32, i32, i32) {
    %c0_i32 = arith.constant 0 : i32
    %c0_i32_0 = arith.constant 0 : i32
    %c0_i32_1 = arith.constant 0 : i32
    %c0_i32_2 = arith.constant 0 : i32
    return %c0_i32, %c0_i32_0, %c0_i32_1 : i32, i32, i32
  }
  func.func @transform_3(%arg0: i32, %arg1: i32) -> (i32, i32) {
    %c0_i32 = arith.constant 0 : i32
    %c0_i32_0 = arith.constant 0 : i32
    %c0_i32_1 = arith.constant 0 : i32
    return %c0_i32, %c0_i32_0 : i32, i32
  }
  func.func @transform_4(%arg0: i32, %arg1: i32) -> (i32, i32, i32, i32) {
    %c0_i32 = arith.constant 0 : i32
    %c0_i32_0 = arith.constant 0 : i32
    %c0_i32_1 = arith.constant 0 : i32
    return %arg0, %arg1, %c0_i32, %c0_i32_0 : i32, i32, i32, i32
  }
  func.func @transform_5(%arg0: i32, %arg1: i32) -> (i32, i32, i32, i32) {
    %c0_i32 = arith.constant 0 : i32
    %c0_i32_0 = arith.constant 0 : i32
    %c0_i32_1 = arith.constant 0 : i32
    return %arg0, %arg1, %c0_i32, %c0_i32_0 : i32, i32, i32, i32
  }
  func.func @transform_6(%arg0: i32, %arg1: i32) -> (i32, i32, i32, i32) {
    %c0_i32 = arith.constant 0 : i32
    %c0_i32_0 = arith.constant 0 : i32
    %c0_i32_1 = arith.constant 0 : i32
    return %arg0, %arg1, %c0_i32, %c0_i32_0 : i32, i32, i32, i32
  }
}

module attributes {stable_mosaic.version = 11 : i64} {
  func.func @_conv2_kernel(%arg0: i32, %arg1: i32, %arg2: memref<1x10x18x128xbf16, #tpu.memory_space<vmem>>, %arg3: memref<1x1x128xf32, #tpu.memory_space<vmem>>, %arg4: memref<1x1x128xf32, #tpu.memory_space<vmem>>, %arg5: memref<3x384x128xbf16, #tpu.memory_space<vmem>>, %arg6: memref<1x128xf32, #tpu.memory_space<vmem>>, %arg7: memref<1x8x16x128xbf16, #tpu.memory_space<vmem>>, %arg8: memref<1x1x1x128xf32, #tpu.memory_space<vmem>>, %arg9: memref<1x1x1x128xf32, #tpu.memory_space<vmem>>) attributes {dimension_semantics = [#tpu.dimension_semantics<parallel>, #tpu.dimension_semantics<parallel>], iteration_bounds = array<i64: 2, 2>, scalar_prefetch = 0 : i64, scratch_operands = 0 : i64, tpu.core_type = #tpu.core_type<tc>, window_params = [{transform_indices = @transform_0, window_bounds = array<i64: 1, 10, 18, 128>}, {transform_indices = @transform_1, window_bounds = array<i64: 1, 1, 128>}, {transform_indices = @transform_2, window_bounds = array<i64: 1, 1, 128>}, {pipeline_mode = #tpu.pipeline_mode<synchronous>, transform_indices = @transform_3, window_bounds = array<i64: 3, 384, 128>}, {pipeline_mode = #tpu.pipeline_mode<synchronous>, transform_indices = @transform_4, window_bounds = array<i64: 1, 128>}, {transform_indices = @transform_5, window_bounds = array<i64: 1, 8, 16, 128>}, {transform_indices = @transform_6, window_bounds = array<i64: 1, 1, 1, 128>}, {transform_indices = @transform_7, window_bounds = array<i64: 1, 1, 1, 128>}]} {
    %c0 = arith.constant 0 : index
    %c0_0 = arith.constant 0 : index
    %c0_1 = arith.constant 0 : index
    %c0_2 = arith.constant 0 : index
    %0 = vector.load %arg2[%c0, %c0_0, %c0_1, %c0_2] : memref<1x10x18x128xbf16, #tpu.memory_space<vmem>>, vector<1x10x18x128xbf16>
    %1 = vector.shape_cast %0 : vector<1x10x18x128xbf16> to vector<10x18x128xbf16>
    %2 = arith.extf %1 : vector<10x18x128xbf16> to vector<10x18x128xf32>
    %c0_3 = arith.constant 0 : index
    %c0_4 = arith.constant 0 : index
    %c0_5 = arith.constant 0 : index
    %3 = vector.load %arg3[%c0_3, %c0_4, %c0_5] : memref<1x1x128xf32, #tpu.memory_space<vmem>>, vector<1x1x128xf32>
    %4 = vector.shape_cast %3 : vector<1x1x128xf32> to vector<1x128xf32>
    %5 = vector.shape_cast %4 : vector<1x128xf32> to vector<1x1x128xf32>
    %6 = vector.broadcast %5 : vector<1x1x128xf32> to vector<10x18x128xf32>
    %7 = arith.mulf %2, %6 : vector<10x18x128xf32>
    %c0_6 = arith.constant 0 : index
    %c0_7 = arith.constant 0 : index
    %c0_8 = arith.constant 0 : index
    %8 = vector.load %arg4[%c0_6, %c0_7, %c0_8] : memref<1x1x128xf32, #tpu.memory_space<vmem>>, vector<1x1x128xf32>
    %9 = vector.shape_cast %8 : vector<1x1x128xf32> to vector<1x128xf32>
    %10 = vector.shape_cast %9 : vector<1x128xf32> to vector<1x1x128xf32>
    %11 = vector.broadcast %10 : vector<1x1x128xf32> to vector<10x18x128xf32>
    %12 = arith.addf %7, %11 : vector<10x18x128xf32>
    %13 = arith.truncf %12 : vector<10x18x128xf32> to vector<10x18x128xbf16>
    %cst = arith.constant 0.000000e+00 : f32
    %14 = vector.broadcast %cst : f32 to vector<128x128xf32>
    %15 = vector.extract_strided_slice %13 {offsets = [0, 0, 0], sizes = [8, 16, 128], strides = [1, 1, 1]} : vector<10x18x128xbf16> to vector<8x16x128xbf16>
    %16 = vector.shape_cast %15 : vector<8x16x128xbf16> to vector<128x128xbf16>
    %17 = vector.extract_strided_slice %13 {offsets = [0, 1, 0], sizes = [8, 16, 128], strides = [1, 1, 1]} : vector<10x18x128xbf16> to vector<8x16x128xbf16>
    %18 = vector.shape_cast %17 : vector<8x16x128xbf16> to vector<128x128xbf16>
    %19 = vector.extract_strided_slice %13 {offsets = [0, 2, 0], sizes = [8, 16, 128], strides = [1, 1, 1]} : vector<10x18x128xbf16> to vector<8x16x128xbf16>
    %20 = vector.shape_cast %19 : vector<8x16x128xbf16> to vector<128x128xbf16>
    %21 = tpu.concatenate %16, %18, %20 in 1 : vector<128x128xbf16>, vector<128x128xbf16>, vector<128x128xbf16> -> vector<128x384xbf16>
    %c0_9 = arith.constant 0 : index
    %c0_10 = arith.constant 0 : index
    %c0_11 = arith.constant 0 : index
    %22 = vector.load %arg5[%c0_9, %c0_10, %c0_11] : memref<3x384x128xbf16, #tpu.memory_space<vmem>>, vector<1x384x128xbf16>
    %23 = vector.shape_cast %22 : vector<1x384x128xbf16> to vector<384x128xbf16>
    %cst_12 = arith.constant dense<0.000000e+00> : vector<128x128xf32>
    %24 = tpu.matmul %21, %23, %cst_12 {dimension_numbers = #tpu.dot_dimension_numbers<[1], [0], [0], [1], [0, 0, 1, 1], [], []>} : vector<128x384xbf16>, vector<384x128xbf16>, vector<128x128xf32> -> vector<128x128xf32>
    %25 = arith.addf %14, %24 : vector<128x128xf32>
    %26 = vector.extract_strided_slice %13 {offsets = [1, 0, 0], sizes = [8, 16, 128], strides = [1, 1, 1]} : vector<10x18x128xbf16> to vector<8x16x128xbf16>
    %27 = vector.shape_cast %26 : vector<8x16x128xbf16> to vector<128x128xbf16>
    %28 = vector.extract_strided_slice %13 {offsets = [1, 1, 0], sizes = [8, 16, 128], strides = [1, 1, 1]} : vector<10x18x128xbf16> to vector<8x16x128xbf16>
    %29 = vector.shape_cast %28 : vector<8x16x128xbf16> to vector<128x128xbf16>
    %30 = vector.extract_strided_slice %13 {offsets = [1, 2, 0], sizes = [8, 16, 128], strides = [1, 1, 1]} : vector<10x18x128xbf16> to vector<8x16x128xbf16>
    %31 = vector.shape_cast %30 : vector<8x16x128xbf16> to vector<128x128xbf16>
    %32 = tpu.concatenate %27, %29, %31 in 1 : vector<128x128xbf16>, vector<128x128xbf16>, vector<128x128xbf16> -> vector<128x384xbf16>
    %c1 = arith.constant 1 : index
    %c0_13 = arith.constant 0 : index
    %c0_14 = arith.constant 0 : index
    %33 = vector.load %arg5[%c1, %c0_13, %c0_14] : memref<3x384x128xbf16, #tpu.memory_space<vmem>>, vector<1x384x128xbf16>
    %34 = vector.shape_cast %33 : vector<1x384x128xbf16> to vector<384x128xbf16>
    %cst_15 = arith.constant dense<0.000000e+00> : vector<128x128xf32>
    %35 = tpu.matmul %32, %34, %cst_15 {dimension_numbers = #tpu.dot_dimension_numbers<[1], [0], [0], [1], [0, 0, 1, 1], [], []>} : vector<128x384xbf16>, vector<384x128xbf16>, vector<128x128xf32> -> vector<128x128xf32>
    %36 = arith.addf %25, %35 : vector<128x128xf32>
    %37 = vector.extract_strided_slice %13 {offsets = [2, 0, 0], sizes = [8, 16, 128], strides = [1, 1, 1]} : vector<10x18x128xbf16> to vector<8x16x128xbf16>
    %38 = vector.shape_cast %37 : vector<8x16x128xbf16> to vector<128x128xbf16>
    %39 = vector.extract_strided_slice %13 {offsets = [2, 1, 0], sizes = [8, 16, 128], strides = [1, 1, 1]} : vector<10x18x128xbf16> to vector<8x16x128xbf16>
    %40 = vector.shape_cast %39 : vector<8x16x128xbf16> to vector<128x128xbf16>
    %41 = vector.extract_strided_slice %13 {offsets = [2, 2, 0], sizes = [8, 16, 128], strides = [1, 1, 1]} : vector<10x18x128xbf16> to vector<8x16x128xbf16>
    %42 = vector.shape_cast %41 : vector<8x16x128xbf16> to vector<128x128xbf16>
    %43 = tpu.concatenate %38, %40, %42 in 1 : vector<128x128xbf16>, vector<128x128xbf16>, vector<128x128xbf16> -> vector<128x384xbf16>
    %c2 = arith.constant 2 : index
    %c0_16 = arith.constant 0 : index
    %c0_17 = arith.constant 0 : index
    %44 = vector.load %arg5[%c2, %c0_16, %c0_17] : memref<3x384x128xbf16, #tpu.memory_space<vmem>>, vector<1x384x128xbf16>
    %45 = vector.shape_cast %44 : vector<1x384x128xbf16> to vector<384x128xbf16>
    %cst_18 = arith.constant dense<0.000000e+00> : vector<128x128xf32>
    %46 = tpu.matmul %43, %45, %cst_18 {dimension_numbers = #tpu.dot_dimension_numbers<[1], [0], [0], [1], [0, 0, 1, 1], [], []>} : vector<128x384xbf16>, vector<384x128xbf16>, vector<128x128xf32> -> vector<128x128xf32>
    %47 = arith.addf %36, %46 : vector<128x128xf32>
    %c0_19 = arith.constant 0 : index
    %c0_20 = arith.constant 0 : index
    %48 = vector.load %arg6[%c0_19, %c0_20] : memref<1x128xf32, #tpu.memory_space<vmem>>, vector<1x128xf32>
    %49 = vector.broadcast %48 : vector<1x128xf32> to vector<128x128xf32>
    %50 = arith.addf %47, %49 : vector<128x128xf32>
    %cst_21 = arith.constant 0.000000e+00 : f32
    %51 = vector.broadcast %cst_21 : f32 to vector<128x128xf32>
    %52 = arith.subf %51, %50 : vector<128x128xf32>
    %53 = math.exp %52 : vector<128x128xf32>
    %cst_22 = arith.constant 1.000000e+00 : f32
    %54 = vector.broadcast %cst_22 : f32 to vector<128x128xf32>
    %55 = arith.addf %54, %53 : vector<128x128xf32>
    %56 = tpu.reciprocal %55 {approx = true} : vector<128x128xf32> -> vector<128x128xf32>
    %57 = arith.mulf %50, %56 : vector<128x128xf32>
    %cst_23 = arith.constant dense<0.000000e+00> : vector<128xf32>
    %58 = vector.multi_reduction <add>, %57, %cst_23 [0] : vector<128x128xf32> to vector<128xf32>
    %59 = vector.shape_cast %58 : vector<128xf32> to vector<1x128xf32>
    %c0_24 = arith.constant 0 : index
    %c0_25 = arith.constant 0 : index
    %c0_26 = arith.constant 0 : index
    %c0_27 = arith.constant 0 : index
    %60 = vector.load %arg8[%c0_24, %c0_25, %c0_26, %c0_27] : memref<1x1x1x128xf32, #tpu.memory_space<vmem>>, vector<1x1x1x128xf32>
    %61 = vector.shape_cast %60 : vector<1x1x1x128xf32> to vector<1x128xf32>
    %62 = vector.shape_cast %59 : vector<1x128xf32> to vector<1x1x1x128xf32>
    tpu.vector_store %arg8[%c0_24, %c0_25, %c0_26, %c0_27], %62 {strides = array<i32>} : memref<1x1x1x128xf32, #tpu.memory_space<vmem>>, vector<1x1x1x128xf32>,
    %63 = arith.mulf %57, %57 : vector<128x128xf32>
    %cst_28 = arith.constant dense<0.000000e+00> : vector<128xf32>
    %64 = vector.multi_reduction <add>, %63, %cst_28 [0] : vector<128x128xf32> to vector<128xf32>
    %65 = vector.shape_cast %64 : vector<128xf32> to vector<1x128xf32>
    %c0_29 = arith.constant 0 : index
    %c0_30 = arith.constant 0 : index
    %c0_31 = arith.constant 0 : index
    %c0_32 = arith.constant 0 : index
    %66 = vector.load %arg9[%c0_29, %c0_30, %c0_31, %c0_32] : memref<1x1x1x128xf32, #tpu.memory_space<vmem>>, vector<1x1x1x128xf32>
    %67 = vector.shape_cast %66 : vector<1x1x1x128xf32> to vector<1x128xf32>
    %68 = vector.shape_cast %65 : vector<1x128xf32> to vector<1x1x1x128xf32>
    tpu.vector_store %arg9[%c0_29, %c0_30, %c0_31, %c0_32], %68 {strides = array<i32>} : memref<1x1x1x128xf32, #tpu.memory_space<vmem>>, vector<1x1x1x128xf32>,
    %69 = vector.shape_cast %57 : vector<128x128xf32> to vector<8x16x128xf32>
    %70 = arith.truncf %69 : vector<8x16x128xf32> to vector<8x16x128xbf16>
    %c0_33 = arith.constant 0 : index
    %c0_34 = arith.constant 0 : index
    %c0_35 = arith.constant 0 : index
    %c0_36 = arith.constant 0 : index
    %71 = vector.load %arg7[%c0_33, %c0_34, %c0_35, %c0_36] : memref<1x8x16x128xbf16, #tpu.memory_space<vmem>>, vector<1x8x16x128xbf16>
    %72 = vector.shape_cast %71 : vector<1x8x16x128xbf16> to vector<8x16x128xbf16>
    %73 = vector.shape_cast %70 : vector<8x16x128xbf16> to vector<1x8x16x128xbf16>
    tpu.vector_store %arg7[%c0_33, %c0_34, %c0_35, %c0_36], %73 {strides = array<i32>} : memref<1x8x16x128xbf16, #tpu.memory_space<vmem>>, vector<1x8x16x128xbf16>,
    return
  }
  func.func @transform_0(%arg0: i32, %arg1: i32) -> (i32, i32, i32, i32) {
    %c2_i32 = arith.constant 2 : i32
    %0 = arith.muli %arg0, %c2_i32 : i32
    %1 = arith.addi %0, %arg1 : i32
    %c0_i32 = arith.constant 0 : i32
    %c0_i32_0 = arith.constant 0 : i32
    %c0_i32_1 = arith.constant 0 : i32
    %c0_i32_2 = arith.constant 0 : i32
    return %1, %c0_i32, %c0_i32_0, %c0_i32_1 : i32, i32, i32, i32
  }
  func.func @transform_1(%arg0: i32, %arg1: i32) -> (i32, i32, i32) {
    %c0_i32 = arith.constant 0 : i32
    %c0_i32_0 = arith.constant 0 : i32
    %c0_i32_1 = arith.constant 0 : i32
    return %arg0, %c0_i32, %c0_i32_0 : i32, i32, i32
  }
  func.func @transform_2(%arg0: i32, %arg1: i32) -> (i32, i32, i32) {
    %c0_i32 = arith.constant 0 : i32
    %c0_i32_0 = arith.constant 0 : i32
    %c0_i32_1 = arith.constant 0 : i32
    return %arg0, %c0_i32, %c0_i32_0 : i32, i32, i32
  }
  func.func @transform_3(%arg0: i32, %arg1: i32) -> (i32, i32, i32) {
    %c0_i32 = arith.constant 0 : i32
    %c0_i32_0 = arith.constant 0 : i32
    %c0_i32_1 = arith.constant 0 : i32
    %c0_i32_2 = arith.constant 0 : i32
    return %c0_i32, %c0_i32_0, %c0_i32_1 : i32, i32, i32
  }
  func.func @transform_4(%arg0: i32, %arg1: i32) -> (i32, i32) {
    %c0_i32 = arith.constant 0 : i32
    %c0_i32_0 = arith.constant 0 : i32
    %c0_i32_1 = arith.constant 0 : i32
    return %c0_i32, %c0_i32_0 : i32, i32
  }
  func.func @transform_5(%arg0: i32, %arg1: i32) -> (i32, i32, i32, i32) {
    %c0_i32 = arith.constant 0 : i32
    %c0_i32_0 = arith.constant 0 : i32
    %c0_i32_1 = arith.constant 0 : i32
    return %arg0, %arg1, %c0_i32, %c0_i32_0 : i32, i32, i32, i32
  }
  func.func @transform_6(%arg0: i32, %arg1: i32) -> (i32, i32, i32, i32) {
    %c0_i32 = arith.constant 0 : i32
    %c0_i32_0 = arith.constant 0 : i32
    %c0_i32_1 = arith.constant 0 : i32
    return %arg0, %arg1, %c0_i32, %c0_i32_0 : i32, i32, i32, i32
  }
  func.func @transform_7(%arg0: i32, %arg1: i32) -> (i32, i32, i32, i32) {
    %c0_i32 = arith.constant 0 : i32
    %c0_i32_0 = arith.constant 0 : i32
    %c0_i32_1 = arith.constant 0 : i32
    return %arg0, %arg1, %c0_i32, %c0_i32_0 : i32, i32, i32, i32
  }
}

module attributes {stable_mosaic.version = 11 : i64} {
  func.func @_gn_apply_kernel(%arg0: i32, %arg1: i32, %arg2: memref<1x8x16x128xbf16, #tpu.memory_space<vmem>>, %arg3: memref<1x1x128xf32, #tpu.memory_space<vmem>>, %arg4: memref<1x1x128xf32, #tpu.memory_space<vmem>>, %arg5: memref<1x8x16x128xf32, #tpu.memory_space<vmem>>) attributes {dimension_semantics = [#tpu.dimension_semantics<parallel>, #tpu.dimension_semantics<parallel>], iteration_bounds = array<i64: 2, 2>, scalar_prefetch = 0 : i64, scratch_operands = 0 : i64, tpu.core_type = #tpu.core_type<tc>, window_params = [{transform_indices = @transform_0, window_bounds = array<i64: 1, 8, 16, 128>}, {transform_indices = @transform_1, window_bounds = array<i64: 1, 1, 128>}, {transform_indices = @transform_2, window_bounds = array<i64: 1, 1, 128>}, {transform_indices = @transform_3, window_bounds = array<i64: 1, 8, 16, 128>}]} {
    %c0 = arith.constant 0 : index
    %c0_0 = arith.constant 0 : index
    %c0_1 = arith.constant 0 : index
    %c0_2 = arith.constant 0 : index
    %0 = vector.load %arg2[%c0, %c0_0, %c0_1, %c0_2] : memref<1x8x16x128xbf16, #tpu.memory_space<vmem>>, vector<1x8x16x128xbf16>
    %1 = vector.shape_cast %0 : vector<1x8x16x128xbf16> to vector<8x16x128xbf16>
    %2 = arith.extf %1 : vector<8x16x128xbf16> to vector<8x16x128xf32>
    %c0_3 = arith.constant 0 : index
    %c0_4 = arith.constant 0 : index
    %c0_5 = arith.constant 0 : index
    %3 = vector.load %arg3[%c0_3, %c0_4, %c0_5] : memref<1x1x128xf32, #tpu.memory_space<vmem>>, vector<1x1x128xf32>
    %4 = vector.shape_cast %3 : vector<1x1x128xf32> to vector<1x128xf32>
    %5 = vector.shape_cast %4 : vector<1x128xf32> to vector<1x1x128xf32>
    %6 = vector.broadcast %5 : vector<1x1x128xf32> to vector<8x16x128xf32>
    %7 = arith.mulf %2, %6 : vector<8x16x128xf32>
    %c0_6 = arith.constant 0 : index
    %c0_7 = arith.constant 0 : index
    %c0_8 = arith.constant 0 : index
    %8 = vector.load %arg4[%c0_6, %c0_7, %c0_8] : memref<1x1x128xf32, #tpu.memory_space<vmem>>, vector<1x1x128xf32>
    %9 = vector.shape_cast %8 : vector<1x1x128xf32> to vector<1x128xf32>
    %10 = vector.shape_cast %9 : vector<1x128xf32> to vector<1x1x128xf32>
    %11 = vector.broadcast %10 : vector<1x1x128xf32> to vector<8x16x128xf32>
    %12 = arith.addf %7, %11 : vector<8x16x128xf32>
    %c0_9 = arith.constant 0 : index
    %c0_10 = arith.constant 0 : index
    %c0_11 = arith.constant 0 : index
    %c0_12 = arith.constant 0 : index
    %13 = vector.load %arg5[%c0_9, %c0_10, %c0_11, %c0_12] : memref<1x8x16x128xf32, #tpu.memory_space<vmem>>, vector<1x8x16x128xf32>
    %14 = vector.shape_cast %13 : vector<1x8x16x128xf32> to vector<8x16x128xf32>
    %15 = vector.shape_cast %12 : vector<8x16x128xf32> to vector<1x8x16x128xf32>
    tpu.vector_store %arg5[%c0_9, %c0_10, %c0_11, %c0_12], %15 {strides = array<i32>} : memref<1x8x16x128xf32, #tpu.memory_space<vmem>>, vector<1x8x16x128xf32>,
    return
  }
  func.func @transform_0(%arg0: i32, %arg1: i32) -> (i32, i32, i32, i32) {
    %c0_i32 = arith.constant 0 : i32
    %c0_i32_0 = arith.constant 0 : i32
    %c0_i32_1 = arith.constant 0 : i32
    return %arg0, %arg1, %c0_i32, %c0_i32_0 : i32, i32, i32, i32
  }
  func.func @transform_1(%arg0: i32, %arg1: i32) -> (i32, i32, i32) {
    %c0_i32 = arith.constant 0 : i32
    %c0_i32_0 = arith.constant 0 : i32
    %c0_i32_1 = arith.constant 0 : i32
    return %arg0, %c0_i32, %c0_i32_0 : i32, i32, i32
  }
  func.func @transform_2(%arg0: i32, %arg1: i32) -> (i32, i32, i32) {
    %c0_i32 = arith.constant 0 : i32
    %c0_i32_0 = arith.constant 0 : i32
    %c0_i32_1 = arith.constant 0 : i32
    return %arg0, %c0_i32, %c0_i32_0 : i32, i32, i32
  }
  func.func @transform_3(%arg0: i32, %arg1: i32) -> (i32, i32, i32, i32) {
    %c0_i32 = arith.constant 0 : i32
    %c0_i32_0 = arith.constant 0 : i32
    %c0_i32_1 = arith.constant 0 : i32
    return %arg0, %arg1, %c0_i32, %c0_i32_0 : i32, i32, i32, i32
  }
}

</mosaic_0001>

<bundles_post_ra>
// kernel: tile.8
= control target key start
LH: loop header
LB: loop body
LE: loop exit
PB: predicated region body
PF: predicated region fallthrough
CT: control target
= control target key end

     0   :  { %s22_s0 = inlined_call_operand.vmem [shape: f32[128], index: 0, kind: input, shape index: {}]   ;;  %s23_s1 = inlined_call_operand.vmem [shape: f32[4,128], index: 1, kind: output, shape index: {}]  }
   0x1   :  { %v4_v0 = vld [vmem:[%s22_s0] ss:$0 sm:$0xff] }
   0x2   :  { %5 = vst [vmem:[%s23_s1] sm:$0xf] %v4_v0 }

// kernel: unet_up_block_forward.4
= control target key start
LH: loop header
LB: loop body
LE: loop exit
PB: predicated region body
PF: predicated region fallthrough
CT: control target
= control target key end

     0   :  { %s1045_s12 = smov 0   ;;  %s1047_s13 = smov 0   ;;  %s1257_s0 = inlined_call_operand.vmem [shape: bf16[2,8,8,128], index: 0, kind: input, shape index: {}]   ;;  %s1258_s1 = inlined_call_operand.vmem [shape: bf16[128,512], index: 1, kind: input, shape index: {}]   ;;  %s1259_s2 = inlined_call_operand.vmem [shape: f32[1,512], index: 2, kind: input, shape index: {}]   ;;  %s1260_s3 = inlined_call_operand.vmem [shape: bf16[2,8,8,512], index: 3, kind: output, shape index: {}]  }
   0x1   :  { %s1049_s14 = smov 0  }
   0x2 LB: > { %s25_s15 = sadd.s32 1, %s1018_s13  ;;  %p846_p0 = scmp.ge.s32.totalorder %s1022_s14, 1  ;;  %s1022_s14 = sphi %s1049_s14, %s13_s14   ;;  %s1018_s13 = sphi %s1047_s13, %s1262_s13   ;;  %s1014_s12 = sphi %s1045_s12, %s1261_s12  }
   0x3   : > { %p27_p1 = scmp.ge.s32.totalorder %s25_s15, 2  ;;  %p158_p2 = scmp.lt.s32.totalorder %s1022_s14, 3 }
   0x5   : > { %s1264_s15 = smov (%p27_p1, %s25_s15), 0  ;;  %p159_p3 = pnand %p846_p0, %p158_p2 }
   0x6   : > { %p192_p4 = scmp.lt.s32.totalorder (!%p159_p3), %s1014_s12, 1 }
   0x7   : > { %162 = sbr.rel (%p159_p3) target bundleno = 274 (0x112), region = 32 }
   0xc   : > { %v948_v0 = vld [vmem:[%s1258_s1 + $0xe4] ss:$16 sps:$4 sm:$0xff]   ;;  %v950_v1 = vld [vmem:[%s1258_s1 + $0xec] ss:$16 sps:$4 sm:$0xff]   ;;  %v1024_v2 = vmov 0   ;;  %s1266_s12 = smov (!%p192_p4, %s1014_s12), 1  ;;  %v255_v37 = vlaneseq }
   0xd   : > { %491 = vmatprep.mubr.bf16.mxu0 %v1024_v2  ;;  %564 = vmatprep.mubr.bf16.mxu1 %v1024_v2  ;;  %v952_v3 = vld [vmem:[%s1258_s1 + $0xe0] ss:$16 sps:$4 sm:$0xff]   ;;  %v953_v4 = vld [vmem:[%s1258_s1 + $0xe8] ss:$16 sps:$4 sm:$0xff]   ;;  %v954_v5 = vld [vmem:[%s1258_s1 + $0xc4] ss:$16 sps:$4 sm:$0xff]  }
   0xe   : > { %459 = vmatprep.subr.bf16.mxu0 %v948_v0  ;;  %532 = vmatprep.subr.bf16.mxu1 %v950_v1  ;;  %v956_v6 = vld [vmem:[%s1258_s1 + $0xcc] ss:$16 sps:$4 sm:$0xff]   ;;  %v958_v7 = vld [vmem:[%s1258_s1 + $0xc0] ss:$16 sps:$4 sm:$0xff]   ;;  %v959_v8 = vld [vmem:[%s1258_s1 + $0xc8] ss:$16 sps:$4 sm:$0xff]  }
   0xf   : > { %460 = vmatpush1.bf16.msra.mxu0 %v952_v3  ;;  %533 = vmatpush1.bf16.msra.mxu1 %v953_v4  ;;  %v960_v9 = vld [vmem:[%s1258_s1 + $0xa4] ss:$16 sps:$4 sm:$0xff]   ;;  %v962_v10 = vld [vmem:[%s1258_s1 + $0xac] ss:$16 sps:$4 sm:$0xff]   ;;  %v964_v11 = vld [vmem:[%s1258_s1 + $0xa0] ss:$16 sps:$4 sm:$0xff]  }
  0x10   : > { %461 = vmatprep.subr.bf16.mxu0 %v954_v5  ;;  %534 = vmatprep.subr.bf16.mxu1 %v956_v6  ;;  %v965_v12 = vld [vmem:[%s1258_s1 + $0xa8] ss:$16 sps:$4 sm:$0xff]   ;;  %v966_v13 = vld [vmem:[%s1258_s1 + $0x84] ss:$16 sps:$4 sm:$0xff]   ;;  %v968_v14 = vld [vmem:[%s1258_s1 + $0x8c] ss:$16 sps:$4 sm:$0xff]  }
  0x11   : > { %v970_v15 = vld [vmem:[%s1258_s1 + $0x80] ss:$16 sps:$4 sm:$0xff]   ;;  %v971_v16 = vld [vmem:[%s1258_s1 + $0x88] ss:$16 sps:$4 sm:$0xff]   ;;  %v972_v17 = vld [vmem:[%s1258_s1 + $0x64] ss:$16 sps:$4 sm:$0xff]  }
  0x12   : > { %v974_v18 = vld [vmem:[%s1258_s1 + $0x6c] ss:$16 sps:$4 sm:$0xff]   ;;  %v976_v19 = vld [vmem:[%s1258_s1 + $0x60] ss:$16 sps:$4 sm:$0xff]   ;;  %v977_v20 = vld [vmem:[%s1258_s1 + $0x68] ss:$16 sps:$4 sm:$0xff]  }
  0x13   : > { %462 = vmatpush1.bf16.msra.mxu0 %v958_v7  ;;  %535 = vmatpush1.bf16.msra.mxu1 %v959_v8  ;;  %v978_v21 = vld [vmem:[%s1258_s1 + $0x44] ss:$16 sps:$4 sm:$0xff]   ;;  %v980_v22 = vld [vmem:[%s1258_s1 + $0x4c] ss:$16 sps:$4 sm:$0xff]   ;;  %s905_s10 = sshll.u32 %s1266_s12, 5  ;;  %v256_v38 = vshrl.u32 %v255_v37, 7 }
  0x14   : > { %463 = vmatprep.subr.bf16.mxu0 %v960_v9  ;;  %536 = vmatprep.subr.bf16.mxu1 %v962_v10  ;;  %v982_v23 = vld [vmem:[%s1258_s1 + $0x40] ss:$16 sps:$4 sm:$0xff]   ;;  %v983_v24 = vld [vmem:[%s1258_s1 + $0x48] ss:$16 sps:$4 sm:$0xff]   ;;  %v984_v25 = vld [vmem:[%s1258_s1 + $0x24] ss:$16 sps:$4 sm:$0xff]   ;;  %s1150_s23 = scalar_lea.vmem %s1257_s0, %s905_s10 }
  0x15   : > { %v986_v26 = vld [vmem:[%s1258_s1 + $0x2c] ss:$16 sps:$4 sm:$0xff]   ;;  %v988_v27 = vld [vmem:[%s1258_s1 + $0x20] ss:$16 sps:$4 sm:$0xff]   ;;  %v989_v28 = vld [vmem:[%s1258_s1 + $0x28] ss:$16 sps:$4 sm:$0xff]  }
  0x16   : > { %v990_v29 = vld [vmem:[%s1258_s1 + $0x4] ss:$16 sps:$4 sm:$0xff]   ;;  %v992_v30 = vld [vmem:[%s1258_s1 + $0xc] ss:$16 sps:$4 sm:$0xff]   ;;  %v994_v31 = vld [vmem:[%s1258_s1] ss:$16 sps:$4 sm:$0xff]  }
  0x17   : > { %464 = vmatpush1.bf16.msra.mxu0 %v964_v11  ;;  %537 = vmatpush1.bf16.msra.mxu1 %v965_v12  ;;  %v995_v32 = vld [vmem:[%s1258_s1 + $0x8] ss:$16 sps:$4 sm:$0xff]   ;;  %v996_v33 = vld [vmem:[%s1150_s23] sm:$0xff]   ;;  %v998_v35 = vld [vmem:[%s1150_s23 + $0x10] sm:$0xff]   ;;  %v257_v39 = vsub.s32 0, %v256_v38  ;;  %v265_v40 = vsub.s32 2, %v256_v38 }
  0x18   : > { %465 = vmatprep.subr.bf16.mxu0 %v966_v13  ;;  %538 = vmatprep.subr.bf16.mxu1 %v968_v14  ;;  %v997_v34 = vld [vmem:[%s1150_s23 + $0x8] sm:$0xff]   ;;  %v999_v36 = vld [vmem:[%s1150_s23 + $0x18] sm:$0xff]   ;;  %v261_v41 = vsub.s32 1, %v256_v38  ;;  %v269_v42 = vsub.s32 3, %v256_v38  ;;  %v253_v43 = vld [vmem:[%s1259_s2] sm:$0xf] }
  0x19   : > { %v1186_v44 = vrot.slane %v253_v43, %v257_v39  ;;  %v1188_v45 = vrot.slane %v253_v43, %v265_v40  ;;  %s906_s17 = sshll.u32 %s1266_s12, 7 }
  0x1a   : > { %v1190_v46 = vrot.slane %v253_v43, %v261_v41  ;;  %v1192_v47 = vrot.slane %v253_v43, %v269_v42  ;;  %s1202_s20 = scalar_lea.vmem %s1260_s3, %s906_s17 }
  0x1b   : > { %466 = vmatpush1.bf16.msra.mxu0 %v970_v15  ;;  %539 = vmatpush1.bf16.msra.mxu1 %v971_v16 }
  0x1c   : > { %467 = vmatprep.subr.bf16.mxu0 %v972_v17  ;;  %540 = vmatprep.subr.bf16.mxu1 %v974_v18 }
  0x1f   : > { %468 = vmatpush1.bf16.msra.mxu0 %v976_v19  ;;  %541 = vmatpush1.bf16.msra.mxu1 %v977_v20 }
  0x20   : > { %469 = vmatprep.subr.bf16.mxu0 %v978_v21  ;;  %542 = vmatprep.subr.bf16.mxu1 %v980_v22 }
  0x23   : > { %470 = vmatpush1.bf16.msra.mxu0 %v982_v23  ;;  %543 = vmatpush1.bf16.msra.mxu1 %v983_v24 }
  0x24   : > { %471 = vmatprep.subr.bf16.mxu0 %v984_v25  ;;  %544 = vmatprep.subr.bf16.mxu1 %v986_v26 }
  0x27   : > { %472 = vmatpush1.bf16.msra.mxu0 %v988_v27  ;;  %545 = vmatpush1.bf16.msra.mxu1 %v989_v28 }
  0x28   : > { %473 = vmatprep.subr.bf16.mxu0 %v990_v29  ;;  %546 = vmatprep.subr.bf16.mxu1 %v992_v30 }
  0x2b   : > { %474 = vmatpush1.bf16.msra.mxu0 %v994_v31  ;;  %547 = vmatpush1.bf16.msra.mxu1 %v995_v32 }
  0x2e   : > { %492 = vmatmul.mubr.bf16.vlgmr.msra.gmra.mxu0 %v996_v33  ;;  %565 = vmatmul.mubr.bf16.vlgmr.msra.gmra.mxu1 %v996_v33 }
  0x2f   : > { %501 = vmatprep.mubr.bf16.mxu0 %v1024_v2  ;;  %574 = vmatprep.mubr.bf16.mxu1 %v1024_v2 }
  0x36   : > { %502 = vmatmul.mubr.bf16.gmra.mxu0 %v997_v34  ;;  %575 = vmatmul.mubr.bf16.gmra.mxu1 %v997_v34 }
  0x37   : > { %511 = vmatprep.mubr.bf16.mxu0 %v1024_v2  ;;  %584 = vmatprep.mubr.bf16.mxu1 %v1024_v2 }
  0x3e   : > { %512 = vmatmul.mubr.bf16.gmra.mxu0 %v998_v35  ;;  %585 = vmatmul.mubr.bf16.gmra.mxu1 %v998_v35 }
  0x3f   : > { %521 = vmatprep.mubr.bf16.mxu0 %v1024_v2  ;;  %594 = vmatprep.mubr.bf16.mxu1 %v1024_v2 }
  0x46   : > { %522 = vmatmul.mubr.bf16.gmra.mxu0 %v999_v36  ;;  %595 = vmatmul.mubr.bf16.gmra.mxu1 %v999_v36 }
  0xee   : > { %v493_v48 = vpop.f32.mrf.mxu0  ;;  %v566_v49 = vpop.f32.mrf.mxu1 }
  0xef   : > { %v494_v52 = vadd.f32 %v493_v48, %v1186_v44  ;;  %v567_v53 = vadd.f32 %v566_v49, %v1188_v45 }
  0xf0   : > { %v495_v50 = vpop.f32.mrf.mxu0  ;;  %v568_v51 = vpop.f32.mrf.mxu1 }
  0xf1   : > { %v496_v54 = vadd.f32 %v495_v50, %v1190_v46  ;;  %v569_v55 = vadd.f32 %v568_v51, %v1192_v47 }
  0xf2   : > { %v497_v56 = vpop.f32.mrf.mxu0  ;;  %v570_v57 = vpop.f32.mrf.mxu1 }
  0xf3   : > { %v907_v58 = vpack.c.bf16 %v496_v54, %v494_v52  ;;  %v908_v59 = vpack.c.bf16 %v569_v55, %v567_v53  ;;  %v498_v62 = vadd.f32 %v497_v56, %v1186_v44  ;;  %v571_v63 = vadd.f32 %v570_v57, %v1188_v45 }
  0xf4   : > { %v499_v60 = vpop.f32.mrf.mxu0  ;;  %v572_v61 = vpop.f32.mrf.mxu1 }
  0xf5   : > { %733 = vst [vmem:[%s1202_s20] sm:$0xff] %v907_v58  ;;  %734 = vst [vmem:[%s1202_s20 + $0x8] sm:$0xff] %v908_v59  ;;  %v500_v0 = vadd.f32 %v499_v60, %v1190_v46  ;;  %v573_v1 = vadd.f32 %v572_v61, %v1192_v47 }
  0xf6   : > { %v503_v2 = vpop.f32.mrf.mxu0  ;;  %v576_v3 = vpop.f32.mrf.mxu1 }
  0xf7   : > { %v909_v4 = vpack.c.bf16 %v500_v0, %v498_v62  ;;  %v910_v5 = vpack.c.bf16 %v573_v1, %v571_v63  ;;  %v504_v8 = vadd.f32 %v503_v2, %v1186_v44  ;;  %v577_v9 = vadd.f32 %v576_v3, %v1188_v45 }
  0xf8   : > { %v505_v6 = vpop.f32.mrf.mxu0  ;;  %v578_v7 = vpop.f32.mrf.mxu1 }
  0xf9   : > { %735 = vst [vmem:[%s1202_s20 + $0x10] sm:$0xff] %v909_v4  ;;  %736 = vst [vmem:[%s1202_s20 + $0x18] sm:$0xff] %v910_v5  ;;  %v506_v10 = vadd.f32 %v505_v6, %v1190_v46  ;;  %v579_v11 = vadd.f32 %v578_v7, %v1192_v47 }
  0xfa   : > { %v507_v12 = vpop.f32.mrf.mxu0  ;;  %v580_v13 = vpop.f32.mrf.mxu1 }
  0xfb   : > { %v911_v14 = vpack.c.bf16 %v506_v10, %v504_v8  ;;  %v912_v15 = vpack.c.bf16 %v579_v11, %v577_v9  ;;  %v508_v18 = vadd.f32 %v507_v12, %v1186_v44  ;;  %v581_v19 = vadd.f32 %v580_v13, %v1188_v45 }
  0xfc   : > { %v509_v16 = vpop.f32.mrf.mxu0  ;;  %v582_v17 = vpop.f32.mrf.mxu1 }
  0xfd   : > { %737 = vst [vmem:[%s1202_s20 + $0x20] sm:$0xff] %v911_v14  ;;  %738 = vst [vmem:[%s1202_s20 + $0x28] sm:$0xff] %v912_v15  ;;  %v510_v20 = vadd.f32 %v509_v16, %v1190_v46  ;;  %v583_v21 = vadd.f32 %v582_v17, %v1192_v47 }
  0xfe   : > { %v513_v22 = vpop.f32.mrf.mxu0  ;;  %v586_v23 = vpop.f32.mrf.mxu1 }
  0xff   : > { %v913_v24 = vpack.c.bf16 %v510_v20, %v508_v18  ;;  %v914_v25 = vpack.c.bf16 %v583_v21, %v581_v19  ;;  %v514_v28 = vadd.f32 %v513_v22, %v1186_v44  ;;  %v587_v29 = vadd.f32 %v586_v23, %v1188_v45 }
 0x100   : > { %v515_v26 = vpop.f32.mrf.mxu0  ;;  %v588_v27 = vpop.f32.mrf.mxu1 }
 0x101   : > { %739 = vst [vmem:[%s1202_s20 + $0x30] sm:$0xff] %v913_v24  ;;  %740 = vst [vmem:[%s1202_s20 + $0x38] sm:$0xff] %v914_v25  ;;  %v516_v30 = vadd.f32 %v515_v26, %v1190_v46  ;;  %v589_v31 = vadd.f32 %v588_v27, %v1192_v47 }
 0x102   : > { %v517_v32 = vpop.f32.mrf.mxu0  ;;  %v590_v33 = vpop.f32.mrf.mxu1 }
 0x103   : > { %v915_v34 = vpack.c.bf16 %v516_v30, %v514_v28  ;;  %v916_v35 = vpack.c.bf16 %v589_v31, %v587_v29  ;;  %v518_v38 = vadd.f32 %v517_v32, %v1186_v44  ;;  %v591_v39 = vadd.f32 %v590_v33, %v1188_v45 }
 0x104   : > { %v519_v36 = vpop.f32.mrf.mxu0  ;;  %v592_v37 = vpop.f32.mrf.mxu1 }
 0x105   : > { %741 = vst [vmem:[%s1202_s20 + $0x40] sm:$0xff] %v915_v34  ;;  %742 = vst [vmem:[%s1202_s20 + $0x48] sm:$0xff] %v916_v35  ;;  %v520_v40 = vadd.f32 %v519_v36, %v1190_v46  ;;  %v593_v41 = vadd.f32 %v592_v37, %v1192_v47 }
 0x106   : > { %v523_v42 = vpop.f32.mrf.mxu0  ;;  %v596_v43 = vpop.f32.mrf.mxu1 }
 0x107   : > { %v917_v48 = vpack.c.bf16 %v520_v40, %v518_v38  ;;  %v918_v49 = vpack.c.bf16 %v593_v41, %v591_v39  ;;  %v524_v52 = vadd.f32 %v523_v42, %v1186_v44  ;;  %v597_v53 = vadd.f32 %v596_v43, %v1188_v45 }
 0x108   : > { %v525_v50 = vpop.f32.mrf.mxu0  ;;  %v598_v51 = vpop.f32.mrf.mxu1 }
 0x109   : > { %743 = vst [vmem:[%s1202_s20 + $0x50] sm:$0xff] %v917_v48  ;;  %744 = vst [vmem:[%s1202_s20 + $0x58] sm:$0xff] %v918_v49  ;;  %v526_v54 = vadd.f32 %v525_v50, %v1190_v46  ;;  %v599_v55 = vadd.f32 %v598_v51, %v1192_v47 }
 0x10a   : > { %v527_v56 = vpop.f32.mrf.mxu0  ;;  %v600_v57 = vpop.f32.mrf.mxu1 }
 0x10b   : > { %v919_v58 = vpack.c.bf16 %v526_v54, %v524_v52  ;;  %v920_v59 = vpack.c.bf16 %v599_v55, %v597_v53  ;;  %v528_v62 = vadd.f32 %v527_v56, %v1186_v44  ;;  %v601_v63 = vadd.f32 %v600_v57, %v1188_v45 }
 0x10c   : > { %v529_v60 = vpop.f32.mrf.mxu0  ;;  %v602_v61 = vpop.f32.mrf.mxu1 }
 0x10d   : > { %745 = vst [vmem:[%s1202_s20 + $0x60] sm:$0xff] %v919_v58  ;;  %746 = vst [vmem:[%s1202_s20 + $0x68] sm:$0xff] %v920_v59  ;;  %v530_v0 = vadd.f32 %v529_v60, %v1190_v46  ;;  %v603_v1 = vadd.f32 %v602_v61, %v1192_v47 }
 0x10f   : > { %v921_v2 = vpack.c.bf16 %v530_v0, %v528_v62  ;;  %v922_v3 = vpack.c.bf16 %v603_v1, %v601_v63 }
 0x111   : > { %747 = vst [vmem:[%s1202_s20 + $0x70] sm:$0xff] %v921_v2  ;;  %748 = vst [vmem:[%s1202_s20 + $0x78] sm:$0xff] %v922_v3 }
 0x112 PF: > { %s13_s14 = sadd.s32 1, %s1022_s14   ;;  %s1261_s12 = smov %s1018_s13 }
 0x113   : > { %p10_p5 = scmp.ge.s32.totalorder %s13_s14, 4   ;;  %s1262_s13 = smov %s1264_s15 }
 0x115   :  { %12 = sbr.rel (!%p10_p5) target bundleno = 2 (0x2), region = 62 }

// kernel: unet_up_block_forward.5
= control target key start
LH: loop header
LB: loop body
LE: loop exit
PB: predicated region body
PF: predicated region fallthrough
CT: control target
= control target key end

     0   :  { %s5292_s21 = smov 0   ;;  %s5294_s22 = smov 0   ;;  %s6836_s0 = inlined_call_operand.vmem [shape: bf16[4,10,18,128], index: 0, kind: input, shape index: {}]   ;;  %s6837_s1 = inlined_call_operand.vmem [shape: bf16[4,10,18,128], index: 1, kind: input, shape index: {}]   ;;  %s6838_s2 = inlined_call_operand.vmem [shape: bf16[3,768,128], index: 2, kind: input, shape index: {}]   ;;  %s6839_s3 = inlined_call_operand.vmem [shape: f32[1,128], index: 3, kind: input, shape index: {}]   ;;  %s6840_s4 = inlined_call_operand.vmem [shape: bf16[2,16,16,128], index: 4, kind: output, shape index: {0}]   ;;  %s6841_s5 = inlined_call_operand.vmem [shape: f32[2,2,1,128], index: 5, kind: output, shape index: {1}]   ;;  %s6842_s6 = inlined_call_operand.vmem [shape: f32[2,2,1,128], index: 6, kind: output, shape index: {2}]  }
   0x1   :  { %s5296_s23 = smov 0   ;;  %s5298_s24 = smov 0  }
   0x2   :  { %s5300_s25 = smov 0  }
   0x3 LB: > { %s26_s26 = sadd.s32 1, %s5247_s23  ;;  %s29_s27 = sadd.s32 1, %s5251_s24  ;;  %s5255_s25 = sphi %s5300_s25, %s17_s25   ;;  %s5251_s24 = sphi %s5298_s24, %s6894_s24   ;;  %s5247_s23 = sphi %s5296_s23, %s6893_s23   ;;  %s5243_s22 = sphi %s5294_s22, %s6892_s22   ;;  %s5239_s21 = sphi %s5292_s21, %s6891_s21  }
   0x4   : > { %p27_p0 = scmp.ge.s32.totalorder %s26_s26, 2  ;;  %p3843_p1 = scmp.ge.s32.totalorder %s5255_s25, 1 }
   0x5   : > { %p261_p2 = scmp.lt.s32.totalorder %s5255_s25, 5 }
   0x6   : > { %s6896_s26 = smov (%p27_p0, %s26_s26), 0  ;;  %s6898_s27 = smov (!%p27_p0, %s29_s27), %s5251_s24 }
   0x7   : > { %p262_p3 = pnand %p3843_p1, %p261_p2  ;;  %p31_p4 = scmp.ge.s32.totalorder %s6898_s27, 2 }
   0x9   : > { %s6900_s27 = smov (%p31_p4, %s6898_s27), 0  ;;  %265 = sbr.rel (%p262_p3) target bundleno = 600 (0x258), region = 36 }
   0xe   : > { %v4985_v0 = vld [vmem:[%s6838_s2 + $0x1f8] sm:$0xff]   ;;  %s3844_s30 = sshll.u32 %s5243_s22, 1  ;;  %v4987_v2 = vld [vmem:[%s6838_s2 + $0x1f0] sm:$0xff]   ;;  %v4989_v4 = vld [vmem:[%s6838_s2 + $0x1e8] sm:$0xff]   ;;  %vm423_vm0 = vsmask.f32 3328 }
   0xf   : > { %v4986_v1 = vld [vmem:[%s6838_s2 + $0x1b8] sm:$0xff]   ;;  %s320_s9 = sadd.s32 %s5239_s21, %s3844_s30  ;;  %4352 = vmatprep.subr.bf16.mxu0 %v4985_v0  ;;  %4928 = vmatprep.subr.bf16.mxu1 %v4985_v0  ;;  %v4988_v3 = vld [vmem:[%s6838_s2 + $0x1b0] sm:$0xff]   ;;  %v4990_v5 = vld [vmem:[%s6838_s2 + $0x1a8] sm:$0xff]   ;;  %vm424_vm1 = vsmask.f32 7440  ;;  %vm642_vm2 = vcmask 1042432  }
  0x10   : > { %p321_p5 = scmp.lt.s32.totalorder %s320_s9, 3  ;;  %4353 = vmatpush3.bf16.msra.mxu0 %v4986_v1  ;;  %4936 = vmatpush3.bf16.msra.mxu1 %v4986_v1  ;;  %v4991_v6 = vld [vmem:[%s6838_s2 + $0x1e0] sm:$0xff]   ;;  %v4993_v8 = vld [vmem:[%s6838_s2 + $0x1d8] sm:$0xff]   ;;  %v4995_v10 = vld [vmem:[%s6838_s2 + $0x1d0] sm:$0xff]   ;;  %vm643_vm3 = vcmask 1046532   ;;  %s3848_s17 = sshll.u32 %s5239_s21, 3 }
  0x11   : > { %4354 = vmatprep.subr.bf16.mxu0 %v4987_v2  ;;  %4929 = vmatprep.subr.bf16.mxu1 %v4987_v2  ;;  %v4992_v7 = vld [vmem:[%s6838_s2 + $0x1a0] sm:$0xff]   ;;  %v4994_v9 = vld [vmem:[%s6838_s2 + $0x198] sm:$0xff]   ;;  %v4996_v16 = vld [vmem:[%s6838_s2 + $0x190] sm:$0xff]   ;;  %p338_p6 = scmp.lt.s32.totalorder %s5243_s22, 1  ;;  %p6704_p7 = scmp.lt.s32.totalorder %s3848_s17, 15 }
  0x12   : > { %s6902_s9 = smov (!%p321_p5, %s320_s9), 3  ;;  %v4997_v21 = vld [vmem:[%s6838_s2 + $0x1c8] sm:$0xff]   ;;  %vm5404_vm4 = vmor %vm423_vm0, %vm424_vm1  ;;  %v4999_v43 = vld [vmem:[%s6838_s2 + $0x1c0] sm:$0xff]   ;;  %p350_p8 = scmp.lt.s32.totalorder %s5239_s21, 1 }
  0x13   : > { %s4944_s20 = smul.u32 120, %s6902_s9  ;;  %v4998_v39 = vld [vmem:[%s6838_s2 + $0x188] sm:$0xff]   ;;  %v5000_v46 = vld [vmem:[%s6838_s2 + $0x180] sm:$0xff]   ;;  %v5003_v55 = vld [vmem:[%s6838_s2 + $0x278] sm:$0xff]   ;;  %s6904_s22 = smov (!%p338_p6, %s5243_s22), 1 }
  0x14   : > { %4355 = vmatpush3.bf16.msra.mxu0 %v4988_v3  ;;  %4937 = vmatpush3.bf16.msra.mxu1 %v4988_v3  ;;  %v5004_v58 = vld [vmem:[%s6838_s2 + $0x2f8] sm:$0xff]   ;;  %v5007_v2 = vld [vmem:[%s6838_s2 + $0x270] sm:$0xff]   ;;  %vm5472_vm5 = vmor %vm642_vm2, %vm643_vm3  ;;  %s6906_s17 = smov (!%p6704_p7, %s3848_s17), 15  ;;  %s3850_s28 = sshll.u32 %s6904_s22, 5 }
  0x15   : > { %4356 = vmatprep.subr.bf16.mxu0 %v4989_v4  ;;  %4930 = vmatprep.subr.bf16.mxu1 %v4989_v4  ;;  %s5363_s11 = scalar_lea.vmem %s6836_s0, %s4944_s20  ;;  %v5005_v60 = vld [vmem:[%s6838_s2 + $0x238] sm:$0xff]   ;;  %s5688_s16 = scalar_lea.vmem %s6837_s1, %s4944_s20 }
  0x16   : > { %v5372_v11 = vld [vmem:[%s5363_s11 + $0xc] sm:$0xf]  ;;  %v5375_v12 = vld [vmem:[%s5363_s11 + $0x10] sm:$0xf]  ;;  %v5378_v13 = vld [vmem:[%s5363_s11 + $0x14] sm:$0x1] }
  0x17   : > { %v451_v14 = vshrl.u32 %v5372_v11, 16  ;;  %v454_v15 = vshll.u32 %v5372_v11, 16  ;;  %v460_v17 = vshll.u32 %v5375_v12, 16  ;;  %v464_v18 = vshrl.u32 %v5375_v12, 16  ;;  %v5389_v20 = vld [vmem:[%s5363_s11 + $0x3c] sm:$0xf] }
  0x18   : > { %4357 = vmatpush3.bf16.msra.mxu0 %v4990_v5  ;;  %4938 = vmatpush3.bf16.msra.mxu1 %v4990_v5  ;;  %v470_v19 = vshll.u32 %v5378_v13, 16  ;;  %v5395_v24 = vld [vmem:[%s5363_s11 + $0x40] sm:$0xf]  ;;  %v547_v25 = vshrl.u32 %v5389_v20, 16  ;;  %v380_v29 = vld [vmem:[%s5363_s11 + $0x44] sm:$0x1]  ;;  %v5447_v0 = vcombine.low %v5372_v11, %v5375_v12 }
  0x19   : > { %4358 = vmatprep.subr.bf16.mxu0 %v4991_v6  ;;  %4931 = vmatprep.subr.bf16.mxu1 %v4991_v6  ;;  %v453_v22 = vrot.slane %v451_v14, 4  ;;  %v456_v23 = vrot.slane %v454_v15, 5  ;;  %v462_v26 = vrot.slane %v460_v17, 5  ;;  %v466_v27 = vrot.slane %v464_v18, 4  ;;  %v5006_v61 = vld [vmem:[%s6838_s2 + $0x2b8] sm:$0xff]   ;;  %v5008_v15 = vld [vmem:[%s6838_s2 + $0x2f0] sm:$0xff]  }
  0x1a   : > { %v472_v28 = vrot.slane %v470_v19, 5  ;;  %v550_v30 = vshll.u32 %v5389_v20, 16  ;;  %v549_v32 = vrot.slane %v547_v25, 4  ;;  %v556_v33 = vshll.u32 %v5395_v24, 16  ;;  %v5457_v3 = vld [vmem:[%s5363_s11 + $0x18] sm:$0xf] }
  0x1b   : > { %v457_v31 = vor.u32 %v456_v23, %v453_v22  ;;  %v560_v34 = vshrl.u32 %v5395_v24, 16  ;;  %v467_v36 = vor.u32 %v466_v27, %v462_v26  ;;  %v566_v38 = vshll.u32 %v380_v29, 16  ;;  %v5460_v4 = vld [vmem:[%s5363_s11 + $0x1c] sm:$0xf]  ;;  %v5464_v6 = vld [vmem:[%s5363_s11 + $0x20] sm:$0x1] }
  0x1c   : > { %4359 = vmatpush3.bf16.msra.mxu0 %v4992_v7  ;;  %4939 = vmatpush3.bf16.msra.mxu1 %v4992_v7  ;;  %v552_v37 = vrot.slane %v550_v30, 5  ;;  %v558_v41 = vrot.slane %v556_v33, 5  ;;  %v654_v51 = vrot.slane %v5375_v12, 5  ;;  %v657_v56 = vrot.slane %v5378_v13, 5  ;;  %v381_v17 = vld [vmem:[%s5363_s11 + $0x48] sm:$0xf] }
  0x1d   : > { %4360 = vmatprep.subr.bf16.mxu0 %v4993_v8  ;;  %4932 = vmatprep.subr.bf16.mxu1 %v4993_v8  ;;  %v458_v40 = vrot.slane %v457_v31, 4  ;;  %v562_v42 = vrot.slane %v560_v34, 4  ;;  %v468_v44 = vrot.slane %v467_v36, 4  ;;  %v568_v49 = vrot.slane %v566_v38, 5  ;;  %v382_v18 = vld [vmem:[%s5363_s11 + $0x4c] sm:$0xf] }
  0x1e   : > { %v553_v45 = vor.u32 %v552_v37, %v549_v32  ;;  %v3859_v62 = vrot.slane %v5389_v20, 9  ;;  %v5451_v1 = vcombine.low %v5389_v20, %v5395_v24  ;;  %v6843_v5 = vrot.slane %v5395_v24, 5  ;;  %v5009_v20 = vld [vmem:[%s6838_s2 + $0x230] sm:$0xff]   ;;  %v5013_v32 = vld [vmem:[%s6838_s2 + $0x268] sm:$0xff]   ;;  %s3849_s19 = sshll.u32 %s6906_s17, 1  ;;  %s6908_s21 = smov (!%p350_p8, %s5239_s21), 1 }
  0x1f   : > { %v463_v47 = vsel %vm5404_vm4, %v458_v40, %v462_v26  ;;  %v563_v48 = vor.u32 %v562_v42, %v558_v41  ;;  %v473_v50 = vsel %vm5404_vm4, %v468_v44, %v472_v28  ;;  %v475_v7 = vshrl.u32 %v5457_v3, 16  ;;  %v383_v27 = vld [vmem:[%s5363_s11 + $0x50] sm:$0x1]  ;;  %v396_v12 = vld [vmem:[%s5688_s16 + $0xc] sm:$0xf]  ;;  %s6740_s9 = sadd.s32 %s3850_s28, %s3849_s19  ;;  %s3852_s7 = sshll.u32 %s6904_s22, 1 }
  0x20   : > { %4361 = vmatpush3.bf16.msra.mxu0 %v4994_v9  ;;  %4940 = vmatpush3.bf16.msra.mxu1 %v4994_v9  ;;  %v554_v52 = vrot.slane %v553_v45, 4  ;;  %v5422_v53 = vcombine.low %v463_v47, %v473_v50  ;;  %v478_v8 = vshll.u32 %v5457_v3, 16  ;;  %v484_v9 = vshll.u32 %v5460_v4, 16  ;;  %s3851_s20 = sshll.u32 %s6740_s9, 2  ;;  %s353_s8 = sadd.s32 %s3852_s7, %s6908_s21 }
  0x21   : > { %4362 = vmatprep.subr.bf16.mxu0 %v4995_v10  ;;  %4933 = vmatprep.subr.bf16.mxu1 %v4995_v10  ;;  %v564_v54 = vrot.slane %v563_v48, 4  ;;  %v488_v10 = vshrl.u32 %v5460_v4, 16  ;;  %v5487_v19 = vsel %vm5472_vm5, %v3859_v62, %v6843_v5  ;;  %v477_v22 = vrot.slane %v475_v7, 4  ;;  %v5015_v48 = vld [vmem:[%s6838_s2 + $0x228] sm:$0xff]   ;;  %v5018_v62 = vld [vmem:[%s6838_s2 + $0x2e0] sm:$0xff]   ;;  %s6755_s30 = scalar_lea.vmem %s6840_s4, %s3851_s20  ;;  %s354_s13 = scalar_lea.vmem %s6841_s5, %s353_s8 }
  0x22   : > { %v559_v57 = vsel %vm5404_vm4, %v554_v52, %v558_v41  ;;  %1770 = vmatprep.mubr.bf16.mxu0 %v5422_v53  ;;  %v480_v23 = vrot.slane %v478_v8, 5  ;;  %v486_v25 = vrot.slane %v484_v9, 5  ;;  %v571_v29 = vshrl.u32 %v381_v17, 16  ;;  %v5014_v41 = vld [vmem:[%s6838_s2 + $0x2e8] sm:$0xff]   ;;  %v5019_v7 = vld [vmem:[%s6838_s2 + $0x220] sm:$0xff]   ;;  %s361_s15 = scalar_lea.vmem %s6842_s6, %s353_s8 }
  0x23   : > { %v569_v59 = vsel %vm5404_vm4, %v564_v54, %v568_v49  ;;  %v490_v26 = vrot.slane %v488_v10, 4  ;;  %v574_v30 = vshll.u32 %v381_v17, 16  ;;  %v580_v31 = vshll.u32 %v382_v18, 16 }
  0x24   : > { %4363 = vmatpush3.bf16.msra.mxu0 %v4996_v16  ;;  %4941 = vmatpush3.bf16.msra.mxu1 %v4996_v16  ;;  %v5443_v63 = vcombine.low %v559_v57, %v569_v59  ;;  %v494_v16 = vshll.u32 %v5464_v6, 16  ;;  %v481_v33 = vor.u32 %v480_v23, %v477_v22  ;;  %v584_v36 = vshrl.u32 %v382_v18, 16  ;;  %v5016_v57 = vld [vmem:[%s6838_s2 + $0x2a8] sm:$0xff]  }
  0x25   : > { %4364 = vmatprep.subr.bf16.mxu0 %v4997_v21  ;;  %4934 = vmatprep.subr.bf16.mxu1 %v4997_v21  ;;  %v5010_v21 = vld [vmem:[%s6838_s2 + $0x2b0] sm:$0xff]   ;;  %v491_v34 = vor.u32 %v490_v26, %v486_v25  ;;  %v590_v37 = vshll.u32 %v383_v27, 16  ;;  %v573_v38 = vrot.slane %v571_v29, 4  ;;  %v582_v40 = vrot.slane %v580_v31, 5  ;;  %v5553_v22 = vld [vmem:[%s5363_s11 + $0x28] sm:$0xf] }
  0x26   : > { %1802 = vmatprep.mubr.bf16.mxu1 %v5443_v63  ;;  %v496_v28 = vrot.slane %v494_v16, 5  ;;  %v482_v42 = vrot.slane %v481_v33, 4  ;;  %v586_v44 = vrot.slane %v584_v36, 4  ;;  %v3855_v45 = vrot.slane %v5372_v11, 9  ;;  %v5547_v16 = vld [vmem:[%s5363_s11 + $0x24] sm:$0xf] }
  0x27   : > { %v5507_v47 = vcombine.low %v5457_v3, %v5460_v4  ;;  %v5514_v49 = vrot.slane %v654_v51, 4  ;;  %v3856_v8 = vrot.slane %v5457_v3, 9  ;;  %v5541_v10 = vcombine.low %v381_v17, %v382_v18  ;;  %v5556_v17 = vld [vmem:[%s5363_s11 + $0x2c] sm:$0x1]  ;;  %v5023_v29 = vld [vmem:[%s6838_s2 + $0x258] sm:$0xff]   ;;  %v5040_v11 = vld [vmem:[%s6838_s2 + $0x280] sm:$0xff]  }
  0x28   : > { %4365 = vmatpush3.bf16.msra.mxu0 %v4998_v39  ;;  %4942 = vmatpush3.bf16.msra.mxu1 %v4998_v39  ;;  %v576_v39 = vrot.slane %v574_v30, 5  ;;  %v487_v50 = vsel %vm5404_vm4, %v482_v42, %v486_v25  ;;  %v587_v54 = vor.u32 %v586_v44, %v582_v40  ;;  %v499_v18 = vshrl.u32 %v5547_v16, 16  ;;  %v5574_v33 = vld [vmem:[%s5363_s11 + $0x5c] sm:$0x1] }
  0x29   : > { %4366 = vmatprep.subr.bf16.mxu0 %v4999_v43  ;;  %4935 = vmatprep.subr.bf16.mxu1 %v4999_v43  ;;  %v492_v43 = vrot.slane %v491_v34, 4  ;;  %v502_v23 = vshll.u32 %v5547_v16, 16  ;;  %v508_v25 = vshll.u32 %v5553_v22, 16  ;;  %v512_v26 = vshrl.u32 %v5553_v22, 16 }
  0x2a   : > { %v518_v27 = vshll.u32 %v5556_v17, 16  ;;  %v501_v30 = vrot.slane %v499_v18, 4  ;;  %v5027_v18 = vld [vmem:[%s6838_s2 + $0x250] sm:$0xff]  }
  0x2b   : > { %v497_v52 = vsel %vm5404_vm4, %v492_v43, %v496_v28  ;;  %v5564_v28 = vld [vmem:[%s5363_s11 + $0x54] sm:$0xf]  ;;  %v504_v31 = vrot.slane %v502_v23, 5  ;;  %v510_v34 = vrot.slane %v508_v25, 5  ;;  %v514_v36 = vrot.slane %v512_v26, 4  ;;  %v5024_v43 = vld [vmem:[%s6838_s2 + $0x2d8] sm:$0xff]  }
  0x2c   : > { %4367 = vmatpush3.bf16.msra.mxu0 %v5000_v46  ;;  %4943 = vmatpush3.bf16.msra.mxu1 %v5000_v46  ;;  %v577_v46 = vor.u32 %v576_v39, %v573_v38  ;;  %v595_v38 = vshrl.u32 %v5564_v28, 16 }
  0x2d   : > { %4416 = vmatprep.subr.bf16.mxu1 %v5003_v55  ;;  %4480 = vmatprep.subr.bf16.mxu0 %v5004_v58  ;;  %v592_v55 = vrot.slane %v590_v37, 5  ;;  %v5523_v58 = vcombine.low %v487_v50, %v497_v52  ;;  %v520_v37 = vrot.slane %v518_v27, 5  ;;  %v505_v39 = vor.u32 %v504_v31, %v501_v30  ;;  %v5029_v30 = vld [vmem:[%s6838_s2 + $0x210] sm:$0xff]  }
  0x2e   : > { %v578_v59 = vrot.slane %v577_v46, 4  ;;  %v515_v44 = vor.u32 %v514_v36, %v510_v34  ;;  %v597_v46 = vrot.slane %v595_v38, 4  ;;  %v5627_v38 = vld [vmem:[%s5363_s11 + $0x30] sm:$0xf] }
  0x2f   : > { %1771 = vmatmul.mubr.bf16.vlgmr.msra.gmra.mxu0 %v5447_v0  ;;  %1803 = vmatmul.mubr.bf16.vlgmr.msra.gmra.mxu1 %v5451_v1  ;;  %v506_v50 = vrot.slane %v505_v39, 4  ;;  %v664_v39 = vrot.slane %v5464_v6, 5  ;;  %v3858_v3 = vrot.slane %v5627_v38, 9 }
  0x30   : > { %4417 = vmatpush3.bf16.msra.mxu1 %v5005_v60  ;;  %4481 = vmatpush3.bf16.msra.mxu0 %v5006_v61  ;;  %v5017_v60 = vld [vmem:[%s6838_s2 + $0x260] sm:$0xff]   ;;  %v588_v61 = vrot.slane %v587_v54, 4 }
  0x31   : > { %4418 = vmatprep.subr.bf16.mxu1 %v5007_v2  ;;  %4482 = vmatprep.subr.bf16.mxu0 %v5008_v15  ;;  %v583_v2 = vsel %vm5404_vm4, %v578_v59, %v582_v40  ;;  %v5020_v15 = vld [vmem:[%s6838_s2 + $0x2a0] sm:$0xff]   ;;  %v598_v40 = vshll.u32 %v5564_v28, 16 }
  0x32   : > { %1778 = vmatprep.mubr.bf16.mxu0 %v5523_v58  ;;  %v593_v9 = vsel %vm5404_vm4, %v588_v61, %v592_v55  ;;  %v5026_v61 = vld [vmem:[%s6838_s2 + $0x298] sm:$0xff]  }
  0x33   : > { %v600_v52 = vrot.slane %v598_v40, 5 }
  0x34   : > { %4419 = vmatpush3.bf16.msra.mxu1 %v5009_v20  ;;  %4483 = vmatpush3.bf16.msra.mxu0 %v5010_v21  ;;  %v661_v20 = vrot.slane %v5460_v4, 5  ;;  %v5550_v21 = vcombine.low %v583_v2, %v593_v9 }
  0x35   : > { %4420 = vmatprep.subr.bf16.mxu1 %v5013_v32  ;;  %4484 = vmatprep.subr.bf16.mxu0 %v5014_v41  ;;  %v5571_v32 = vld [vmem:[%s5363_s11 + $0x58] sm:$0xf]  ;;  %v601_v2 = vor.u32 %v600_v52, %v597_v46  ;;  %v5645_v52 = vld [vmem:[%s5363_s11 + $0x60] sm:$0xf] }
  0x36   : > { %1810 = vmatprep.mubr.bf16.mxu1 %v5550_v21  ;;  %v604_v41 = vshll.u32 %v5571_v32, 16  ;;  %v608_v42 = vshrl.u32 %v5571_v32, 16  ;;  %v5604_v23 = vrot.slane %v661_v20, 4  ;;  %v5621_v36 = vcombine.low %v5564_v28, %v5571_v32 }
  0x37   : > { %1779 = vmatmul.mubr.bf16.gmra.mxu0 %v5507_v47  ;;  %1811 = vmatmul.mubr.bf16.gmra.mxu1 %v5541_v10  ;;  %v602_v26 = vrot.slane %v601_v2, 4 }
  0x38   : > { %4421 = vmatpush3.bf16.msra.mxu1 %v5015_v48  ;;  %4485 = vmatpush3.bf16.msra.mxu0 %v5016_v57  ;;  %v614_v48 = vshll.u32 %v5574_v33, 16  ;;  %v606_v54 = vrot.slane %v604_v41, 5  ;;  %v610_v55 = vrot.slane %v608_v42, 4  ;;  %v516_v57 = vrot.slane %v515_v44, 4  ;;  %v5634_v41 = vld [vmem:[%s5363_s11 + $0x34] sm:$0xf] }
  0x39   : > { %4422 = vmatprep.subr.bf16.mxu1 %v5017_v60  ;;  %4486 = vmatprep.subr.bf16.mxu0 %v5018_v62  ;;  %v5025_v60 = vld [vmem:[%s6838_s2 + $0x218] sm:$0xff]   ;;  %v511_v62 = vsel %vm5404_vm4, %v506_v50, %v510_v34  ;;  %v526_v44 = vshll.u32 %v5627_v38, 16  ;;  %v532_v46 = vshll.u32 %v5634_v41, 16  ;;  %v665_v4 = vsel %vm5472_vm5, %v5604_v23, %v664_v39  ;;  %v401_v23 = vld [vmem:[%s5688_s16 + $0x20] sm:$0x1] }
  0x3a   : > { %v616_v59 = vrot.slane %v614_v48, 5  ;;  %v521_v9 = vsel %vm5404_vm4, %v516_v57, %v520_v37  ;;  %v607_v31 = vsel %vm5404_vm4, %v602_v26, %v606_v54  ;;  %v5030_v37 = vld [vmem:[%s6838_s2 + $0x290] sm:$0xff]   ;;  %v5637_v42 = vld [vmem:[%s5363_s11 + $0x38] sm:$0x1]  ;;  %v536_v48 = vshrl.u32 %v5634_v41, 16 }
  0x3b   : > { %v5606_v25 = vcombine.low %v511_v62, %v521_v9  ;;  %v542_v50 = vshll.u32 %v5637_v42, 16  ;;  %v528_v57 = vrot.slane %v526_v44, 5 }
  0x3c   : > { %4423 = vmatpush3.bf16.msra.mxu1 %v5019_v7  ;;  %4487 = vmatpush3.bf16.msra.mxu0 %v5020_v15  ;;  %v611_v7 = vor.u32 %v610_v55, %v606_v54  ;;  %v5597_v15 = vcombine.low %v5547_v16, %v5553_v22  ;;  %v5033_v54 = vld [vmem:[%s6838_s2 + $0x248] sm:$0xff]   ;;  %v538_v62 = vrot.slane %v536_v48, 4 }
  0x3d   : > { %4424 = vmatprep.subr.bf16.mxu1 %v5023_v29  ;;  %4488 = vmatprep.subr.bf16.mxu0 %v5024_v43  ;;  %v5028_v29 = vld [vmem:[%s6838_s2 + $0x2d0] sm:$0xff]   ;;  %v523_v43 = vshrl.u32 %v5627_v38, 16  ;;  %v544_v2 = vrot.slane %v542_v50, 5 }
  0x3e   : > { %v612_v27 = vrot.slane %v611_v7, 4  ;;  %1786 = vmatprep.mubr.bf16.mxu0 %v5606_v25  ;;  %v1262_v7 = vshrl.u32 %v5645_v52, 16 }
  0x3f   : > { %1787 = vmatmul.mubr.bf16.gmra.mxu0 %v5597_v15  ;;  %v525_v55 = vrot.slane %v523_v43, 4 }
  0x40   : > { %4425 = vmatpush3.bf16.msra.mxu1 %v5025_v60  ;;  %4489 = vmatpush3.bf16.msra.mxu0 %v5026_v61  ;;  %v617_v34 = vsel %vm5404_vm4, %v612_v27, %v616_v59  ;;  %v5652_v59 = vld [vmem:[%s5363_s11 + $0x64] sm:$0xf]  ;;  %v5655_v60 = vld [vmem:[%s5363_s11 + $0x68] sm:$0x1]  ;;  %v534_v61 = vrot.slane %v532_v46, 5 }
  0x41   : > { %4426 = vmatprep.subr.bf16.mxu1 %v5027_v18  ;;  %4490 = vmatprep.subr.bf16.mxu0 %v5028_v29  ;;  %v5630_v40 = vcombine.low %v607_v31, %v617_v34  ;;  %v529_v9 = vor.u32 %v528_v57, %v525_v55  ;;  %v1265_v18 = vshll.u32 %v5645_v52, 16  ;;  %v1271_v26 = vshll.u32 %v5652_v59, 16  ;;  %v5034_v29 = vld [vmem:[%s6838_s2 + $0x2c8] sm:$0xff]  }
  0x42   : > { %v1275_v27 = vshrl.u32 %v5652_v59, 16  ;;  %v1264_v31 = vrot.slane %v1262_v7, 4  ;;  %v1281_v34 = vshll.u32 %v5655_v60, 16  ;;  %v5036_v55 = vld [vmem:[%s6838_s2 + $0x288] sm:$0xff]  }
  0x43   : > { %1818 = vmatprep.mubr.bf16.mxu1 %v5630_v40  ;;  %v1267_v43 = vrot.slane %v1265_v18, 5  ;;  %v1273_v44 = vrot.slane %v1271_v26, 5  ;;  %v5678_v18 = vcombine.low %v5627_v38, %v5634_v41  ;;  %v5037_v26 = vld [vmem:[%s6838_s2 + $0x240] sm:$0xff]  }
  0x44   : > { %4427 = vmatpush3.bf16.msra.mxu1 %v5029_v30  ;;  %4491 = vmatpush3.bf16.msra.mxu0 %v5030_v37  ;;  %v539_v30 = vor.u32 %v538_v62, %v534_v61  ;;  %v530_v37 = vrot.slane %v529_v9, 4  ;;  %v1277_v46 = vrot.slane %v1275_v27, 4  ;;  %v1283_v50 = vrot.slane %v1281_v34, 5 }
  0x45   : > { %1819 = vmatmul.mubr.bf16.gmra.mxu1 %v5621_v36  ;;  %4428 = vmatprep.subr.bf16.mxu1 %v5033_v54  ;;  %v5035_v54 = vld [vmem:[%s6838_s2 + $0x208] sm:$0xff]   ;;  %v1268_v62 = vor.u32 %v1267_v43, %v1264_v31  ;;  %v5039_v31 = vld [vmem:[%s6838_s2 + $0x200] sm:$0xff]   ;;  %v655_v34 = vsel %vm5472_vm5, %v3855_v45, %v654_v51  ;;  %v668_v51 = vrot.slane %v5553_v22, 5 }
  0x46   : > { %4492 = vmatprep.subr.bf16.mxu0 %v5034_v29  ;;  %v540_v48 = vrot.slane %v539_v30, 4  ;;  %v535_v57 = vsel %vm5404_vm4, %v530_v37, %v534_v61  ;;  %v1278_v7 = vor.u32 %v1277_v46, %v1273_v44  ;;  %v3857_v61 = vrot.slane %v5547_v16, 9  ;;  %v5038_v30 = vld [vmem:[%s6838_s2 + $0x2c0] sm:$0xff]  }
  0x47   : > { %v1269_v27 = vrot.slane %v1268_v62, 4  ;;  %v5712_v46 = vcombine.low %v5645_v52, %v5652_v59 }
  0x48   : > { %v545_v9 = vsel %vm5404_vm4, %v540_v48, %v544_v2  ;;  %4429 = vmatpush3.bf16.msra.mxu1 %v5035_v54  ;;  %4493 = vmatpush3.bf16.msra.mxu0 %v5036_v55  ;;  %v1279_v29 = vrot.slane %v1278_v7, 4  ;;  %v726_v48 = vshrl.u32 %v396_v12, 16  ;;  %v398_v54 = vld [vmem:[%s5688_s16 + $0x14] sm:$0x1]  ;;  %v658_v55 = vsel %vm5472_vm5, %v5514_v49, %v657_v56 }
  0x49   : > { %v5691_v2 = vcombine.low %v535_v57, %v545_v9  ;;  %4430 = vmatprep.subr.bf16.mxu1 %v5037_v26  ;;  %v1274_v37 = vsel %vm5404_vm4, %v1269_v27, %v1273_v44  ;;  %6867 = vst [vmem:[#allocation2_spill] sm:$0xff] %v5712_v46  ;;  %4494 = vmatprep.subr.bf16.mxu0 %v5038_v30  ;;  %v397_v44 = vld [vmem:[%s5688_s16 + $0x10] sm:$0xf]  ;;  %v745_v9 = vshll.u32 %v398_v54, 16  ;;  %v5042_v26 = vld [vmem:[%s6838_s2 + $0x78] sm:$0xff]   ;;  %v3863_v30 = vrot.slane %v396_v12, 9 }
  0x4a   : > { %v1284_v43 = vsel %vm5404_vm4, %v1279_v29, %v1283_v50  ;;  %v729_v50 = vshll.u32 %v396_v12, 16  ;;  %v735_v57 = vshll.u32 %v397_v44, 16  ;;  %v739_v62 = vshrl.u32 %v397_v44, 16 }
  0x4b   : > { %1794 = vmatprep.mubr.bf16.mxu0 %v5691_v2  ;;  %v5719_v45 = vcombine.low %v1274_v37, %v1284_v43  ;;  %v5729_v7 = vcombine.low %v396_v12, %v397_v44  ;;  %v728_v27 = vrot.slane %v726_v48, 4  ;;  %v926_v13 = vrot.slane %v397_v44, 5 }
  0x4c   : > { %1795 = vmatmul.mubr.bf16.gmra.mxu0 %v5678_v18  ;;  %4431 = vmatpush3.bf16.msra.mxu1 %v5039_v31  ;;  %v731_v29 = vrot.slane %v729_v50, 5  ;;  %v737_v31 = vrot.slane %v735_v57, 5  ;;  %v741_v56 = vrot.slane %v739_v62, 4  ;;  %v929_v49 = vrot.slane %v398_v54, 5  ;;  %v5044_v54 = vld [vmem:[%s6838_s2 + $0xf8] sm:$0xff]  }
  0x4d   : > { %6868 = vst [vmem:[#allocation3_spill] sm:$0xff] %v5719_v45  ;;  %4495 = vmatpush3.bf16.msra.mxu0 %v5040_v11  ;;  %1826 = vmatprep.mubr.bf16.mxu1 %v5719_v45  ;;  %v670_v37 = vrot.slane %v668_v51, 4  ;;  %v927_v11 = vsel %vm5472_vm5, %v3863_v30, %v926_v13  ;;  %v928_v48 = vrot.slane %v926_v13, 4  ;;  %v671_v12 = vrot.slane %v5556_v17, 5 }
  0x4e   : > { %1827 = vmatmul.mubr.bf16.gmra.mxu1 %v5712_v46  ;;  %4544 = vmatprep.subr.bf16.mxu1 %v5042_v26  ;;  %v732_v43 = vor.u32 %v731_v29, %v728_v27  ;;  %v742_v44 = vor.u32 %v741_v56, %v737_v31  ;;  %v747_v50 = vrot.slane %v745_v9, 5  ;;  %v5742_v57 = vcombine.low %v655_v34, %v658_v55  ;;  %v5043_v34 = vld [vmem:[%s6838_s2 + $0x38] sm:$0xff]  }
  0x4f   : > { %1867 = vmatprep.mubr.bf16.mxu1 %v5729_v7  ;;  %v662_v62 = vsel %vm5472_vm5, %v3856_v8, %v661_v20  ;;  %v930_v17 = vsel %vm5472_vm5, %v928_v48, %v929_v49  ;;  %v399_v55 = vld [vmem:[%s5688_s16 + $0x18] sm:$0xf]  ;;  %4608 = vmatprep.subr.bf16.mxu0 %v5044_v54  ;;  %v400_v27 = vld [vmem:[%s5688_s16 + $0x1c] sm:$0xf] }
  0x50   : > { %v733_v26 = vrot.slane %v732_v43, 4  ;;  %v743_v9 = vrot.slane %v742_v44, 4  ;;  %v5765_v8 = vcombine.low %v927_v11, %v930_v17  ;;  %v5045_v20 = vld [vmem:[%s6838_s2 + $0xb8] sm:$0xff]   ;;  %v750_v29 = vshrl.u32 %v399_v55, 16  ;;  %v5047_v44 = vld [vmem:[%s6838_s2 + $0x70] sm:$0xff]  }
  0x51   : > { %v753_v30 = vshll.u32 %v399_v55, 16  ;;  %v763_v13 = vshrl.u32 %v400_v27, 16  ;;  %v5773_v56 = vcombine.low %v399_v55, %v400_v27  ;;  %v3864_v39 = vrot.slane %v399_v55, 9  ;;  %v5048_v55 = vld [vmem:[%s6838_s2 + $0x30] sm:$0xff]  }
  0x52   : > { %v738_v6 = vsel %vm5404_vm4, %v733_v26, %v737_v31  ;;  %1964 = vmatprep.mubr.bf16.mxu0 %v5765_v8  ;;  %v748_v49 = vsel %vm5404_vm4, %v743_v9, %v747_v50  ;;  %v933_v43 = vrot.slane %v400_v27, 5  ;;  %v936_v11 = vrot.slane %v401_v23, 5  ;;  %v5049_v50 = vld [vmem:[%s6838_s2 + $0xf0] sm:$0xff]  }
  0x53   : > { %v752_v48 = vrot.slane %v750_v29, 4  ;;  %v5782_v54 = vcombine.low %v738_v6, %v748_v49  ;;  %v755_v31 = vrot.slane %v753_v30, 5  ;;  %v759_v26 = vshll.u32 %v400_v27, 16  ;;  %v5050_v49 = vld [vmem:[%s6838_s2 + $0xb0] sm:$0xff]  }
  0x54   : > { %v765_v17 = vrot.slane %v763_v13, 4  ;;  %v934_v9 = vsel %vm5472_vm5, %v3864_v39, %v933_v43  ;;  %v935_v29 = vrot.slane %v933_v43, 4  ;;  %v769_v6 = vshll.u32 %v401_v23, 16  ;;  %v402_v43 = vld [vmem:[%s5688_s16 + $0x24] sm:$0xf] }
  0x55   : > { %1965 = vmatmul.mubr.bf16.vlgmr.msra.gmra.mxu0 %v5782_v54  ;;  %v5794_v27 = vcombine.low %v662_v62, %v665_v4  ;;  %v756_v30 = vor.u32 %v755_v31, %v752_v48  ;;  %v761_v13 = vrot.slane %v759_v26, 5  ;;  %v669_v62 = vsel %vm5472_vm5, %v3857_v61, %v668_v51  ;;  %v5052_v4 = vld [vmem:[%s6838_s2 + $0x68] sm:$0xff]  }
  0x56   : > { %1868 = vmatmul.mubr.bf16.vlgmr.msra.gmra.mxu1 %v5742_v57  ;;  %4609 = vmatpush3.bf16.msra.mxu0 %v5045_v20  ;;  %v937_v39 = vsel %vm5472_vm5, %v935_v29, %v936_v11  ;;  %v771_v23 = vrot.slane %v769_v6, 5  ;;  %v403_v31 = vld [vmem:[%s5688_s16 + $0x28] sm:$0xf]  ;;  %v774_v22 = vshrl.u32 %v402_v43, 16  ;;  %v404_v26 = vld [vmem:[%s5688_s16 + $0x2c] sm:$0x1] }
  0x57   : > { %4545 = vmatpush3.bf16.msra.mxu1 %v5043_v34  ;;  %1875 = vmatprep.mubr.bf16.mxu1 %v5773_v56  ;;  %v672_v34 = vsel %vm5472_vm5, %v670_v37, %v671_v12  ;;  %v5814_v20 = vcombine.low %v934_v9, %v937_v39  ;;  %v757_v48 = vrot.slane %v756_v30, 4  ;;  %v766_v11 = vor.u32 %v765_v17, %v761_v13  ;;  %v5053_v51 = vld [vmem:[%s6838_s2 + $0x28] sm:$0xff]  }
  0x58   : > { %4546 = vmatprep.subr.bf16.mxu1 %v5047_v44  ;;  %4610 = vmatprep.subr.bf16.mxu0 %v5049_v50  ;;  %v777_v16 = vshll.u32 %v402_v43, 16  ;;  %v787_v29 = vshrl.u32 %v403_v31, 16  ;;  %v5818_v6 = vcombine.low %v402_v43, %v403_v31  ;;  %v3865_v61 = vrot.slane %v402_v43, 9  ;;  %v5054_v50 = vld [vmem:[%s6838_s2 + $0xe8] sm:$0xff]  }
  0x59   : > { %1972 = vmatprep.mubr.bf16.mxu0 %v5814_v20  ;;  %v762_v37 = vsel %vm5404_vm4, %v757_v48, %v761_v13  ;;  %v767_v12 = vrot.slane %v766_v11, 4  ;;  %v940_v44 = vrot.slane %v403_v31, 5  ;;  %v943_v17 = vrot.slane %v404_v26, 5 }
  0x5a   : > { %4611 = vmatpush3.bf16.msra.mxu0 %v5050_v49  ;;  %v776_v9 = vrot.slane %v774_v22, 4  ;;  %v779_v30 = vrot.slane %v777_v16, 5  ;;  %v783_v39 = vshll.u32 %v403_v31, 16  ;;  %v789_v43 = vrot.slane %v787_v29, 4  ;;  %v405_v16 = vld [vmem:[%s5688_s16 + $0x30] sm:$0xf] }
  0x5b   : > { %4547 = vmatpush3.bf16.msra.mxu1 %v5048_v55  ;;  %v772_v5 = vsel %vm5404_vm4, %v767_v12, %v771_v23  ;;  %v941_v13 = vsel %vm5472_vm5, %v3865_v61, %v940_v44  ;;  %v942_v55 = vrot.slane %v940_v44, 4  ;;  %v793_v48 = vshll.u32 %v404_v26, 16  ;;  %4612 = vmatprep.subr.bf16.mxu0 %v5054_v50  ;;  %v406_v12 = vld [vmem:[%s5688_s16 + $0x34] sm:$0xf]  ;;  %v407_v50 = vld [vmem:[%s5688_s16 + $0x38] sm:$0x1] }
  0x5c   : > { %4548 = vmatprep.subr.bf16.mxu1 %v5052_v4  ;;  %v5834_v11 = vcombine.low %v762_v37, %v772_v5  ;;  %v780_v49 = vor.u32 %v779_v30, %v776_v9  ;;  %v785_v31 = vrot.slane %v783_v39, 5  ;;  %v5055_v4 = vld [vmem:[%s6838_s2 + $0xa8] sm:$0xff]   ;;  %v5842_v22 = vcombine.low %v669_v62, %v672_v34  ;;  %v5057_v34 = vld [vmem:[%s6838_s2 + $0x60] sm:$0xff]  }
  0x5d   : > { %v944_v23 = vsel %vm5472_vm5, %v942_v55, %v943_v17  ;;  %v795_v26 = vrot.slane %v793_v48, 5  ;;  %v675_v5 = vrot.slane %v5634_v41, 5  ;;  %v798_v44 = vshrl.u32 %v405_v16, 16 }
  0x5e   : > { %1876 = vmatmul.mubr.bf16.gmra.mxu1 %v5794_v27  ;;  %1973 = vmatmul.mubr.bf16.gmra.mxu0 %v5834_v11  ;;  %v5847_v29 = vcombine.low %v941_v13, %v944_v23  ;;  %v781_v61 = vrot.slane %v780_v49, 4  ;;  %v790_v37 = vor.u32 %v789_v43, %v785_v31  ;;  %v801_v9 = vshll.u32 %v405_v16, 16  ;;  %v5058_v13 = vld [vmem:[%s6838_s2 + $0x20] sm:$0xff]  }
  0x5f   : > { %1883 = vmatprep.mubr.bf16.mxu1 %v5818_v6  ;;  %4549 = vmatpush3.bf16.msra.mxu1 %v5053_v51  ;;  %v811_v30 = vshrl.u32 %v406_v12, 16  ;;  %v5851_v17 = vcombine.low %v405_v16, %v406_v12  ;;  %v3866_v62 = vrot.slane %v405_v16, 9  ;;  %v947_v39 = vrot.slane %v406_v12, 5 }
  0x60   : > { %4613 = vmatpush3.bf16.msra.mxu0 %v5055_v4  ;;  %1980 = vmatprep.mubr.bf16.mxu0 %v5847_v29  ;;  %v786_v41 = vsel %vm5404_vm4, %v781_v61, %v785_v31  ;;  %v791_v51 = vrot.slane %v790_v37, 4  ;;  %v950_v43 = vrot.slane %v407_v50, 5  ;;  %v676_v55 = vsel %vm5472_vm5, %v3858_v3, %v675_v5  ;;  %v5059_v31 = vld [vmem:[%s6838_s2 + $0xe0] sm:$0xff]  }
  0x61   : > { %v677_v48 = vrot.slane %v675_v5, 4  ;;  %v678_v49 = vrot.slane %v5637_v42, 5  ;;  %v800_v4 = vrot.slane %v798_v44, 4  ;;  %4550 = vmatprep.subr.bf16.mxu1 %v5057_v34  ;;  %v948_v16 = vsel %vm5472_vm5, %v3866_v62, %v947_v39  ;;  %4614 = vmatprep.subr.bf16.mxu0 %v5059_v31  ;;  %v5060_v34 = vld [vmem:[%s6838_s2 + $0xa0] sm:$0xff]   ;;  %v5063_v31 = vld [vmem:[%s6838_s2 + $0x18] sm:$0xff]  }
  0x62   : > { %v796_v23 = vsel %vm5404_vm4, %v791_v51, %v795_v26  ;;  %v949_v38 = vrot.slane %v947_v39, 4  ;;  %v803_v61 = vrot.slane %v801_v9, 5  ;;  %v807_v5 = vshll.u32 %v406_v12, 16  ;;  %v409_v51 = vld [vmem:[%s5688_s16 + $0x40] sm:$0xf] }
  0x63   : > { %4551 = vmatpush3.bf16.msra.mxu1 %v5058_v13  ;;  %v5874_v3 = vcombine.low %v786_v41, %v796_v23  ;;  %v679_v42 = vsel %vm5472_vm5, %v677_v48, %v678_v49  ;;  %v813_v37 = vrot.slane %v811_v30, 4  ;;  %v817_v9 = vshll.u32 %v407_v50, 16  ;;  %v408_v41 = vld [vmem:[%s5688_s16 + $0x3c] sm:$0xf] }
  0x64   : > { %v951_v26 = vsel %vm5472_vm5, %v949_v38, %v950_v43  ;;  %v5881_v44 = vcombine.low %v676_v55, %v679_v42  ;;  %v804_v62 = vor.u32 %v803_v61, %v800_v4  ;;  %v809_v30 = vrot.slane %v807_v5, 5  ;;  %v5062_v43 = vld [vmem:[%s6838_s2 + $0x58] sm:$0xff]   ;;  %v410_v4 = vld [vmem:[%s5688_s16 + $0x44] sm:$0x1]  ;;  %4615 = vmatpush3.bf16.msra.mxu0 %v5060_v34 }
  0x65   : > { %6869 = vst [vmem:[#allocation4_spill] sm:$0xff] %v5874_v3  ;;  %v5888_v12 = vcombine.low %v948_v16, %v951_v26  ;;  %v822_v39 = vshrl.u32 %v408_v41, 16  ;;  %v825_v13 = vshll.u32 %v408_v41, 16  ;;  %v819_v55 = vrot.slane %v817_v9, 5  ;;  %v5064_v42 = vld [vmem:[%s6838_s2 + $0xd8] sm:$0xff]   ;;  %4552 = vmatprep.subr.bf16.mxu1 %v5062_v43 }
  0x66   : > { %1884 = vmatmul.mubr.bf16.gmra.mxu1 %v5842_v22  ;;  %1981 = vmatmul.mubr.bf16.gmra.mxu0 %v5874_v3  ;;  %v805_v50 = vrot.slane %v804_v62, 4  ;;  %v835_v48 = vshrl.u32 %v409_v51, 16  ;;  %v5895_v49 = vcombine.low %v408_v41, %v409_v51  ;;  %v814_v23 = vor.u32 %v813_v37, %v809_v30  ;;  %v5213_v9 = vld [vmem:[%s5363_s11 + $0x44] sm:$0x1]  ;;  %v5065_v37 = vld [vmem:[%s6838_s2 + $0x98] sm:$0xff]  }
  0x67   : > { %1891 = vmatprep.mubr.bf16.mxu1 %v5851_v17  ;;  %6870 = vst [vmem:[#allocation5_spill] sm:$0xff] %v5888_v12  ;;  %1988 = vmatprep.mubr.bf16.mxu0 %v5888_v12  ;;  %v3867_v16 = vrot.slane %v408_v41, 9  ;;  %v954_v38 = vrot.slane %v409_v51, 5  ;;  %v957_v61 = vrot.slane %v410_v4, 5  ;;  %v6871_v26 = vrot.slane %v5395_v24, 5  ;;  %v5067_v24 = vld [vmem:[%s6838_s2 + $0x50] sm:$0xff]  }
  0x68   : > { %v810_v5 = vsel %vm5404_vm4, %v805_v50, %v809_v30  ;;  %v685_v46 = vrot.slane %v5213_v9, 5  ;;  %v824_v45 = vrot.slane %v822_v39, 4  ;;  %v815_v34 = vrot.slane %v814_v23, 4  ;;  %4553 = vmatpush3.bf16.msra.mxu1 %v5063_v31  ;;  %4616 = vmatprep.subr.bf16.mxu0 %v5064_v42  ;;  %v5068_v23 = vld [vmem:[%s6838_s2 + $0x10] sm:$0xff]   ;;  %v411_v42 = vld [vmem:[%s5688_s16 + $0x48] sm:$0xf] }
  0x69   : > { %v684_v62 = vrot.slane %v6871_v26, 4  ;;  %v955_v41 = vsel %vm5472_vm5, %v3867_v16, %v954_v38  ;;  %v956_v12 = vrot.slane %v954_v38, 4  ;;  %v827_v3 = vrot.slane %v825_v13, 5  ;;  %4617 = vmatpush3.bf16.msra.mxu0 %v5065_v37  ;;  %4554 = vmatprep.subr.bf16.mxu1 %v5067_v24 }
  0x6a   : > { %v831_v39 = vshll.u32 %v409_v51, 16  ;;  %v837_v43 = vrot.slane %v835_v48, 4  ;;  %v841_v50 = vshll.u32 %v410_v4, 16  ;;  %v820_v13 = vsel %vm5404_vm4, %v815_v34, %v819_v55  ;;  %v412_v55 = vld [vmem:[%s5688_s16 + $0x4c] sm:$0xf] }
  0x6b   : > { %v686_v30 = vsel %vm5472_vm5, %v684_v62, %v685_v46  ;;  %v958_v31 = vsel %vm5472_vm5, %v956_v12, %v957_v61  ;;  %v828_v38 = vor.u32 %v827_v3, %v824_v45  ;;  %v5931_v46 = vcombine.low %v810_v5, %v820_v13  ;;  %v413_v62 = vld [vmem:[%s5688_s16 + $0x50] sm:$0x1] }
  0x6c   : > { %v5928_v16 = vcombine.low %v5487_v19, %v686_v30  ;;  %v5933_v51 = vcombine.low %v955_v41, %v958_v31  ;;  %v833_v48 = vrot.slane %v831_v39, 5  ;;  %v843_v4 = vrot.slane %v841_v50, 5  ;;  %4555 = vmatpush3.bf16.msra.mxu1 %v5068_v23  ;;  %v5214_v41 = vld [vmem:[%s5363_s11 + $0x48] sm:$0xf]  ;;  %v5215_v30 = vld [vmem:[%s5363_s11 + $0x4c] sm:$0xf] }
  0x6d   : > { %6872 = vst [vmem:[#allocation6_spill] sm:$0xff] %v5931_v46  ;;  %v829_v12 = vrot.slane %v828_v38, 4  ;;  %v846_v19 = vshrl.u32 %v411_v42, 16  ;;  %v849_v45 = vshll.u32 %v411_v42, 16  ;;  %v3868_v3 = vrot.slane %v411_v42, 9 }
  0x6e   : > { %1892 = vmatmul.mubr.bf16.gmra.mxu1 %v5881_v44  ;;  %6873 = vst [vmem:[#allocation7_spill] sm:$0xff] %v5933_v51  ;;  %1989 = vmatmul.mubr.bf16.gmra.mxu0 %v5931_v46  ;;  %v838_v61 = vor.u32 %v837_v43, %v833_v48  ;;  %v859_v5 = vshrl.u32 %v412_v55, 16  ;;  %v5939_v26 = vcombine.low %v411_v42, %v412_v55  ;;  %v961_v9 = vrot.slane %v412_v55, 5  ;;  %v5069_v43 = vld [vmem:[%s6838_s2 + $0xd0] sm:$0xff]  }
  0x6f   : > { %1899 = vmatprep.mubr.bf16.mxu1 %v5895_v49  ;;  %1996 = vmatprep.mubr.bf16.mxu0 %v5933_v51  ;;  %v834_v37 = vsel %vm5404_vm4, %v829_v12, %v833_v48  ;;  %v964_v34 = vrot.slane %v413_v62, 5  ;;  %v3860_v24 = vrot.slane %v5214_v41, 9  ;;  %v689_v39 = vrot.slane %v5215_v30, 5  ;;  %v5216_v31 = vld [vmem:[%s5363_s11 + $0x50] sm:$0x1] }
  0x70   : > { %v839_v50 = vrot.slane %v838_v61, 4  ;;  %v962_v23 = vsel %vm5472_vm5, %v3868_v3, %v961_v9  ;;  %v963_v13 = vrot.slane %v961_v9, 4  ;;  %v692_v38 = vrot.slane %v5216_v31, 5  ;;  %v5070_v48 = vld [vmem:[%s6838_s2 + $0x90] sm:$0xff]   ;;  %4618 = vmatprep.subr.bf16.mxu0 %v5069_v43  ;;  %v5072_v61 = vld [vmem:[%s6838_s2 + $0x48] sm:$0xff]  }
  0x71   : > { %v690_v42 = vsel %vm5472_vm5, %v3860_v24, %v689_v39  ;;  %v691_v12 = vrot.slane %v689_v39, 4  ;;  %v848_v41 = vrot.slane %v846_v19, 4  ;;  %v851_v30 = vrot.slane %v849_v45, 5  ;;  %4619 = vmatpush3.bf16.msra.mxu0 %v5070_v48  ;;  %v414_v39 = vld [vmem:[%s5688_s16 + $0x54] sm:$0xf]  ;;  %4556 = vmatprep.subr.bf16.mxu1 %v5072_v61  ;;  %v5075_v61 = vld [vmem:[%s6838_s2 + $0x88] sm:$0xff]  }
  0x72   : > { %v844_v3 = vsel %vm5404_vm4, %v839_v50, %v843_v4  ;;  %v965_v9 = vsel %vm5472_vm5, %v963_v13, %v964_v34  ;;  %v855_v31 = vshll.u32 %v412_v55, 16  ;;  %v861_v51 = vrot.slane %v859_v5, 4  ;;  %v415_v55 = vld [vmem:[%s5688_s16 + $0x58] sm:$0xf]  ;;  %v416_v48 = vld [vmem:[%s5688_s16 + $0x5c] sm:$0x1] }
  0x73   : > { %v5965_v46 = vcombine.low %v834_v37, %v844_v3  ;;  %v5967_v24 = vcombine.low %v962_v23, %v965_v9  ;;  %v693_v19 = vsel %vm5472_vm5, %v691_v12, %v692_v38  ;;  %v852_v45 = vor.u32 %v851_v30, %v848_v41  ;;  %v5073_v37 = vld [vmem:[%s6838_s2 + $0x8] sm:$0xff]  }
  0x74   : > { %v5973_v4 = vcombine.low %v690_v42, %v693_v19  ;;  %v857_v43 = vrot.slane %v855_v31, 5  ;;  %v865_v34 = vshll.u32 %v413_v62, 16  ;;  %v870_v5 = vshrl.u32 %v414_v39, 16  ;;  %v5074_v42 = vld [vmem:[%s6838_s2 + $0xc8] sm:$0xff]   ;;  %4557 = vmatpush3.bf16.msra.mxu1 %v5073_v37 }
  0x75   : > { %6874 = vst [vmem:[#allocation8_spill] sm:$0xff] %v5967_v24  ;;  %v853_v50 = vrot.slane %v852_v45, 4  ;;  %v873_v23 = vshll.u32 %v414_v39, 16  ;;  %v883_v13 = vshrl.u32 %v415_v55, 16  ;;  %v5980_v38 = vcombine.low %v414_v39, %v415_v55  ;;  %4620 = vmatprep.subr.bf16.mxu0 %v5074_v42 }
  0x76   : > { %1900 = vmatmul.mubr.bf16.gmra.mxu1 %v5928_v16  ;;  %1997 = vmatmul.mubr.bf16.gmra.mxu0 %v5965_v46  ;;  %v862_v62 = vor.u32 %v861_v51, %v857_v43  ;;  %v867_v12 = vrot.slane %v865_v34, 5  ;;  %v3869_v41 = vrot.slane %v414_v39, 9  ;;  %v968_v30 = vrot.slane %v415_v55, 5  ;;  %v5077_v51 = vld [vmem:[%s6838_s2 + $0x40] sm:$0xff]  }
  0x77   : > { %1907 = vmatprep.mubr.bf16.mxu1 %v5939_v26  ;;  %2004 = vmatprep.mubr.bf16.mxu0 %v5967_v24  ;;  %v858_v3 = vsel %vm5404_vm4, %v853_v50, %v857_v43  ;;  %v971_v9 = vrot.slane %v416_v48, 5  ;;  %v3861_v31 = vrot.slane %v5564_v28, 9  ;;  %v696_v19 = vrot.slane %v5571_v32, 5  ;;  %v5078_v43 = vld [vmem:[%s6838_s2] sm:$0xff]  }
  0x78   : > { %v863_v45 = vrot.slane %v862_v62, 4  ;;  %v969_v39 = vsel %vm5472_vm5, %v3869_v41, %v968_v30  ;;  %v970_v34 = vrot.slane %v968_v30, 4  ;;  %v699_v37 = vrot.slane %v5574_v33, 5  ;;  %4621 = vmatpush3.bf16.msra.mxu0 %v5075_v61  ;;  %4558 = vmatprep.subr.bf16.mxu1 %v5077_v51  ;;  %v5079_v62 = vld [vmem:[%s6838_s2 + $0xc0] sm:$0xff]  }
  0x79   : > { %v697_v28 = vsel %vm5472_vm5, %v3861_v31, %v696_v19  ;;  %v698_v32 = vrot.slane %v696_v19, 4  ;;  %v872_v50 = vrot.slane %v870_v5, 4  ;;  %v875_v42 = vrot.slane %v873_v23, 5  ;;  %4559 = vmatpush3.bf16.msra.mxu1 %v5078_v43  ;;  %v417_v19 = vld [vmem:[%s5688_s16 + $0x60] sm:$0xf]  ;;  %4622 = vmatprep.subr.bf16.mxu0 %v5079_v62 }
  0x7a   : > { %v868_v33 = vsel %vm5404_vm4, %v863_v45, %v867_v12  ;;  %v972_v41 = vsel %vm5472_vm5, %v970_v34, %v971_v9  ;;  %v879_v30 = vshll.u32 %v415_v55, 16  ;;  %v885_v61 = vrot.slane %v883_v13, 4  ;;  %v418_v55 = vld [vmem:[%s5688_s16 + $0x64] sm:$0xf]  ;;  %v419_v43 = vld [vmem:[%s5688_s16 + $0x68] sm:$0x1] }
  0x7b   : > { %v6013_v24 = vcombine.low %v858_v3, %v868_v33  ;;  %v6015_v31 = vcombine.low %v969_v39, %v972_v41  ;;  %v700_v5 = vsel %vm5472_vm5, %v698_v32, %v699_v37  ;;  %v876_v23 = vor.u32 %v875_v42, %v872_v50  ;;  %v5080_v3 = vld [vmem:[%s6838_s2 + $0x80] sm:$0xff]  }
  0x7c   : > { %v6021_v12 = vcombine.low %v697_v28, %v700_v5  ;;  %v881_v51 = vrot.slane %v879_v30, 5  ;;  %v889_v9 = vshll.u32 %v416_v48, 16  ;;  %v1296_v13 = vshrl.u32 %v417_v19, 16  ;;  %v5083_v28 = vld [vmem:[%s6838_s2 + $0x178] sm:$0xff]   ;;  %4623 = vmatpush3.bf16.msra.mxu0 %v5080_v3 }
  0x7d   : > { %6875 = vst [vmem:[#allocation9_spill] sm:$0xff] %v6013_v24  ;;  %6876 = vst [vmem:[#allocation10_spill] sm:$0xff] %v6015_v31  ;;  %v877_v45 = vrot.slane %v876_v23, 4  ;;  %v1299_v39 = vshll.u32 %v417_v19, 16  ;;  %v1309_v34 = vshrl.u32 %v418_v55, 16  ;;  %v6028_v37 = vcombine.low %v417_v19, %v418_v55  ;;  %v5085_v5 = vld [vmem:[%s6838_s2 + $0x378] sm:$0xff]   ;;  %4672 = vmatprep.subr.bf16.mxu1 %v5083_v28 }
  0x7e   : > { %1908 = vmatmul.mubr.bf16.gmra.mxu1 %v5973_v4  ;;  %2005 = vmatmul.mubr.bf16.gmra.mxu0 %v6013_v24  ;;  %v886_v48 = vor.u32 %v885_v61, %v881_v51  ;;  %v891_v32 = vrot.slane %v889_v9, 5  ;;  %v3919_v50 = vrot.slane %v417_v19, 9  ;;  %v1324_v42 = vrot.slane %v418_v55, 5 }
  0x7f   : > { %1915 = vmatprep.mubr.bf16.mxu1 %v5980_v38  ;;  %6877 = vst [vmem:[#allocation11_spill] sm:$0xff] %v6028_v37  ;;  %2012 = vmatprep.mubr.bf16.mxu0 %v6015_v31  ;;  %v882_v62 = vsel %vm5404_vm4, %v877_v45, %v881_v51  ;;  %v1327_v33 = vrot.slane %v419_v43, 5  ;;  %v3918_v41 = vrot.slane %v5645_v52, 9  ;;  %v1290_v30 = vrot.slane %v5652_v59, 5 }
  0x80   : > { %v887_v23 = vrot.slane %v886_v48, 4  ;;  %v1325_v61 = vsel %vm5472_vm5, %v3919_v50, %v1324_v42  ;;  %v1326_v19 = vrot.slane %v1324_v42, 4  ;;  %v1293_v9 = vrot.slane %v5655_v60, 5  ;;  %4736 = vmatprep.subr.bf16.mxu0 %v5085_v5  ;;  %v364_v5 = vld [vmem:[%s5363_s11 + $0x4] sm:$0xf] }
  0x81   : > { %v1291_v51 = vsel %vm5472_vm5, %v3918_v41, %v1290_v30  ;;  %v1292_v52 = vrot.slane %v1290_v30, 4  ;;  %v1298_v45 = vrot.slane %v1296_v13, 4  ;;  %v1301_v59 = vrot.slane %v1299_v39, 5  ;;  %v363_v41 = vld [vmem:[%s5363_s11] sm:$0xf] }
  0x82   : > { %v892_v3 = vsel %vm5404_vm4, %v887_v23, %v891_v32  ;;  %v1328_v48 = vsel %vm5472_vm5, %v1326_v19, %v1327_v33  ;;  %v1305_v50 = vshll.u32 %v418_v55, 16  ;;  %v1311_v42 = vrot.slane %v1309_v34, 4  ;;  %v365_v33 = vld [vmem:[%s5363_s11 + $0x8] sm:$0x1] }
  0x83   : > { %v6052_v31 = vcombine.low %v882_v62, %v892_v3  ;;  %v6054_v60 = vcombine.low %v1325_v61, %v1328_v48  ;;  %v1294_v28 = vsel %vm5472_vm5, %v1292_v52, %v1293_v9  ;;  %v1302_v13 = vor.u32 %v1301_v59, %v1298_v45  ;;  %v6067_v45 = vld [vmem:[%s5688_s16] sm:$0xf] }
  0x84   : > { %v6060_v39 = vcombine.low %v1291_v51, %v1294_v28  ;;  %v1307_v32 = vrot.slane %v1305_v50, 5  ;;  %v1315_v30 = vshll.u32 %v419_v43, 16  ;;  %v427_v34 = vshrl.u32 %v363_v41, 16  ;;  %v6073_v28 = vld [vmem:[%s5688_s16 + $0x4] sm:$0xf] }
  0x85   : > { %6878 = vst [vmem:[#allocation12_spill] sm:$0xff] %v6052_v31  ;;  %v1303_v55 = vrot.slane %v1302_v13, 4  ;;  %v430_v62 = vshll.u32 %v363_v41, 16  ;;  %v436_v23 = vshll.u32 %v364_v5, 16  ;;  %v440_v9 = vshrl.u32 %v364_v5, 16 }
  0x86   : > { %1916 = vmatmul.mubr.bf16.gmra.mxu1 %v6021_v12  ;;  %2013 = vmatmul.mubr.bf16.gmra.mxu0 %v6052_v31  ;;  %v1312_v61 = vor.u32 %v1311_v42, %v1307_v32  ;;  %v1317_v19 = vrot.slane %v1315_v30, 5  ;;  %v446_v52 = vshll.u32 %v365_v33, 16  ;;  %v429_v43 = vrot.slane %v427_v34, 4 }
  0x87   : > { %1923 = vmatprep.mubr.bf16.mxu1 %v6028_v37  ;;  %2020 = vmatprep.mubr.bf16.mxu0 %v6054_v60  ;;  %v432_v51 = vrot.slane %v430_v62, 5  ;;  %v438_v59 = vrot.slane %v436_v23, 5  ;;  %v1308_v3 = vsel %vm5404_vm4, %v1303_v55, %v1307_v32  ;;  %v442_v50 = vrot.slane %v440_v9, 4 }
  0x88   : > { %v1313_v48 = vrot.slane %v1312_v61, 4  ;;  %v448_v37 = vrot.slane %v446_v52, 5  ;;  %v3894_v34 = vcombine.low %v6067_v45, %v6073_v28  ;;  %v650_v32 = vrot.slane %v365_v33, 5  ;;  %v5084_v33 = vld [vmem:[%s6838_s2 + $0x138] sm:$0xff]  }
  0x89   : > { %v433_v13 = vor.u32 %v432_v51, %v429_v43  ;;  %v443_v30 = vor.u32 %v442_v50, %v438_v59  ;;  %v3854_v23 = vrot.slane %v363_v41, 9  ;;  %v647_v61 = vrot.slane %v364_v5, 5  ;;  %v5090_v50 = vld [vmem:[%s6838_s2 + $0x330] sm:$0xff]  }
  0x8a   : > { %v1318_v42 = vsel %vm5404_vm4, %v1313_v48, %v1317_v19  ;;  %v3870_v51 = vcombine.low %v363_v41, %v364_v5  ;;  %v5089_v48 = vld [vmem:[%s6838_s2 + $0x370] sm:$0xff]   ;;  %v5091_v5 = vld [vmem:[%s6838_s2 + $0x168] sm:$0xff]  }
  0x8b   : > { %v6077_v31 = vcombine.low %v1308_v3, %v1318_v42  ;;  %v434_v24 = vrot.slane %v433_v13, 4  ;;  %v444_v62 = vrot.slane %v443_v30, 4  ;;  %v648_v52 = vsel %vm5472_vm5, %v3854_v23, %v647_v61  ;;  %v5088_v41 = vld [vmem:[%s6838_s2 + $0x130] sm:$0xff]   ;;  %v5092_v13 = vld [vmem:[%s6838_s2 + $0x128] sm:$0xff]   ;;  %v5095_v42 = vld [vmem:[%s6838_s2 + $0x160] sm:$0xff]  }
  0x8c   : > { %v649_v43 = vrot.slane %v647_v61, 4  ;;  %v5097_v30 = vld [vmem:[%s6838_s2 + $0x360] sm:$0xff]   ;;  %v5102_v23 = vld [vmem:[%s6838_s2 + $0x318] sm:$0xff]   ;;  %v5105_v61 = vld [vmem:[%s6838_s2 + $0x350] sm:$0xff]  }
  0x8d   : > { %v439_v55 = vsel %vm5404_vm4, %v434_v24, %v438_v59  ;;  %v449_v19 = vsel %vm5404_vm4, %v444_v62, %v448_v37  ;;  %v5087_v24 = vld [vmem:[%s6838_s2 + $0x170] sm:$0xff]   ;;  %v5086_v37 = vld [vmem:[%s6838_s2 + $0x338] sm:$0xff]  }
  0x8e   : > { %1924 = vmatmul.mubr.bf16.gmra.mxu1 %v6060_v39  ;;  %2021 = vmatmul.mubr.bf16.gmra.mxu0 %v6077_v31  ;;  %v3878_v9 = vcombine.low %v439_v55, %v449_v19  ;;  %v651_v59 = vsel %vm5472_vm5, %v649_v43, %v650_v32  ;;  %v5099_v62 = vld [vmem:[%s6838_s2 + $0x158] sm:$0xff]   ;;  %v5103_v55 = vld [vmem:[%s6838_s2 + $0x150] sm:$0xff]   ;;  %v5109_v43 = vld [vmem:[%s6838_s2 + $0x348] sm:$0xff]  }
  0x8f   : > { %2446 = vmatprep.mubr.bf16.mxu0 %v3894_v34  ;;  %v3886_v3 = vcombine.low %v648_v52, %v651_v59  ;;  %v5096_v34 = vld [vmem:[%s6838_s2 + $0x120] sm:$0xff]   ;;  %v5101_v32 = vld [vmem:[%s6838_s2 + $0x358] sm:$0xff]   ;;  %v5104_v19 = vld [vmem:[%s6838_s2 + $0x110] sm:$0xff]  }
  0x90   : > { %2349 = vmatprep.mubr.bf16.mxu1 %v3878_v9  ;;  %v5107_v9 = vld [vmem:[%s6838_s2 + $0x148] sm:$0xff]   ;;  %v5106_v52 = vld [vmem:[%s6838_s2 + $0x310] sm:$0xff]   ;;  %v5113_v59 = vld [vmem:[%s6838_s2 + $0x340] sm:$0xff]  }
  0x96   : > { %2350 = vmatmul.mubr.bf16.vlgmr.msra.gmra.mxu1 %v3870_v51  ;;  %2447 = vmatmul.mubr.bf16.vlgmr.msra.gmra.mxu0 %v3886_v3  ;;  %v5111_v51 = vld [vmem:[%s6838_s2 + $0x140] sm:$0xff]   ;;  %v5115_v3 = vld [vmem:[%s6838_s2 + $0x3f8] sm:$0xff]  }
  0x97   : > { %4673 = vmatpush3.bf16.msra.mxu1 %v5084_v33  ;;  %2357 = vmatprep.mubr.bf16.mxu1 %v5422_v53  ;;  %v5093_v53 = vld [vmem:[%s6838_s2 + $0x368] sm:$0xff]  }
  0x98   : > { %4674 = vmatprep.subr.bf16.mxu1 %v5087_v24  ;;  %4737 = vmatpush3.bf16.msra.mxu0 %v5086_v37  ;;  %v5108_v33 = vld [vmem:[%s6838_s2 + $0x108] sm:$0xff]   ;;  %v5112_v37 = vld [vmem:[%s6838_s2 + $0x100] sm:$0xff]  }
  0x99   : > { %2454 = vmatprep.mubr.bf16.mxu0 %v5729_v7  ;;  %4738 = vmatprep.subr.bf16.mxu0 %v5089_v48  ;;  %v5094_v7 = vld [vmem:[%s6838_s2 + $0x328] sm:$0xff]   ;;  %v5114_v48 = vld [vmem:[%s6838_s2 + $0x300] sm:$0xff]  }
  0x9a   : > { %v5110_v24 = vld [vmem:[%s6838_s2 + $0x308] sm:$0xff]  }
  0x9b   : > { %4675 = vmatpush3.bf16.msra.mxu1 %v5088_v41  ;;  %v5117_v41 = vld [vmem:[%s6838_s2 + $0x478] sm:$0xff]  }
  0x9c   : > { %4676 = vmatprep.subr.bf16.mxu1 %v5091_v5  ;;  %4739 = vmatpush3.bf16.msra.mxu0 %v5090_v50  ;;  %v702_v5 = vshrl.u32 %v6067_v45, 16  ;;  %v705_v50 = vshll.u32 %v6067_v45, 16 }
  0x9d   : > { %4740 = vmatprep.subr.bf16.mxu0 %v5093_v53  ;;  %v711_v53 = vshll.u32 %v6073_v28, 16 }
  0x9e   : > { %2358 = vmatmul.mubr.bf16.gmra.mxu1 %v5447_v0  ;;  %2455 = vmatmul.mubr.bf16.gmra.mxu0 %v5742_v57  ;;  %v5098_v0 = vld [vmem:[%s6838_s2 + $0x320] sm:$0xff]   ;;  %v5100_v57 = vld [vmem:[%s6838_s2 + $0x118] sm:$0xff]  }
  0x9f   : > { %2365 = vmatprep.mubr.bf16.mxu1 %v5523_v58  ;;  %4677 = vmatpush3.bf16.msra.mxu1 %v5092_v13  ;;  %v715_v13 = vshrl.u32 %v6073_v28, 16 }
  0xa0   : > { %4678 = vmatprep.subr.bf16.mxu1 %v5095_v42  ;;  %2462 = vmatprep.mubr.bf16.mxu0 %v5773_v56  ;;  %v704_v42 = vrot.slane %v702_v5, 4 }
  0xa1   : > { %4741 = vmatpush3.bf16.msra.mxu0 %v5094_v7  ;;  %v707_v7 = vrot.slane %v705_v50, 5 }
  0xa2   : > { %4742 = vmatprep.subr.bf16.mxu0 %v5097_v30  ;;  %v919_v30 = vrot.slane %v6073_v28, 5 }
  0xa3   : > { %4679 = vmatpush3.bf16.msra.mxu1 %v5096_v34  ;;  %v395_v34 = vld [vmem:[%s5688_s16 + $0x8] sm:$0x1] }
  0xa4   : > { %4680 = vmatprep.subr.bf16.mxu1 %v5099_v62  ;;  %v713_v62 = vrot.slane %v711_v53, 5  ;;  %v5116_v53 = vld [vmem:[%s6838_s2 + $0x3b8] sm:$0xff]  }
  0xa5   : > { %4743 = vmatpush3.bf16.msra.mxu0 %v5098_v0  ;;  %v717_v0 = vrot.slane %v715_v13, 4 }
  0xa6   : > { %2366 = vmatmul.mubr.bf16.gmra.mxu1 %v5507_v47  ;;  %4744 = vmatprep.subr.bf16.mxu0 %v5101_v32  ;;  %v3862_v32 = vrot.slane %v6067_v45, 9 }
  0xa7   : > { %2373 = vmatprep.mubr.bf16.mxu1 %v5606_v25  ;;  %4681 = vmatpush3.bf16.msra.mxu1 %v5100_v57  ;;  %v921_v57 = vrot.slane %v919_v30, 4 }
  0xa8   : > { %2463 = vmatmul.mubr.bf16.gmra.mxu0 %v5794_v27  ;;  %4682 = vmatprep.subr.bf16.mxu1 %v5103_v55  ;;  %v922_v55 = vrot.slane %v395_v34, 5  ;;  %v920_v28 = vsel %vm5472_vm5, %v3862_v32, %v919_v30  ;;  %v5123_v32 = vld [vmem:[%s6838_s2 + $0x3e8] sm:$0xff]  }
  0xa9   : > { %2470 = vmatprep.mubr.bf16.mxu0 %v5818_v6  ;;  %4745 = vmatpush3.bf16.msra.mxu0 %v5102_v23  ;;  %v708_v23 = vor.u32 %v707_v7, %v704_v42  ;;  %v5119_v7 = vld [vmem:[%s6838_s2 + $0x3f0] sm:$0xff]  }
  0xaa   : > { %4746 = vmatprep.subr.bf16.mxu0 %v5105_v61  ;;  %v718_v61 = vor.u32 %v717_v0, %v713_v62  ;;  %v923_v45 = vsel %vm5472_vm5, %v921_v57, %v922_v55  ;;  %v5120_v0 = vld [vmem:[%s6838_s2 + $0x3b0] sm:$0xff]   ;;  %v5127_v55 = vld [vmem:[%s6838_s2 + $0x3e0] sm:$0xff]  }
  0xab   : > { %4683 = vmatpush3.bf16.msra.mxu1 %v5104_v19  ;;  %v721_v19 = vshll.u32 %v395_v34, 16  ;;  %v5121_v34 = vld [vmem:[%s6838_s2 + $0x470] sm:$0xff]  }
  0xac   : > { %4684 = vmatprep.subr.bf16.mxu1 %v5107_v9  ;;  %v709_v9 = vrot.slane %v708_v23, 4  ;;  %v5122_v57 = vld [vmem:[%s6838_s2 + $0x430] sm:$0xff]   ;;  %v5129_v23 = vld [vmem:[%s6838_s2 + $0x460] sm:$0xff]  }
  0xad   : > { %4747 = vmatpush3.bf16.msra.mxu0 %v5106_v52  ;;  %v719_v52 = vrot.slane %v718_v61, 4  ;;  %v5128_v61 = vld [vmem:[%s6838_s2 + $0x3a0] sm:$0xff]  }
  0xae   : > { %2374 = vmatmul.mubr.bf16.gmra.mxu1 %v5597_v15  ;;  %4748 = vmatprep.subr.bf16.mxu0 %v5109_v43  ;;  %v723_v43 = vrot.slane %v721_v19, 5  ;;  %v5131_v19 = vld [vmem:[%s6838_s2 + $0x3d8] sm:$0xff]  }
  0xaf   : > { %2381 = vmatprep.mubr.bf16.mxu1 %v5691_v2  ;;  %4685 = vmatpush3.bf16.msra.mxu1 %v5108_v33  ;;  %v3910_v33 = vcombine.low %v920_v28, %v923_v45  ;;  %v5133_v28 = vld [vmem:[%s6838_s2 + $0x458] sm:$0xff]  }
  0xb0   : > { %2471 = vmatmul.mubr.bf16.gmra.mxu0 %v5842_v22  ;;  %4686 = vmatprep.subr.bf16.mxu1 %v5111_v51  ;;  %v6226_v51 = vld [vmem:[%s5363_s11 + $0x6c] sm:$0xf]  ;;  %v5134_v45 = vld [vmem:[%s6838_s2 + $0x418] sm:$0xff]  }
  0xb1   : > { %2478 = vmatprep.mubr.bf16.mxu0 %v5851_v17  ;;  %4749 = vmatpush3.bf16.msra.mxu0 %v5110_v24  ;;  %v714_v24 = vsel %vm5404_vm4, %v709_v9, %v713_v62  ;;  %v5137_v9 = vld [vmem:[%s6838_s2 + $0x450] sm:$0xff]  }
  0xb2   : > { %4750 = vmatprep.subr.bf16.mxu0 %v5113_v59  ;;  %v724_v59 = vsel %vm5404_vm4, %v719_v52, %v723_v43 }
  0xb3   : > { %4687 = vmatpush3.bf16.msra.mxu1 %v5112_v37  ;;  %v4118_v37 = vrot.slane %v6226_v51, 9  ;;  %v3902_v50 = vcombine.low %v714_v24, %v724_v59  ;;  %v5139_v24 = vld [vmem:[%s6838_s2 + $0x3c8] sm:$0xff]  }
  0xb4   : > { %4800 = vmatprep.subr.bf16.mxu1 %v5115_v3  ;;  %v6235_v3 = vld [vmem:[%s5363_s11 + $0x70] sm:$0xf] }
  0xb5   : > { %4751 = vmatpush3.bf16.msra.mxu0 %v5114_v48  ;;  %v6238_v48 = vld [vmem:[%s5363_s11 + $0x74] sm:$0x1]  ;;  %v2637_v5 = vrot.slane %v6235_v3, 5 }
  0xb6   : > { %2382 = vmatmul.mubr.bf16.gmra.mxu1 %v5678_v18  ;;  %4864 = vmatprep.subr.bf16.mxu0 %v5117_v41  ;;  %v2640_v41 = vrot.slane %v6238_v48, 5 }
  0xb7   : > { %2389 = vmatprep.mubr.bf16.mxu1 %v5443_v63  ;;  %v6248_v13 = vsel %vm5472_vm5, %v4118_v37, %v2637_v5  ;;  %v2639_v42 = vrot.slane %v2637_v5, 4 }
  0xb8   : > { %2479 = vmatmul.mubr.bf16.gmra.mxu0 %v5881_v44 }
  0xb9   : > { %2486 = vmatprep.mubr.bf16.mxu0 %v5895_v49  ;;  %v6258_v30 = vsel %vm5472_vm5, %v2639_v42, %v2640_v41  ;;  %v5138_v41 = vld [vmem:[%s6838_s2 + $0x410] sm:$0xff]  }
  0xba   : > { %v4122_v62 = vcombine.low %v6248_v13, %v6258_v30 }
  0xbe   : > { %2390 = vmatmul.mubr.bf16.gmra.mxu1 %v5451_v1 }
  0xbf   : > { %2397 = vmatprep.mubr.bf16.mxu1 %v5550_v21 }
  0xc0   : > { %2487 = vmatmul.mubr.bf16.gmra.mxu0 %v5928_v16 }
  0xc1   : > { %2494 = vmatprep.mubr.bf16.mxu0 %v5939_v26 }
  0xc6   : > { %2398 = vmatmul.mubr.bf16.gmra.mxu1 %v5541_v10 }
  0xc7   : > { %2405 = vmatprep.mubr.bf16.mxu1 %v5630_v40 }
  0xc8   : > { %2495 = vmatmul.mubr.bf16.gmra.mxu0 %v5973_v4 }
  0xc9   : > { %2502 = vmatprep.mubr.bf16.mxu0 %v5980_v38 }
  0xce   : > { %2406 = vmatmul.mubr.bf16.gmra.mxu1 %v5621_v36 }
  0xcf   : > { %2543 = vmatprep.mubr.bf16.mxu1 %v3910_v33  ;;  %v5136_v33 = vld [vmem:[%s6838_s2 + $0x390] sm:$0xff]  }
  0xd0   : > { %2503 = vmatmul.mubr.bf16.gmra.mxu0 %v6021_v12 }
  0xd1   : > { %3117 = vmatprep.mubr.bf16.mxu0 %v5523_v58  ;;  %v5118_v58 = vld [vmem:[%s6838_s2 + $0x438] sm:$0xff]  }
  0xd6   : > { %2544 = vmatmul.mubr.bf16.vlgmr.msra.gmra.mxu1 %v3902_v50 }
  0xd7   : > { %4801 = vmatpush3.bf16.msra.mxu1 %v5116_v53  ;;  %2551 = vmatprep.mubr.bf16.mxu1 %v5765_v8  ;;  %v5125_v8 = vld [vmem:[%s6838_s2 + $0x468] sm:$0xff]  }
  0xd8   : > { %3118 = vmatmul.mubr.bf16.vlgmr.msra.gmra.mxu0 %v5507_v47  ;;  %4802 = vmatprep.subr.bf16.mxu1 %v5119_v7  ;;  %v5124_v47 = vld [vmem:[%s6838_s2 + $0x3a8] sm:$0xff]   ;;  %v5144_v7 = vld [vmem:[%s6838_s2 + $0x3c0] sm:$0xff]  }
  0xd9   : > { %4865 = vmatpush3.bf16.msra.mxu0 %v5118_v58  ;;  %3125 = vmatprep.mubr.bf16.mxu0 %v5606_v25  ;;  %v5126_v25 = vld [vmem:[%s6838_s2 + $0x428] sm:$0xff]  }
  0xda   : > { %4866 = vmatprep.subr.bf16.mxu0 %v5121_v34 }
  0xdb   : > { %4803 = vmatpush3.bf16.msra.mxu1 %v5120_v0  ;;  %v5142_v0 = vld [vmem:[%s6838_s2 + $0x408] sm:$0xff]  }
  0xdc   : > { %4804 = vmatprep.subr.bf16.mxu1 %v5123_v32  ;;  %v6879_v32 = vld [vmem:[#allocation4_spill] sm:$0xff] }
  0xdd   : > { %4867 = vmatpush3.bf16.msra.mxu0 %v5122_v57 }
  0xde   : > { %2552 = vmatmul.mubr.bf16.gmra.mxu1 %v5782_v54  ;;  %4868 = vmatprep.subr.bf16.mxu0 %v5125_v8  ;;  %v5130_v54 = vld [vmem:[%s6838_s2 + $0x420] sm:$0xff]  }
  0xdf   : > { %2559 = vmatprep.mubr.bf16.mxu1 %v5814_v20  ;;  %4805 = vmatpush3.bf16.msra.mxu1 %v5124_v47  ;;  %v5146_v47 = vld [vmem:[%s6838_s2 + $0x440] sm:$0xff]  }
  0xe0   : > { %3126 = vmatmul.mubr.bf16.gmra.mxu0 %v5597_v15  ;;  %4806 = vmatprep.subr.bf16.mxu1 %v5127_v55  ;;  %v5132_v15 = vld [vmem:[%s6838_s2 + $0x398] sm:$0xff]  }
  0xe1   : > { %3133 = vmatprep.mubr.bf16.mxu0 %v5691_v2  ;;  %4869 = vmatpush3.bf16.msra.mxu0 %v5126_v25  ;;  %v5135_v2 = vld [vmem:[%s6838_s2 + $0x3d0] sm:$0xff]   ;;  %v6880_v55 = vld [vmem:[#allocation5_spill] sm:$0xff]  ;;  %v5145_v25 = vld [vmem:[%s6838_s2 + $0x380] sm:$0xff]  }
  0xe2   : > { %4870 = vmatprep.subr.bf16.mxu0 %v5129_v23 }
  0xe3   : > { %4807 = vmatpush3.bf16.msra.mxu1 %v5128_v61  ;;  %v5147_v61 = vld [vmem:[%s6838_s2 + $0x400] sm:$0xff]  }
  0xe4   : > { %4808 = vmatprep.subr.bf16.mxu1 %v5131_v19 }
  0xe5   : > { %4871 = vmatpush3.bf16.msra.mxu0 %v5130_v54  ;;  %v2609_v54 = vshrl.u32 %v6226_v51, 16 }
  0xe6   : > { %2560 = vmatmul.mubr.bf16.gmra.mxu1 %v5834_v11  ;;  %4872 = vmatprep.subr.bf16.mxu0 %v5133_v28  ;;  %v2612_v28 = vshll.u32 %v6226_v51, 16 }
  0xe7   : > { %2567 = vmatprep.mubr.bf16.mxu1 %v5847_v29  ;;  %4809 = vmatpush3.bf16.msra.mxu1 %v5132_v15  ;;  %v2618_v15 = vshll.u32 %v6235_v3, 16 }
  0xe8   : > { %3134 = vmatmul.mubr.bf16.gmra.mxu0 %v5678_v18  ;;  %4810 = vmatprep.subr.bf16.mxu1 %v5135_v2  ;;  %v5141_v18 = vld [vmem:[%s6838_s2 + $0x448] sm:$0xff]   ;;  %v2622_v2 = vshrl.u32 %v6235_v3, 16 }
  0xe9   : > { %3141 = vmatprep.mubr.bf16.mxu0 %v5443_v63  ;;  %4873 = vmatpush3.bf16.msra.mxu0 %v5134_v45  ;;  %v5140_v63 = vld [vmem:[%s6838_s2 + $0x388] sm:$0xff]  }
  0xea   : > { %4874 = vmatprep.subr.bf16.mxu0 %v5137_v9  ;;  %v6881_v9 = vld [vmem:[#allocation6_spill] sm:$0xff] }
  0xeb   : > { %4811 = vmatpush3.bf16.msra.mxu1 %v5136_v33  ;;  %v2611_v33 = vrot.slane %v2609_v54, 4  ;;  %v6884_v54 = vld [vmem:[#allocation3_spill] sm:$0xff] }
  0xec   : > { %4812 = vmatprep.subr.bf16.mxu1 %v5139_v24  ;;  %v2614_v24 = vrot.slane %v2612_v28, 5 }
  0xed   : > { %4875 = vmatpush3.bf16.msra.mxu0 %v5138_v41  ;;  %v6882_v41 = vld [vmem:[#allocation7_spill] sm:$0xff] }
  0xee   : > { %2568 = vmatmul.mubr.bf16.gmra.mxu1 %v6879_v32  ;;  %4876 = vmatprep.subr.bf16.mxu0 %v5141_v18 }
  0xef   : > { %v4368_v52 = vpop.f32.mrf.mxu0  ;;  %v4392_v43 = vpop.f32.mrf.mxu1  ;;  %2575 = vmatprep.mubr.bf16.mxu1 %v6880_v55  ;;  %4813 = vmatpush3.bf16.msra.mxu1 %v5140_v63 }
  0xf0   : > { %3142 = vmatmul.mubr.bf16.gmra.mxu0 %v5451_v1  ;;  %4814 = vmatprep.subr.bf16.mxu1 %v5144_v7  ;;  %v2615_v7 = vor.u32 %v2614_v24, %v2611_v33  ;;  %v6885_v24 = vld [vmem:[#allocation9_spill] sm:$0xff] }
  0xf1   : > { %v4369_v59 = vpop.f32.mrf.mxu0  ;;  %v4393_v37 = vpop.f32.mrf.mxu1  ;;  %3149 = vmatprep.mubr.bf16.mxu0 %v5550_v21  ;;  %4877 = vmatpush3.bf16.msra.mxu0 %v5142_v0 }
  0xf2   : > { %v6333_v5 = vadd.f32 %v4369_v59, %v4368_v52  ;;  %v6335_v50 = vadd.f32 %v4393_v37, %v4392_v43  ;;  %4878 = vmatprep.subr.bf16.mxu0 %v5146_v47  ;;  %v2620_v59 = vrot.slane %v2618_v15, 5  ;;  %v2624_v37 = vrot.slane %v2622_v2, 4 }
  0xf3   : > { %v4371_v53 = vpop.f32.mrf.mxu0  ;;  %v4395_v42 = vpop.f32.mrf.mxu1  ;;  %4815 = vmatpush3.bf16.msra.mxu1 %v5145_v25  ;;  %v2616_v25 = vrot.slane %v2615_v7, 4 }
  0xf5   : > { %v4372_v58 = vpop.f32.mrf.mxu0  ;;  %v4396_v34 = vpop.f32.mrf.mxu1  ;;  %4879 = vmatpush3.bf16.msra.mxu0 %v5147_v61 }
  0xf6   : > { %v6350_v57 = vadd.f32 %v4372_v58, %v4371_v53  ;;  %v6352_v8 = vadd.f32 %v4396_v34, %v4395_v42  ;;  %2576 = vmatmul.mubr.bf16.gmra.mxu1 %v6881_v9  ;;  %v2625_v58 = vor.u32 %v2624_v37, %v2620_v59  ;;  %v2628_v34 = vshll.u32 %v6238_v48, 16 }
  0xf7   : > { %v4374_v23 = vpop.f32.mrf.mxu0  ;;  %v4398_v45 = vpop.f32.mrf.mxu1  ;;  %2583 = vmatprep.mubr.bf16.mxu1 %v6882_v41  ;;  %v2621_v48 = vsel %vm5404_vm4, %v2616_v25, %v2620_v59  ;;  %v6888_v25 = vld [vmem:[#allocation12_spill] sm:$0xff] }
  0xf8   : > { %3150 = vmatmul.mubr.bf16.gmra.mxu0 %v5541_v10  ;;  %v2630_v61 = vrot.slane %v2628_v34, 5 }
  0xf9   : > { %v4375_v19 = vpop.f32.mrf.mxu0  ;;  %v4399_v52 = vpop.f32.mrf.mxu1  ;;  %3157 = vmatprep.mubr.bf16.mxu0 %v5630_v40 }
  0xfa   : > { %v6370_v1 = vadd.f32 %v4375_v19, %v4374_v23  ;;  %v6374_v18 = vadd.f32 %v4399_v52, %v4398_v45  ;;  %v2626_v23 = vrot.slane %v2625_v58, 4  ;;  %v6883_v19 = vld [vmem:[#allocation8_spill] sm:$0xff]  ;;  %v4120_v58 = vcombine.low %v6226_v51, %v6235_v3 }
  0xfb   : > { %v4377_v21 = vpop.f32.mrf.mxu0  ;;  %v4401_v42 = vpop.f32.mrf.mxu1 }
  0xfc   : > { %v2631_v2 = vsel %vm5404_vm4, %v2626_v23, %v2630_v61 }
  0xfd   : > { %v4378_v43 = vpop.f32.mrf.mxu0  ;;  %v4402_v63 = vpop.f32.mrf.mxu1 }
  0xfe   : > { %v6376_v53 = vadd.f32 %v4378_v43, %v4377_v21  ;;  %v6381_v0 = vadd.f32 %v4402_v63, %v4401_v42  ;;  %2584 = vmatmul.mubr.bf16.gmra.mxu1 %v5965_v46  ;;  %v6886_v42 = vld [vmem:[#allocation10_spill] sm:$0xff] }
  0xff   : > { %v4380_v47 = vpop.f32.mrf.mxu0  ;;  %2591 = vmatprep.mubr.bf16.mxu1 %v6883_v19  ;;  %v6887_v63 = vld [vmem:[#allocation2_spill] sm:$0xff] }
 0x100   : > { %3158 = vmatmul.mubr.bf16.gmra.mxu0 %v5621_v36  ;;  %v4121_v36 = vcombine.low %v2621_v48, %v2631_v2 }
 0x101   : > { %v4381_v10 = vpop.f32.mrf.mxu0  ;;  %3165 = vmatprep.mubr.bf16.mxu0 %v6884_v54 }
 0x102   : > { %v6387_v28 = vadd.f32 %v4381_v10, %v4380_v47 }
 0x103   : > { %v4383_v15 = vpop.f32.mrf.mxu0 }
 0x105   : > { %v4404_v40 = vpop.f32.mrf.mxu1  ;;  %v4384_v52 = vpop.f32.mrf.mxu0 }
 0x106   : > { %v6395_v33 = vadd.f32 %v4384_v52, %v4383_v15  ;;  %2592 = vmatmul.mubr.bf16.gmra.mxu1 %v6885_v24 }
 0x107   : > { %v4405_v45 = vpop.f32.mrf.mxu1  ;;  %2599 = vmatprep.mubr.bf16.mxu1 %v6886_v42 }
 0x108   : > { %v6393_v21 = vadd.f32 %v4405_v45, %v4404_v40  ;;  %3166 = vmatmul.mubr.bf16.gmra.mxu0 %v6887_v63 }
 0x109   : > { %v4407_v43 = vpop.f32.mrf.mxu1  ;;  %3173 = vmatprep.mubr.bf16.mxu0 %v4121_v36 }
 0x10b   : > { %v4408_v37 = vpop.f32.mrf.mxu1 }
 0x10c   : > { %v6400_v7 = vadd.f32 %v4408_v37, %v4407_v43  ;;  %v4386_v59 = vpop.f32.mrf.mxu0 }
 0x10e   : > { %v4387_v34 = vpop.f32.mrf.mxu0  ;;  %v4410_v47 = vpop.f32.mrf.mxu1  ;;  %2600 = vmatmul.mubr.bf16.gmra.mxu1 %v6888_v25 }
 0x10f   : > { %v6405_v23 = vadd.f32 %v4387_v34, %v4386_v59  ;;  %3214 = vmatprep.mubr.bf16.mxu1 %v5773_v56 }
 0x110   : > { %v4389_v61 = vpop.f32.mrf.mxu0  ;;  %3174 = vmatmul.mubr.bf16.gmra.mxu0 %v4120_v58  ;;  %v4411_v10 = vpop.f32.mrf.mxu1 }
 0x111   : > { %v6408_v54 = vadd.f32 %v4411_v10, %v4410_v47  ;;  %3311 = vmatprep.mubr.bf16.mxu0 %v5814_v20 }
 0x112   : > { %v4390_v40 = vpop.f32.mrf.mxu0  ;;  %v4413_v15 = vpop.f32.mrf.mxu1 }
 0x113   : > { %v6411_v48 = vadd.f32 %v4390_v40, %v4389_v61 }
 0x114   : > { %v4414_v51 = vpop.f32.mrf.mxu1 }
 0x115   : > { %v6413_v3 = vadd.f32 %v4414_v51, %v4413_v15  ;;  %v4496_v45 = vpop.f32.mrf.mxu0 }
 0x116   : > { %v4432_v2 = vpop.f32.mrf.mxu1  ;;  %3215 = vmatmul.mubr.bf16.vlgmr.msra.gmra.mxu1 %v5794_v27 }
 0x117   : > { %3222 = vmatprep.mubr.bf16.mxu1 %v5818_v6  ;;  %v4497_v43 = vpop.f32.mrf.mxu0 }
 0x118   : > { %3312 = vmatmul.mubr.bf16.vlgmr.msra.gmra.mxu0 %v5834_v11  ;;  %v4433_v56 = vpop.f32.mrf.mxu1  ;;  %v4498_v20 = vadd.f32 %v4497_v43, %v4496_v45 }
 0x119   : > { %v4434_v52 = vadd.f32 %v4433_v56, %v4432_v2  ;;  %3319 = vmatprep.mubr.bf16.mxu0 %v5847_v29  ;;  %v4499_v63 = vpop.f32.mrf.mxu0 }
 0x11a   : > { %v4435_v36 = vpop.f32.mrf.mxu1 }
 0x11b   : > { %v1870_v37 = vadd.f32 %v4434_v52, %v6333_v5  ;;  %v4500_v27 = vpop.f32.mrf.mxu0 }
 0x11c   : > { %v4436_v59 = vpop.f32.mrf.mxu1  ;;  %v4501_v47 = vadd.f32 %v4500_v27, %v4499_v63 }
 0x11d   : > { %v6420_v58 = vadd.f32 %v4498_v20, %v1870_v37  ;;  %v4437_v34 = vadd.f32 %v4436_v59, %v4435_v36 }
 0x11e   : > { %v4438_v61 = vpop.f32.mrf.mxu1  ;;  %3223 = vmatmul.mubr.bf16.gmra.mxu1 %v5842_v22  ;;  %v4502_v11 = vpop.f32.mrf.mxu0 }
 0x11f   : > { %v1873_v6 = vadd.f32 %v4437_v34, %v6350_v57  ;;  %3230 = vmatprep.mubr.bf16.mxu1 %v5851_v17 }
 0x120   : > { %3320 = vmatmul.mubr.bf16.gmra.mxu0 %v6879_v32  ;;  %v4439_v29 = vpop.f32.mrf.mxu1  ;;  %v4503_v40 = vpop.f32.mrf.mxu0 }
 0x121   : > { %v6426_v10 = vadd.f32 %v4501_v47, %v1873_v6  ;;  %v4440_v5 = vadd.f32 %v4439_v29, %v4438_v61  ;;  %3327 = vmatprep.mubr.bf16.mxu0 %v6880_v55  ;;  %v4504_v2 = vadd.f32 %v4503_v40, %v4502_v11 }
 0x122   : > { %v4441_v15 = vpop.f32.mrf.mxu1  ;;  %v4505_v45 = vpop.f32.mrf.mxu0 }
 0x123   : > { %v1878_v51 = vadd.f32 %v4440_v5, %v6370_v1 }
 0x124   : > { %v4442_v22 = vpop.f32.mrf.mxu1  ;;  %v4506_v17 = vpop.f32.mrf.mxu0 }
 0x125   : > { %v6430_v56 = vadd.f32 %v4504_v2, %v1878_v51  ;;  %v4443_v57 = vadd.f32 %v4442_v22, %v4441_v15  ;;  %v4507_v43 = vadd.f32 %v4506_v17, %v4505_v45  ;;  %v6453_v45 = vld [vmem:[%s5688_s16 + $0x6c] sm:$0xf] }
 0x126   : > { %v4444_v52 = vpop.f32.mrf.mxu1  ;;  %3231 = vmatmul.mubr.bf16.gmra.mxu1 %v5881_v44  ;;  %v4508_v55 = vpop.f32.mrf.mxu0 }
 0x127   : > { %v1881_v32 = vadd.f32 %v4443_v57, %v6376_v53  ;;  %3238 = vmatprep.mubr.bf16.mxu1 %v5895_v49  ;;  %v6457_v57 = vld [vmem:[%s5688_s16 + $0x70] sm:$0xf] }
 0x128   : > { %3328 = vmatmul.mubr.bf16.gmra.mxu0 %v6881_v9  ;;  %v4445_v20 = vpop.f32.mrf.mxu1  ;;  %v4509_v37 = vpop.f32.mrf.mxu0 }
 0x129   : > { %v6436_v1 = vadd.f32 %v4507_v43, %v1881_v32  ;;  %v4446_v36 = vadd.f32 %v4445_v20, %v4444_v52  ;;  %3335 = vmatprep.mubr.bf16.mxu0 %v6882_v41  ;;  %v4510_v34 = vadd.f32 %v4509_v37, %v4508_v55  ;;  %v2643_v32 = vshrl.u32 %v6453_v45, 16 }
 0x12a   : > { %v4447_v63 = vpop.f32.mrf.mxu1  ;;  %v4511_v44 = vpop.f32.mrf.mxu0  ;;  %v2646_v43 = vshll.u32 %v6453_v45, 16  ;;  %v2671_v37 = vrot.slane %v6457_v57, 5 }
 0x12b   : > { %v1886_v59 = vadd.f32 %v4446_v36, %v6387_v28 }
 0x12c   : > { %v4448_v27 = vpop.f32.mrf.mxu1  ;;  %v4512_v49 = vpop.f32.mrf.mxu0 }
 0x12d   : > { %v6440_v53 = vadd.f32 %v4510_v34, %v1886_v59  ;;  %v4449_v47 = vadd.f32 %v4448_v27, %v4447_v63  ;;  %v4513_v6 = vadd.f32 %v4512_v49, %v4511_v44  ;;  %v422_v59 = vld [vmem:[%s5688_s16 + $0x74] sm:$0x1]  ;;  %v2645_v27 = vrot.slane %v2643_v32, 4 }
 0x12e   : > { %v4450_v61 = vpop.f32.mrf.mxu1  ;;  %3239 = vmatmul.mubr.bf16.gmra.mxu1 %v5928_v16  ;;  %v4514_v41 = vpop.f32.mrf.mxu0  ;;  %v4123_v32 = vcombine.low %v6453_v45, %v6457_v57 }
 0x12f   : > { %v1889_v9 = vadd.f32 %v4449_v47, %v6395_v33  ;;  %3246 = vmatprep.mubr.bf16.mxu1 %v5939_v26  ;;  %v2648_v47 = vrot.slane %v2646_v43, 5 }
 0x130   : > { %3336 = vmatmul.mubr.bf16.gmra.mxu0 %v5965_v46  ;;  %v4451_v28 = vpop.f32.mrf.mxu1  ;;  %v4515_v5 = vpop.f32.mrf.mxu0 }
 0x131   : > { %v6446_v11 = vadd.f32 %v4513_v6, %v1889_v9  ;;  %v4452_v29 = vadd.f32 %v4451_v28, %v4450_v61  ;;  %3343 = vmatprep.mubr.bf16.mxu0 %v6883_v19  ;;  %v4516_v15 = vadd.f32 %v4515_v5, %v4514_v41  ;;  %v4119_v28 = vrot.slane %v6453_v45, 9 }
 0x132   : > { %v4453_v40 = vpop.f32.mrf.mxu1  ;;  %v4517_v33 = vpop.f32.mrf.mxu0  ;;  %v2674_v5 = vrot.slane %v422_v59, 5 }
 0x133   : > { %v1894_v16 = vadd.f32 %v4452_v29, %v6405_v23  ;;  %v2673_v29 = vrot.slane %v2671_v37, 4 }
 0x134   : > { %v4454_v51 = vpop.f32.mrf.mxu1  ;;  %v4518_v46 = vpop.f32.mrf.mxu0 }
 0x135   : > { %v6450_v2 = vadd.f32 %v4516_v15, %v1894_v16  ;;  %v4455_v26 = vadd.f32 %v4454_v51, %v4453_v40  ;;  %v4519_v17 = vadd.f32 %v4518_v46, %v4517_v33  ;;  %v6889_v16 = vld [vmem:[#allocation11_spill] sm:$0xff]  ;;  %v2662_v51 = vshll.u32 %v422_v59, 16 }
 0x136   : > { %v4456_v22 = vpop.f32.mrf.mxu1  ;;  %3247 = vmatmul.mubr.bf16.gmra.mxu1 %v5973_v4  ;;  %v4520_v23 = vpop.f32.mrf.mxu0  ;;  %v2652_v4 = vshll.u32 %v6457_v57, 16 }
 0x137   : > { %v1897_v19 = vadd.f32 %v4455_v26, %v6411_v48  ;;  %3254 = vmatprep.mubr.bf16.mxu1 %v5980_v38  ;;  %v2656_v48 = vshrl.u32 %v6457_v57, 16  ;;  %v2649_v26 = vor.u32 %v2648_v47, %v2645_v27 }
 0x138   : > { %3344 = vmatmul.mubr.bf16.gmra.mxu0 %v6885_v24  ;;  %v4457_v52 = vpop.f32.mrf.mxu1  ;;  %v4521_v36 = vpop.f32.mrf.mxu0 }
 0x139   : > { %v6464_v55 = vadd.f32 %v4519_v17, %v1897_v19  ;;  %v4458_v20 = vadd.f32 %v4457_v52, %v4456_v22  ;;  %3351 = vmatprep.mubr.bf16.mxu0 %v6886_v42  ;;  %v4522_v63 = vadd.f32 %v4521_v36, %v4520_v23  ;;  %v2654_v42 = vrot.slane %v2652_v4, 5 }
 0x13a   : > { %v4459_v38 = vpop.f32.mrf.mxu1  ;;  %v4523_v34 = vpop.f32.mrf.mxu0  ;;  %v2658_v9 = vrot.slane %v2656_v48, 4  ;;  %v2675_v23 = vsel %vm5472_vm5, %v2673_v29, %v2674_v5  ;;  %v2664_v4 = vrot.slane %v2662_v51, 5  ;;  %v2650_v48 = vrot.slane %v2649_v26, 4 }
 0x13b   : > { %v1902_v24 = vadd.f32 %v4458_v20, %v6335_v50 }
 0x13c   : > { %v4460_v44 = vpop.f32.mrf.mxu1  ;;  %v4524_v6 = vpop.f32.mrf.mxu0 }
 0x13d   : > { %v6472_v49 = vadd.f32 %v4522_v63, %v1902_v24  ;;  %v4461_v61 = vadd.f32 %v4460_v44, %v4459_v38  ;;  %v4525_v40 = vadd.f32 %v4524_v6, %v4523_v34  ;;  %v2655_v44 = vsel %vm5404_vm4, %v2650_v48, %v2654_v42 }
 0x13e   : > { %v4462_v41 = vpop.f32.mrf.mxu1  ;;  %3255 = vmatmul.mubr.bf16.gmra.mxu1 %v6021_v12  ;;  %v4526_v15 = vpop.f32.mrf.mxu0  ;;  %v2659_v12 = vor.u32 %v2658_v9, %v2654_v42 }
 0x13f   : > { %v1905_v50 = vadd.f32 %v4461_v61, %v6352_v8  ;;  %3262 = vmatprep.mubr.bf16.mxu1 %v6889_v16  ;;  %v2672_v8 = vsel %vm5472_vm5, %v4119_v28, %v2671_v37 }
 0x140   : > { %3352 = vmatmul.mubr.bf16.gmra.mxu0 %v6888_v25  ;;  %v4463_v33 = vpop.f32.mrf.mxu1  ;;  %v4527_v19 = vpop.f32.mrf.mxu0  ;;  %v4125_v38 = vcombine.low %v2672_v8, %v2675_v23  ;;  %v2660_v24 = vrot.slane %v2659_v12, 4 }
 0x141   : > { %v6479_v46 = vadd.f32 %v4525_v40, %v1905_v50  ;;  %v4464_v22 = vadd.f32 %v4463_v33, %v4462_v41  ;;  %3359 = vmatprep.mubr.bf16.mxu0 %v6054_v60  ;;  %v4528_v25 = vadd.f32 %v4527_v19, %v4526_v15 }
 0x142   : > { %v4465_v17 = vpop.f32.mrf.mxu1  ;;  %v4529_v43 = vpop.f32.mrf.mxu0  ;;  %v2665_v27 = vsel %vm5404_vm4, %v2660_v24, %v2664_v4 }
 0x143   : > { %v1910_v52 = vadd.f32 %v4464_v22, %v6374_v18  ;;  %v4124_v41 = vcombine.low %v2655_v44, %v2665_v27 }
 0x144   : > { %v4466_v20 = vpop.f32.mrf.mxu1  ;;  %v4530_v63 = vpop.f32.mrf.mxu0 }
 0x145   : > { %v6489_v60 = vadd.f32 %v4528_v25, %v1910_v52  ;;  %v4467_v36 = vadd.f32 %v4466_v20, %v4465_v17  ;;  %v4531_v18 = vadd.f32 %v4530_v63, %v4529_v43 }
 0x146   : > { %v4468_v37 = vpop.f32.mrf.mxu1  ;;  %3263 = vmatmul.mubr.bf16.gmra.mxu1 %v6060_v39  ;;  %v4532_v59 = vpop.f32.mrf.mxu0 }
 0x147   : > { %v1913_v14 = vadd.f32 %v4467_v36, %v6381_v0  ;;  %3270 = vmatprep.mubr.bf16.mxu1 %v4123_v32 }
 0x148   : > { %3360 = vmatmul.mubr.bf16.gmra.mxu0 %v6077_v31  ;;  %v4469_v45 = vpop.f32.mrf.mxu1  ;;  %v4533_v47 = vpop.f32.mrf.mxu0 }
 0x149   : > { %v6494_v57 = vadd.f32 %v4531_v18, %v1913_v14  ;;  %v4470_v34 = vadd.f32 %v4469_v45, %v4468_v37  ;;  %3367 = vmatprep.mubr.bf16.mxu0 %v4125_v38  ;;  %v4534_v61 = vadd.f32 %v4533_v47, %v4532_v59 }
 0x14a   : > { %v4471_v39 = vpop.f32.mrf.mxu1  ;;  %v4535_v9 = vpop.f32.mrf.mxu0 }
 0x14b   : > { %v1918_v0 = vadd.f32 %v4470_v34, %v6393_v21 }
 0x14c   : > { %v4472_v6 = vpop.f32.mrf.mxu1  ;;  %v4536_v29 = vpop.f32.mrf.mxu0 }
 0x14d   : > { %v6501_v31 = vadd.f32 %v4534_v61, %v1918_v0  ;;  %v4473_v28 = vadd.f32 %v4472_v6, %v4471_v39  ;;  %v4537_v42 = vadd.f32 %v4536_v29, %v4535_v9 }
 0x14e   : > { %v4474_v5 = vpop.f32.mrf.mxu1  ;;  %3271 = vmatmul.mubr.bf16.gmra.mxu1 %v4122_v62  ;;  %v4538_v50 = vpop.f32.mrf.mxu0 }
 0x14f   : > { %v1921_v35 = vadd.f32 %v4473_v28, %v6400_v7 }
 0x150   : > { %3368 = vmatmul.mubr.bf16.gmra.mxu0 %v4124_v41  ;;  %v4475_v40 = vpop.f32.mrf.mxu1  ;;  %v4539_v15 = vpop.f32.mrf.mxu0 }
 0x151   : > { %v6507_v21 = vadd.f32 %v4537_v42, %v1921_v35  ;;  %v4476_v16 = vadd.f32 %v4475_v40, %v4474_v5  ;;  %v4540_v26 = vadd.f32 %v4539_v15, %v4538_v50 }
 0x152   : > { %v4477_v33 = vpop.f32.mrf.mxu1  ;;  %v4541_v22 = vpop.f32.mrf.mxu0 }
 0x153   : > { %v1926_v51 = vadd.f32 %v4476_v16, %v6408_v54 }
 0x154   : > { %v4478_v12 = vpop.f32.mrf.mxu1  ;;  %v4542_v30 = vpop.f32.mrf.mxu0 }
 0x155   : > { %v6510_v19 = vadd.f32 %v4540_v26, %v1926_v51  ;;  %v4479_v13 = vadd.f32 %v4478_v12, %v4477_v33  ;;  %v4543_v17 = vadd.f32 %v4542_v30, %v4541_v22 }
 0x156   : > { %v4560_v62 = vpop.f32.mrf.mxu1  ;;  %v4624_v8 = vpop.f32.mrf.mxu0 }
 0x157   : > { %v1929_v7 = vadd.f32 %v4479_v13, %v6413_v3 }
 0x158   : > { %v4561_v23 = vpop.f32.mrf.mxu1  ;;  %v4625_v32 = vpop.f32.mrf.mxu0 }
 0x159   : > { %v6513_v52 = vadd.f32 %v4543_v17, %v1929_v7  ;;  %v4562_v25 = vadd.f32 %v4561_v23, %v4560_v62  ;;  %v4626_v20 = vadd.f32 %v4625_v32, %v4624_v8 }
 0x15a   : > { %v4563_v43 = vpop.f32.mrf.mxu1  ;;  %v4627_v4 = vpop.f32.mrf.mxu0 }
 0x15b   : > { %v2352_v54 = vadd.f32 %v4562_v25, %v6420_v58 }
 0x15c   : > { %v4564_v48 = vpop.f32.mrf.mxu1  ;;  %v4628_v24 = vpop.f32.mrf.mxu0 }
 0x15d   : > { %v6516_v36 = vadd.f32 %v4626_v20, %v2352_v54  ;;  %v4565_v38 = vadd.f32 %v4564_v48, %v4563_v43  ;;  %v4629_v37 = vadd.f32 %v4628_v24, %v4627_v4 }
 0x15e   : > { %v4566_v63 = vpop.f32.mrf.mxu1  ;;  %v4630_v14 = vpop.f32.mrf.mxu0 }
 0x15f   : > { %v2355_v3 = vadd.f32 %v4565_v38, %v6426_v10 }
 0x160   : > { %v4567_v18 = vpop.f32.mrf.mxu1  ;;  %v4631_v34 = vpop.f32.mrf.mxu0 }
 0x161   : > { %v6519_v59 = vadd.f32 %v4629_v37, %v2355_v3  ;;  %v4568_v45 = vadd.f32 %v4567_v18, %v4566_v63  ;;  %v4632_v27 = vadd.f32 %v4631_v34, %v4630_v14 }
 0x162   : > { %v4569_v44 = vpop.f32.mrf.mxu1  ;;  %v4633_v47 = vpop.f32.mrf.mxu0 }
 0x163   : > { %v2360_v58 = vadd.f32 %v4568_v45, %v6430_v56 }
 0x164   : > { %v4570_v39 = vpop.f32.mrf.mxu1  ;;  %v4634_v9 = vpop.f32.mrf.mxu0 }
 0x165   : > { %v6522_v0 = vadd.f32 %v4632_v27, %v2360_v58  ;;  %v4571_v61 = vadd.f32 %v4570_v39, %v4569_v44  ;;  %v4635_v41 = vadd.f32 %v4634_v9, %v4633_v47 }
 0x166   : > { %v4572_v6 = vpop.f32.mrf.mxu1 }
 0x167   : > { %v2363_v10 = vadd.f32 %v4571_v61, %v6436_v1 }
 0x168   : > { %v4636_v28 = vpop.f32.mrf.mxu0  ;;  %v4573_v29 = vpop.f32.mrf.mxu1 }
 0x169   : > { %v6525_v5 = vadd.f32 %v4635_v41, %v2363_v10  ;;  %v4574_v35 = vadd.f32 %v4573_v29, %v4572_v6 }
 0x16a   : > { %v4637_v42 = vpop.f32.mrf.mxu0  ;;  %v4575_v50 = vpop.f32.mrf.mxu1 }
 0x16b   : > { %v2368_v56 = vadd.f32 %v4574_v35, %v6440_v53  ;;  %v4638_v40 = vadd.f32 %v4637_v42, %v4636_v28 }
 0x16c   : > { %v4639_v16 = vpop.f32.mrf.mxu0  ;;  %v4576_v15 = vpop.f32.mrf.mxu1 }
 0x16d   : > { %v6528_v33 = vadd.f32 %v4638_v40, %v2368_v56  ;;  %v4577_v51 = vadd.f32 %v4576_v15, %v4575_v50 }
 0x16e   : > { %v4640_v26 = vpop.f32.mrf.mxu0  ;;  %v4578_v22 = vpop.f32.mrf.mxu1 }
 0x16f   : > { %v2371_v1 = vadd.f32 %v4577_v51, %v6446_v11  ;;  %v4641_v12 = vadd.f32 %v4640_v26, %v4639_v16 }
 0x170   : > { %v4642_v13 = vpop.f32.mrf.mxu0  ;;  %v4579_v30 = vpop.f32.mrf.mxu1 }
 0x171   : > { %v6531_v62 = vadd.f32 %v4641_v12, %v2371_v1  ;;  %v4580_v7 = vadd.f32 %v4579_v30, %v4578_v22 }
 0x172   : > { %v4643_v17 = vpop.f32.mrf.mxu0  ;;  %v4581_v8 = vpop.f32.mrf.mxu1 }
 0x173   : > { %v2376_v53 = vadd.f32 %v4580_v7, %v6450_v2  ;;  %v4644_v23 = vadd.f32 %v4643_v17, %v4642_v13 }
 0x174   : > { %v4645_v25 = vpop.f32.mrf.mxu0  ;;  %v4582_v32 = vpop.f32.mrf.mxu1 }
 0x175   : > { %v6534_v43 = vadd.f32 %v4644_v23, %v2376_v53  ;;  %v4583_v54 = vadd.f32 %v4582_v32, %v4581_v8 }
 0x176   : > { %v4646_v20 = vpop.f32.mrf.mxu0  ;;  %v4584_v4 = vpop.f32.mrf.mxu1 }
 0x177   : > { %v2379_v11 = vadd.f32 %v4583_v54, %v6464_v55  ;;  %v4647_v48 = vadd.f32 %v4646_v20, %v4645_v25 }
 0x178   : > { %v4648_v38 = vpop.f32.mrf.mxu0  ;;  %v4585_v24 = vpop.f32.mrf.mxu1 }
 0x179   : > { %v6537_v63 = vadd.f32 %v4647_v48, %v2379_v11  ;;  %v4586_v3 = vadd.f32 %v4585_v24, %v4584_v4 }
 0x17a   : > { %v4649_v37 = vpop.f32.mrf.mxu0  ;;  %v4587_v14 = vpop.f32.mrf.mxu1 }
 0x17b   : > { %v2384_v2 = vadd.f32 %v4586_v3, %v6472_v49  ;;  %v4650_v18 = vadd.f32 %v4649_v37, %v4648_v38 }
 0x17c   : > { %v4651_v45 = vpop.f32.mrf.mxu0  ;;  %v4588_v34 = vpop.f32.mrf.mxu1 }
 0x17d   : > { %v6540_v44 = vadd.f32 %v4650_v18, %v2384_v2  ;;  %v4589_v58 = vadd.f32 %v4588_v34, %v4587_v14 }
 0x17e   : > { %v4652_v27 = vpop.f32.mrf.mxu0  ;;  %v4590_v47 = vpop.f32.mrf.mxu1 }
 0x17f   : > { %v2387_v55 = vadd.f32 %v4589_v58, %v6479_v46  ;;  %v4653_v39 = vadd.f32 %v4652_v27, %v4651_v45 }
 0x180   : > { %v4654_v61 = vpop.f32.mrf.mxu0  ;;  %v4591_v9 = vpop.f32.mrf.mxu1 }
 0x181   : > { %v6543_v6 = vadd.f32 %v4653_v39, %v2387_v55  ;;  %v4592_v10 = vadd.f32 %v4591_v9, %v4590_v47 }
 0x182   : > { %v4655_v41 = vpop.f32.mrf.mxu0  ;;  %v4593_v28 = vpop.f32.mrf.mxu1 }
 0x183   : > { %v2392_v49 = vadd.f32 %v4592_v10, %v6489_v60  ;;  %v4656_v29 = vadd.f32 %v4655_v41, %v4654_v61 }
 0x184   : > { %v4657_v35 = vpop.f32.mrf.mxu0  ;;  %v4594_v42 = vpop.f32.mrf.mxu1 }
 0x185   : > { %v6546_v50 = vadd.f32 %v4656_v29, %v2392_v49  ;;  %v4595_v56 = vadd.f32 %v4594_v42, %v4593_v28 }
 0x186   : > { %v4658_v40 = vpop.f32.mrf.mxu0  ;;  %v4596_v16 = vpop.f32.mrf.mxu1 }
 0x187   : > { %v2395_v46 = vadd.f32 %v4595_v56, %v6494_v57  ;;  %v4659_v15 = vadd.f32 %v4658_v40, %v4657_v35 }
 0x188   : > { %v4660_v51 = vpop.f32.mrf.mxu0  ;;  %v4597_v26 = vpop.f32.mrf.mxu1 }
 0x189   : > { %v6549_v22 = vadd.f32 %v4659_v15, %v2395_v46  ;;  %v4598_v1 = vadd.f32 %v4597_v26, %v4596_v16 }
 0x18a   : > { %v4661_v12 = vpop.f32.mrf.mxu0  ;;  %v4599_v13 = vpop.f32.mrf.mxu1 }
 0x18b   : > { %v2400_v60 = vadd.f32 %v4598_v1, %v6501_v31  ;;  %v4662_v30 = vadd.f32 %v4661_v12, %v4660_v51 }
 0x18c   : > { %v4663_v7 = vpop.f32.mrf.mxu0  ;;  %v4600_v17 = vpop.f32.mrf.mxu1 }
 0x18d   : > { %v6552_v8 = vadd.f32 %v4662_v30, %v2400_v60  ;;  %v4601_v53 = vadd.f32 %v4600_v17, %v4599_v13 }
 0x18e   : > { %v4664_v23 = vpop.f32.mrf.mxu0  ;;  %v4602_v25 = vpop.f32.mrf.mxu1 }
 0x18f   : > { %v2403_v57 = vadd.f32 %v4601_v53, %v6507_v21  ;;  %v4665_v32 = vadd.f32 %v4664_v23, %v4663_v7 }
 0x190   : > { %v4666_v54 = vpop.f32.mrf.mxu0  ;;  %v4603_v20 = vpop.f32.mrf.mxu1 }
 0x191   : > { %v6555_v4 = vadd.f32 %v4665_v32, %v2403_v57  ;;  %v4604_v11 = vadd.f32 %v4603_v20, %v4602_v25 }
 0x192   : > { %v4667_v48 = vpop.f32.mrf.mxu0  ;;  %v4605_v38 = vpop.f32.mrf.mxu1 }
 0x193   : > { %v2408_v31 = vadd.f32 %v4604_v11, %v6510_v19  ;;  %v4668_v24 = vadd.f32 %v4667_v48, %v4666_v54 }
 0x194   : > { %v4669_v3 = vpop.f32.mrf.mxu0  ;;  %v4606_v37 = vpop.f32.mrf.mxu1 }
 0x195   : > { %v6558_v14 = vadd.f32 %v4668_v24, %v2408_v31  ;;  %v4607_v2 = vadd.f32 %v4606_v37, %v4605_v38 }
 0x196   : > { %v4670_v18 = vpop.f32.mrf.mxu0  ;;  %v4688_v45 = vpop.f32.mrf.mxu1 }
 0x197   : > { %v2411_v21 = vadd.f32 %v4607_v2, %v6513_v52  ;;  %v4671_v34 = vadd.f32 %v4670_v18, %v4669_v3 }
 0x198   : > { %v4752_v58 = vpop.f32.mrf.mxu0  ;;  %v4689_v27 = vpop.f32.mrf.mxu1 }
 0x199   : > { %v6561_v47 = vadd.f32 %v4671_v34, %v2411_v21  ;;  %v4690_v55 = vadd.f32 %v4689_v27, %v4688_v45 }
 0x19a   : > { %v4753_v39 = vpop.f32.mrf.mxu0  ;;  %v4691_v61 = vpop.f32.mrf.mxu1 }
 0x19b   : > { %v6564_v19 = vadd.f32 %v4690_v55, %v6516_v36  ;;  %v6566_v9 = vadd.f32 %v4753_v39, %v4752_v58 }
 0x19c   : > { %v6568_v10 = vpop.f32.mrf.mxu0  ;;  %v4692_v41 = vpop.f32.mrf.mxu1 }
 0x19d   : > { %v4693_v28 = vadd.f32 %v4692_v41, %v4691_v61 }
 0x19e   : > { %v6570_v49 = vpop.f32.mrf.mxu0  ;;  %v4694_v52 = vpop.f32.mrf.mxu1 }
 0x19f   : > { %v6573_v29 = vadd.f32 %v4693_v28, %v6519_v59 }
 0x1a0   : > { %v4758_v35 = vpop.f32.mrf.mxu0  ;;  %v4695_v42 = vpop.f32.mrf.mxu1 }
 0x1a1   : > { %v4696_v56 = vadd.f32 %v4695_v42, %v4694_v52 }
 0x1a2   : > { %v4759_v40 = vpop.f32.mrf.mxu0  ;;  %v4697_v16 = vpop.f32.mrf.mxu1 }
 0x1a3   : > { %v6576_v36 = vadd.f32 %v4696_v56, %v6522_v0  ;;  %v6578_v46 = vadd.f32 %v4759_v40, %v4758_v35 }
 0x1a4   : > { %v6580_v15 = vpop.f32.mrf.mxu0  ;;  %v4698_v51 = vpop.f32.mrf.mxu1 }
 0x1a5   : > { %v4699_v26 = vadd.f32 %v4698_v51, %v4697_v16 }
 0x1a6   : > { %v6582_v1 = vpop.f32.mrf.mxu0  ;;  %v4700_v12 = vpop.f32.mrf.mxu1 }
 0x1a7   : > { %v6585_v59 = vadd.f32 %v4699_v26, %v6525_v5 }
 0x1a8   : > { %v4764_v13 = vpop.f32.mrf.mxu0  ;;  %v4701_v60 = vpop.f32.mrf.mxu1 }
 0x1a9   : > { %v4702_v30 = vadd.f32 %v4701_v60, %v4700_v12 }
 0x1aa   : > { %v4765_v7 = vpop.f32.mrf.mxu0  ;;  %v4703_v17 = vpop.f32.mrf.mxu1 }
 0x1ab   : > { %v6588_v0 = vadd.f32 %v4702_v30, %v6528_v33  ;;  %v6590_v53 = vadd.f32 %v4765_v7, %v4764_v13 }
 0x1ac   : > { %v6592_v23 = vpop.f32.mrf.mxu0  ;;  %v4704_v25 = vpop.f32.mrf.mxu1 }
 0x1ad   : > { %v4705_v57 = vadd.f32 %v4704_v25, %v4703_v17 }
 0x1ae   : > { %v6594_v32 = vpop.f32.mrf.mxu0  ;;  %v4706_v54 = vpop.f32.mrf.mxu1 }
 0x1af   : > { %v6597_v5 = vadd.f32 %v4705_v57, %v6531_v62 }
 0x1b0   : > { %v4770_v20 = vpop.f32.mrf.mxu0  ;;  %v4707_v11 = vpop.f32.mrf.mxu1 }
 0x1b1   : > { %v4708_v48 = vadd.f32 %v4707_v11, %v4706_v54 }
 0x1b2   : > { %v4771_v38 = vpop.f32.mrf.mxu0  ;;  %v4709_v31 = vpop.f32.mrf.mxu1 }
 0x1b3   : > { %v6600_v33 = vadd.f32 %v4708_v48, %v6534_v43  ;;  %v6602_v24 = vadd.f32 %v4771_v38, %v4770_v20 }
 0x1b4   : > { %v4773_v3 = vpop.f32.mrf.mxu0  ;;  %v4710_v37 = vpop.f32.mrf.mxu1 }
 0x1b5   : > { %v4711_v2 = vadd.f32 %v4710_v37, %v4709_v31 }
 0x1b6   : > { %v4774_v18 = vpop.f32.mrf.mxu0  ;;  %v4712_v45 = vpop.f32.mrf.mxu1 }
 0x1b7   : > { %v6605_v21 = vadd.f32 %v4711_v2, %v6537_v63  ;;  %v6607_v62 = vadd.f32 %v4774_v18, %v4773_v3 }
 0x1b8   : > { %v4776_v34 = vpop.f32.mrf.mxu0  ;;  %v4713_v58 = vpop.f32.mrf.mxu1 }
 0x1b9   : > { %v4714_v27 = vadd.f32 %v4713_v58, %v4712_v45 }
 0x1ba   : > { %v4777_v55 = vpop.f32.mrf.mxu0  ;;  %v4715_v39 = vpop.f32.mrf.mxu1 }
 0x1bb   : > { %v6610_v43 = vadd.f32 %v4714_v27, %v6540_v44  ;;  %v6612_v61 = vadd.f32 %v4777_v55, %v4776_v34 }
 0x1bc   : > { %v6614_v41 = vpop.f32.mrf.mxu0  ;;  %v4716_v28 = vpop.f32.mrf.mxu1 }
 0x1bd   : > { %v4717_v52 = vadd.f32 %v4716_v28, %v4715_v39 }
 0x1be   : > { %v6616_v35 = vpop.f32.mrf.mxu0  ;;  %v4718_v63 = vpop.f32.mrf.mxu1 }
 0x1bf   : > { %v6619_v42 = vadd.f32 %v4717_v52, %v6543_v6 }
 0x1c0   : > { %v4782_v56 = vpop.f32.mrf.mxu0  ;;  %v4719_v40 = vpop.f32.mrf.mxu1 }
 0x1c1   : > { %v4720_v16 = vadd.f32 %v4719_v40, %v4718_v63 }
 0x1c2   : > { %v4783_v51 = vpop.f32.mrf.mxu0  ;;  %v4721_v26 = vpop.f32.mrf.mxu1 }
 0x1c3   : > { %v6622_v44 = vadd.f32 %v4720_v16, %v6546_v50  ;;  %v6624_v12 = vadd.f32 %v4783_v51, %v4782_v56 }
 0x1c4   : > { %v6626_v13 = vpop.f32.mrf.mxu0  ;;  %v4722_v60 = vpop.f32.mrf.mxu1 }
 0x1c5   : > { %v4723_v30 = vadd.f32 %v4722_v60, %v4721_v26 }
 0x1c6   : > { %v6628_v7 = vpop.f32.mrf.mxu0  ;;  %v4724_v17 = vpop.f32.mrf.mxu1 }
 0x1c7   : > { %v6631_v6 = vadd.f32 %v4723_v30, %v6549_v22 }
 0x1c8   : > { %v4788_v25 = vpop.f32.mrf.mxu0  ;;  %v4725_v57 = vpop.f32.mrf.mxu1 }
 0x1c9   : > { %v4726_v54 = vadd.f32 %v4725_v57, %v4724_v17 }
 0x1ca   : > { %v4789_v20 = vpop.f32.mrf.mxu0  ;;  %v4727_v11 = vpop.f32.mrf.mxu1 }
 0x1cb   : > { %v6634_v50 = vadd.f32 %v4726_v54, %v6552_v8  ;;  %v6636_v48 = vadd.f32 %v4789_v20, %v4788_v25  ;;  %v4757_v20 = vadd.f32 %v6570_v49, %v6568_v10 }
 0x1cc   : > { %v4791_v38 = vpop.f32.mrf.mxu0  ;;  %v4728_v31 = vpop.f32.mrf.mxu1 }
 0x1cd   : > { %v4729_v3 = vadd.f32 %v4728_v31, %v4727_v11 }
 0x1ce   : > { %v4792_v37 = vpop.f32.mrf.mxu0  ;;  %v4730_v2 = vpop.f32.mrf.mxu1 }
 0x1cf   : > { %v6639_v18 = vadd.f32 %v4729_v3, %v6555_v4  ;;  %v6641_v22 = vadd.f32 %v4792_v37, %v4791_v38 }
 0x1d0   : > { %v4794_v45 = vpop.f32.mrf.mxu0  ;;  %v4731_v34 = vpop.f32.mrf.mxu1 }
 0x1d1   : > { %v4732_v58 = vadd.f32 %v4731_v34, %v4730_v2 }
 0x1d2   : > { %v4795_v27 = vpop.f32.mrf.mxu0  ;;  %v4733_v55 = vpop.f32.mrf.mxu1 }
 0x1d3   : > { %v6644_v8 = vadd.f32 %v4732_v58, %v6558_v14  ;;  %v6646_v39 = vadd.f32 %v4795_v27, %v4794_v45 }
 0x1d4   : > { %v4797_v28 = vpop.f32.mrf.mxu0  ;;  %v4734_v52 = vpop.f32.mrf.mxu1 }
 0x1d5   : > { %v4735_v63 = vadd.f32 %v4734_v52, %v4733_v55 }
 0x1d6   : > { %v4798_v56 = vpop.f32.mrf.mxu0  ;;  %v4816_v40 = vpop.f32.mrf.mxu1 }
 0x1d7   : > { %v6649_v4 = vadd.f32 %v4735_v63, %v6561_v47  ;;  %v6651_v16 = vadd.f32 %v4798_v56, %v4797_v28  ;;  %v6659_v47 = vld [vmem:[%s6839_s3] ss:$0 sm:$0xff] }
 0x1d8   : > { %v4880_v51 = vpop.f32.mrf.mxu0  ;;  %v4817_v26 = vpop.f32.mrf.mxu1 }
 0x1d9   : > { %v4818_v60 = vadd.f32 %v4817_v26, %v4816_v40 }
 0x1da   : > { %v4881_v30 = vpop.f32.mrf.mxu0  ;;  %v4819_v17 = vpop.f32.mrf.mxu1 }
 0x1db   : > { %v3217_v14 = vadd.f32 %v4818_v60, %v6566_v9  ;;  %v4882_v25 = vadd.f32 %v4881_v30, %v4880_v51 }
 0x1dc   : > { %v4883_v57 = vpop.f32.mrf.mxu0  ;;  %v4820_v54 = vpop.f32.mrf.mxu1 }
 0x1dd   : > { %v3314_v11 = vadd.f32 %v4882_v25, %v3217_v14  ;;  %v4821_v38 = vadd.f32 %v4820_v54, %v4819_v17 }
 0x1de   : > { %v4884_v31 = vpop.f32.mrf.mxu0  ;;  %v4822_v3 = vpop.f32.mrf.mxu1 }
 0x1df   : > { %v3376_v37 = vadd.f32 %v3314_v11, %v6564_v19  ;;  %v3220_v2 = vadd.f32 %v4821_v38, %v4757_v20  ;;  %v4885_v45 = vadd.f32 %v4884_v31, %v4883_v57  ;;  %v4763_v19 = vadd.f32 %v6582_v1, %v6580_v15 }
 0x1e0   : > { %v4886_v9 = vpop.f32.mrf.mxu0  ;;  %v4823_v34 = vpop.f32.mrf.mxu1 }
 0x1e1   : > { %v6663_v58 = vadd.f32 %v6659_v47, %v3376_v37  ;;  %v3317_v27 = vadd.f32 %v4885_v45, %v3220_v2  ;;  %v4824_v10 = vadd.f32 %v4823_v34, %v4822_v3 }
 0x1e2   : > { %v4887_v49 = vpop.f32.mrf.mxu0  ;;  %v4825_v55 = vpop.f32.mrf.mxu1 }
 0x1e3   : > { %v3415_v28 = vsub.f32 0.0, %v6663_v58  ;;  %v3377_v52 = vadd.f32 %v3317_v27, %v6573_v29  ;;  %v3225_v63 = vadd.f32 %v4824_v10, %v6578_v46  ;;  %v4888_v56 = vadd.f32 %v4887_v49, %v4886_v9 }
 0x1e4   : > { %v4889_v40 = vpop.f32.mrf.mxu0  ;;  %v4826_v51 = vpop.f32.mrf.mxu1  ;;  %v4769_v10 = vadd.f32 %v6594_v32, %v6592_v23 }
 0x1e5   : > { %v3431_v26 = vmul.f32 1.442695, %v3415_v28  ;;  %v6671_v60 = vadd.f32 %v6659_v47, %v3377_v52  ;;  %v3322_v30 = vadd.f32 %v4888_v56, %v3225_v63  ;;  %v4827_v17 = vadd.f32 %v4826_v51, %v4825_v55 }
 0x1e6   : > { %v4890_v14 = vpop.f32.mrf.mxu0  ;;  %v4828_v25 = vpop.f32.mrf.mxu1 }
 0x1e7   : > { %5149 = vpow2.f32 %v3431_v26  ;;  %v3416_v57 = vsub.f32 0.0, %v6671_v60  ;;  %v3378_v29 = vadd.f32 %v3322_v30, %v6576_v36  ;;  %v3228_v46 = vadd.f32 %v4827_v17, %v4763_v19 }
 0x1e8   : > { %v4891_v54 = vadd.f32 %v4890_v14, %v4889_v40  ;;  %v4892_v20 = vpop.f32.mrf.mxu0  ;;  %v4829_v11 = vpop.f32.mrf.mxu1 }
 0x1e9   : > { %v3433_v15 = vmul.f32 1.442695, %v3416_v57  ;;  %v6676_v1 = vadd.f32 %v6659_v47, %v3378_v29  ;;  %v4830_v38 = vadd.f32 %v4829_v11, %v4828_v25 }
 0x1ea   : > { %v3325_v31 = vadd.f32 %v4891_v54, %v3228_v46  ;;  %v4893_v3 = vpop.f32.mrf.mxu0  ;;  %v4831_v37 = vpop.f32.mrf.mxu1 }
 0x1eb   : > { %5151 = vpow2.f32 %v3433_v15  ;;  %v3417_v2 = vsub.f32 0.0, %v6676_v1  ;;  %v3233_v45 = vadd.f32 %v4830_v38, %v6590_v53  ;;  %v4894_v9 = vadd.f32 %v4893_v3, %v4892_v20 }
 0x1ec   : > { %v3379_v36 = vadd.f32 %v3325_v31, %v6585_v59  ;;  %v4895_v34 = vpop.f32.mrf.mxu0  ;;  %v4832_v27 = vpop.f32.mrf.mxu1 }
 0x1ed   : > { %v3435_v49 = vmul.f32 1.442695, %v3417_v2  ;;  %v3330_v55 = vadd.f32 %v4894_v9, %v3233_v45  ;;  %v4833_v28 = vadd.f32 %v4832_v27, %v4831_v37 }
 0x1ee   : > { %v6684_v52 = vadd.f32 %v6659_v47, %v3379_v36  ;;  %v4896_v63 = vpop.f32.mrf.mxu0  ;;  %v4834_v56 = vpop.f32.mrf.mxu1 }
 0x1ef   : > { %5153 = vpow2.f32 %v3435_v49  ;;  %v3380_v19 = vadd.f32 %v3330_v55, %v6588_v0  ;;  %v3236_v53 = vadd.f32 %v4833_v28, %v4769_v10  ;;  %v4897_v40 = vadd.f32 %v4896_v63, %v4895_v34 }
 0x1f0   : > { %v3418_v59 = vsub.f32 0.0, %v6684_v52  ;;  %v4898_v51 = vpop.f32.mrf.mxu0  ;;  %v4835_v26 = vpop.f32.mrf.mxu1 }
 0x1f1   : > { %v6689_v30 = vadd.f32 %v6659_v47, %v3380_v19  ;;  %v3333_v23 = vadd.f32 %v4897_v40, %v3236_v53  ;;  %v4836_v32 = vadd.f32 %v4835_v26, %v4834_v56 }
 0x1f2   : > { %v3437_v17 = vmul.f32 1.442695, %v3418_v59  ;;  %v4899_v14 = vpop.f32.mrf.mxu0  ;;  %v4837_v25 = vpop.f32.mrf.mxu1 }
 0x1f3   : > { %v3419_v57 = vsub.f32 0.0, %v6689_v30  ;;  %v3381_v29 = vadd.f32 %v3333_v23, %v6597_v5  ;;  %v3241_v0 = vadd.f32 %v4836_v32, %v6602_v24  ;;  %v4900_v46 = vadd.f32 %v4899_v14, %v4898_v51 }
 0x1f4   : > { %v5150_v54 = vpop.eup %5149  ;;  %5155 = vpow2.f32 %v3437_v17  ;;  %v4901_v20 = vpop.f32.mrf.mxu0  ;;  %v4781_v51 = vadd.f32 %v6616_v35, %v6614_v41 }
 0x1f5   : > { %v4838_v11 = vpop.f32.mrf.mxu1  ;;  %v3463_v15 = vadd.f32 1.0, %v5150_v54  ;;  %v3439_v38 = vmul.f32 1.442695, %v3419_v57  ;;  %v6695_v31 = vadd.f32 %v6659_v47, %v3381_v29  ;;  %v3338_v3 = vadd.f32 %v4900_v46, %v3241_v0 }
 0x1f6   : > { %v4839_v37 = vadd.f32 %v4838_v11, %v4837_v25  ;;  %v4902_v2 = vpop.f32.mrf.mxu0 }
 0x1f7   : > { %v4840_v45 = vpop.f32.mrf.mxu1  ;;  %5157 = vrcp.f32 %v3463_v15  ;;  %v3420_v5 = vsub.f32 0.0, %v6695_v31  ;;  %v3382_v24 = vadd.f32 %v3338_v3, %v6600_v33  ;;  %v4903_v34 = vadd.f32 %v4902_v2, %v4901_v20 }
 0x1f8   : > { %v5152_v9 = vpop.eup %5151  ;;  %5159 = vpow2.f32 %v3439_v38  ;;  %v3244_v36 = vadd.f32 %v4839_v37, %v6607_v62  ;;  %v4904_v27 = vpop.f32.mrf.mxu0 }
 0x1f9   : > { %v4841_v10 = vpop.f32.mrf.mxu1  ;;  %v3464_v49 = vadd.f32 1.0, %v5152_v9  ;;  %v3441_v55 = vmul.f32 1.442695, %v3420_v5  ;;  %v6709_v28 = vadd.f32 %v6659_v47, %v3382_v24 }
 0x1fa   : > { %v4842_v33 = vadd.f32 %v4841_v10, %v4840_v45  ;;  %v3341_v63 = vadd.f32 %v4903_v34, %v3244_v36  ;;  %v4905_v62 = vpop.f32.mrf.mxu0 }
 0x1fb   : > { %v4843_v56 = vpop.f32.mrf.mxu1  ;;  %5161 = vrcp.f32 %v3464_v49  ;;  %v3421_v19 = vsub.f32 0.0, %v6709_v28  ;;  %v4906_v40 = vadd.f32 %v4905_v62, %v4904_v27 }
 0x1fc   : > { %v3249_v53 = vadd.f32 %v4842_v33, %v6612_v61  ;;  %v5154_v59 = vpop.eup %5153  ;;  %5163 = vpow2.f32 %v3441_v55  ;;  %v3383_v26 = vadd.f32 %v3341_v63, %v6605_v21  ;;  %v4907_v23 = vpop.f32.mrf.mxu0  ;;  %v4787_v55 = vadd.f32 %v6628_v7, %v6626_v13 }
 0x1fd   : > { %v4844_v32 = vpop.f32.mrf.mxu1  ;;  %v3465_v17 = vadd.f32 1.0, %v5154_v59  ;;  %v3443_v61 = vmul.f32 1.442695, %v3421_v19 }
 0x1fe   : > { %v3346_v14 = vadd.f32 %v4906_v40, %v3249_v53  ;;  %v4845_v25 = vadd.f32 %v4844_v32, %v4843_v56  ;;  %v6728_v41 = vadd.f32 %v6659_v47, %v3383_v26  ;;  %v4908_v35 = vpop.f32.mrf.mxu0 }
 0x1ff   : > { %v4846_v57 = vpop.f32.mrf.mxu1  ;;  %5165 = vrcp.f32 %v3465_v17  ;;  %v4909_v0 = vadd.f32 %v4908_v35, %v4907_v23 }
 0x200   : > { %v3384_v21 = vadd.f32 %v3346_v14, %v6610_v43  ;;  %v3252_v29 = vadd.f32 %v4845_v25, %v4781_v51  ;;  %5167 = vpow2.f32 %v3443_v61  ;;  %v3422_v46 = vsub.f32 0.0, %v6728_v41  ;;  %v4910_v54 = vpop.f32.mrf.mxu0 }
 0x201   : > { %v4847_v20 = vpop.f32.mrf.mxu1  ;;  %v5156_v11 = vpop.eup %5155 }
 0x202   : > { %v6735_v15 = vadd.f32 %v6659_v47, %v3384_v21  ;;  %v3349_v38 = vadd.f32 %v4909_v0, %v3252_v29  ;;  %v4848_v3 = vadd.f32 %v4847_v20, %v4846_v57  ;;  %v3466_v37 = vadd.f32 1.0, %v5156_v11  ;;  %v4911_v45 = vpop.f32.mrf.mxu0 }
 0x203   : > { %v3445_v2 = vmul.f32 1.442695, %v3422_v46  ;;  %v4849_v5 = vpop.f32.mrf.mxu1  ;;  %v4912_v34 = vadd.f32 %v4911_v45, %v4910_v54 }
 0x204   : > { %v3423_v43 = vsub.f32 0.0, %v6735_v15  ;;  %v3385_v24 = vadd.f32 %v3349_v38, %v6619_v42  ;;  %v3257_v9 = vadd.f32 %v4848_v3, %v6624_v12  ;;  %v5158_v36 = vpop.eup %5157  ;;  %5169 = vrcp.f32 %v3466_v37  ;;  %v4913_v27 = vpop.f32.mrf.mxu0 }
 0x205   : > { %v4850_v10 = vpop.f32.mrf.mxu1  ;;  %v5160_v49 = vpop.eup %5159  ;;  %5171 = vpow2.f32 %v3445_v2  ;;  %v3495_v42 = vmul.f32 %v5158_v36, %v6663_v58 }
 0x206   : > { %v3447_v33 = vmul.f32 1.442695, %v3423_v43  ;;  %v6745_v63 = vadd.f32 %v6659_v47, %v3385_v24  ;;  %v3467_v12 = vadd.f32 1.0, %v5160_v49  ;;  %v3354_v62 = vadd.f32 %v4912_v34, %v3257_v9  ;;  %v4914_v19 = vpop.f32.mrf.mxu0 }
 0x207   : > { %v4851_v56 = vadd.f32 %v4850_v10, %v4849_v5  ;;  %v4852_v53 = vpop.f32.mrf.mxu1  ;;  %v4915_v51 = vadd.f32 %v4914_v19, %v4913_v27  ;;  %v3533_v14 = vmul.f32 %v3495_v42, %v3495_v42 }
 0x208   : > { %5173 = vpow2.f32 %v3447_v33  ;;  %v3424_v40 = vsub.f32 0.0, %v6745_v63  ;;  %v5162_v59 = vpop.eup %5161  ;;  %v3386_v13 = vadd.f32 %v3354_v62, %v6622_v44  ;;  %v4916_v26 = vpop.f32.mrf.mxu0 }
 0x209   : > { %5175 = vrcp.f32 %v3467_v12  ;;  %v3260_v7 = vadd.f32 %v4851_v56, %v4787_v55  ;;  %v4853_v23 = vpop.f32.mrf.mxu1  ;;  %v5164_v32 = vpop.eup %5163  ;;  %v3496_v58 = vmul.f32 %v5162_v59, %v6671_v60 }
 0x20a   : > { %v3449_v17 = vmul.f32 1.442695, %v3424_v40  ;;  %v4854_v61 = vadd.f32 %v4853_v23, %v4852_v53  ;;  %v3468_v25 = vadd.f32 1.0, %v5164_v32  ;;  %v6758_v35 = vadd.f32 %v6659_v47, %v3386_v13  ;;  %v4917_v57 = vpop.f32.mrf.mxu0 }
 0x20b   : > { %v3357_v44 = vadd.f32 %v4915_v51, %v3260_v7  ;;  %v4855_v21 = vpop.f32.mrf.mxu1  ;;  %v3511_v29 = vadd.f32 %v3496_v58, %v3495_v42  ;;  %v3534_v0 = vmul.f32 %v3496_v58, %v3496_v58  ;;  %v4308_v46 = vpack.c.bf16 %v3496_v58, %v3495_v42 }
 0x20c   : > { %5177 = vpow2.f32 %v3449_v17  ;;  %v5166_v60 = vpop.eup %5165  ;;  %v3425_v54 = vsub.f32 0.0, %v6758_v35  ;;  %v3265_v11 = vadd.f32 %v4854_v61, %v6636_v48  ;;  %v4919_v38 = vpop.f32.mrf.mxu0  ;;  %v4918_v5 = vadd.f32 %v4917_v57, %v4916_v26 }
 0x20d   : > { %5179 = vrcp.f32 %v3468_v25  ;;  %v3387_v20 = vadd.f32 %v3357_v44, %v6631_v6  ;;  %v4856_v3 = vpop.f32.mrf.mxu1  ;;  %v5168_v37 = vpop.eup %5167  ;;  %v3549_v2 = vadd.f32 %v3534_v0, %v3533_v14  ;;  %4309 = vst [vmem:[%s6755_s30] sm:$0xff] %v4308_v46   ;;  %v3497_v45 = vmul.f32 %v5166_v60, %v6676_v1 }
 0x20e   : > { %v4857_v43 = vadd.f32 %v4856_v3, %v4855_v21  ;;  %v3469_v24 = vadd.f32 1.0, %v5168_v37  ;;  %v3451_v9 = vmul.f32 1.442695, %v3425_v54  ;;  %v4920_v34 = vpop.f32.mrf.mxu0  ;;  %v3362_v49 = vadd.f32 %v4918_v5, %v3265_v11 }
 0x20f   : > { %v6766_v36 = vadd.f32 %v6659_v47, %v3387_v20  ;;  %v4858_v27 = vpop.f32.mrf.mxu1  ;;  %v3512_v10 = vadd.f32 %v3511_v29, %v3497_v45  ;;  %v3535_v6 = vmul.f32 %v3497_v45, %v3497_v45  ;;  %v4921_v33 = vadd.f32 %v4920_v34, %v4919_v38 }
 0x210   : > { %v3268_v48 = vadd.f32 %v4857_v43, %v6641_v22  ;;  %5181 = vrcp.f32 %v3469_v24  ;;  %v4922_v42 = vpop.f32.mrf.mxu0  ;;  %v3388_v56 = vadd.f32 %v3362_v49, %v6634_v50 }
 0x211   : > { %v3426_v55 = vsub.f32 0.0, %v6766_v36  ;;  %v4859_v1 = vpop.f32.mrf.mxu1  ;;  %v5170_v12 = vpop.eup %5169  ;;  %v3550_v62 = vadd.f32 %v3549_v2, %v3535_v6  ;;  %5183 = vpow2.f32 %v3451_v9 }
 0x212   : > { %v4860_v19 = vadd.f32 %v4859_v1, %v4858_v27  ;;  %v5172_v53 = vpop.eup %5171  ;;  %v3498_v40 = vmul.f32 %v5170_v12, %v6684_v52  ;;  %v3365_v13 = vadd.f32 %v4921_v33, %v3268_v48  ;;  %v4923_v7 = vpop.f32.mrf.mxu0  ;;  %v6773_v26 = vadd.f32 %v6659_v47, %v3388_v56 }
 0x213   : > { %v3453_v59 = vmul.f32 1.442695, %v3426_v55  ;;  %v4861_v51 = vpop.f32.mrf.mxu1  ;;  %v3470_v22 = vadd.f32 1.0, %v5172_v53  ;;  %v4924_v32 = vadd.f32 %v4923_v7, %v4922_v42 }
 0x214   : > { %v3273_v23 = vadd.f32 %v4860_v19, %v6646_v39  ;;  %v3513_v17 = vadd.f32 %v3512_v10, %v3498_v40  ;;  %v3536_v61 = vmul.f32 %v3498_v40, %v3498_v40  ;;  %v4313_v50 = vpack.c.bf16 %v3498_v40, %v3497_v45  ;;  %v4925_v14 = vpop.f32.mrf.mxu0 }
 0x215   : > { %v5174_v58 = vpop.eup %5173  ;;  %5185 = vpow2.f32 %v3453_v59  ;;  %v4862_v25 = vpop.f32.mrf.mxu1  ;;  %v3427_v57 = vsub.f32 0.0, %v6773_v26  ;;  %v3389_v21 = vadd.f32 %v3365_v13, %v6639_v18 }
 0x216   : > { %v5176_v52 = vpop.eup %5175  ;;  %5187 = vrcp.f32 %v3470_v22  ;;  %v3471_v44 = vadd.f32 1.0, %v5174_v58  ;;  %v3551_v29 = vadd.f32 %v3550_v62, %v3536_v61  ;;  %4345 = vst [vmem:[%s6755_s30 + $0x8] sm:$0xff] %v4313_v50   ;;  %v3370_v39 = vadd.f32 %v4924_v32, %v3273_v23  ;;  %v4926_v60 = vpop.f32.mrf.mxu0 }
 0x217   : > { %v3499_v0 = vmul.f32 %v5176_v52, %v6689_v30  ;;  %v4863_v46 = vadd.f32 %v4862_v25, %v4861_v51  ;;  %v3455_v54 = vmul.f32 1.442695, %v3427_v57  ;;  %v6781_v20 = vadd.f32 %v6659_v47, %v3389_v21 }
 0x218   : > { %5189 = vrcp.f32 %v3471_v44  ;;  %v4927_v11 = vadd.f32 %v4926_v60, %v4925_v14  ;;  %v3390_v2 = vadd.f32 %v3370_v39, %v6644_v8 }
 0x219   : > { %v5178_v38 = vpop.eup %5177  ;;  %v3514_v3 = vadd.f32 %v3513_v17, %v3499_v0  ;;  %v3537_v37 = vmul.f32 %v3499_v0, %v3499_v0  ;;  %v3276_v18 = vadd.f32 %v4863_v46, %v6651_v16  ;;  %5191 = vpow2.f32 %v3455_v54 }
 0x21a   : > { %v5180_v45 = vpop.eup %5179  ;;  %v3472_v5 = vadd.f32 1.0, %v5178_v38  ;;  %v3428_v30 = vsub.f32 0.0, %v6781_v20  ;;  %v6788_v9 = vadd.f32 %v6659_v47, %v3390_v2 }
 0x21b   : > { %v3552_v43 = vadd.f32 %v3551_v29, %v3537_v37  ;;  %v3500_v24 = vmul.f32 %v5180_v45, %v6695_v31  ;;  %v3373_v34 = vadd.f32 %v4927_v11, %v3276_v18 }
 0x21c   : > { %5193 = vrcp.f32 %v3472_v5  ;;  %v3457_v27 = vmul.f32 1.442695, %v3428_v30  ;;  %v3429_v16 = vsub.f32 0.0, %v6788_v9 }
 0x21d   : > { %v3515_v10 = vadd.f32 %v3514_v3, %v3500_v24  ;;  %v3538_v6 = vmul.f32 %v3500_v24, %v3500_v24  ;;  %v4318_v8 = vpack.c.bf16 %v3500_v24, %v3499_v0  ;;  %v5182_v49 = vpop.eup %5181  ;;  %v3391_v48 = vadd.f32 %v3373_v34, %v6649_v4 }
 0x21e   : > { %5195 = vpow2.f32 %v3457_v27  ;;  %v5184_v55 = vpop.eup %5183  ;;  %v3501_v31 = vmul.f32 %v5182_v49, %v6709_v28  ;;  %v3459_v42 = vmul.f32 1.442695, %v3429_v16 }
 0x21f   : > { %v3553_v33 = vadd.f32 %v3552_v43, %v3538_v6  ;;  %4346 = vst [vmem:[%s6755_s30 + $0x10] sm:$0xff] %v4318_v8   ;;  %v3473_v1 = vadd.f32 1.0, %v5184_v55  ;;  %v6795_v12 = vadd.f32 %v6659_v47, %v3391_v48 }
 0x220   : > { %v3516_v62 = vadd.f32 %v3515_v10, %v3501_v31  ;;  %v3539_v56 = vmul.f32 %v3501_v31, %v3501_v31  ;;  %5197 = vpow2.f32 %v3459_v42 }
 0x221   : > { %5199 = vrcp.f32 %v3473_v1  ;;  %v3430_v53 = vsub.f32 0.0, %v6795_v12 }
 0x222   : > { %v5186_v19 = vpop.eup %5185  ;;  %v3554_v4 = vadd.f32 %v3553_v33, %v3539_v56 }
 0x223   : > { %v5188_v40 = vpop.eup %5187  ;;  %v3474_v59 = vadd.f32 1.0, %v5186_v19  ;;  %v3461_v7 = vmul.f32 1.442695, %v3430_v53 }
 0x224   : > { %v3502_v13 = vmul.f32 %v5188_v40, %v6728_v41 }
 0x225   : > { %v5190_v28 = vpop.eup %5189  ;;  %5201 = vrcp.f32 %v3474_v59 }
 0x226   : > { %v3517_v51 = vadd.f32 %v3516_v62, %v3502_v13  ;;  %v3540_v22 = vmul.f32 %v3502_v13, %v3502_v13  ;;  %v4323_v47 = vpack.c.bf16 %v3502_v13, %v3501_v31  ;;  %v3503_v23 = vmul.f32 %v5190_v28, %v6735_v15  ;;  %v5192_v32 = vpop.eup %5191 }
 0x227   : > { %5203 = vpow2.f32 %v3461_v7  ;;  %v3475_v50 = vadd.f32 1.0, %v5192_v32 }
 0x228   : > { %v3555_v58 = vadd.f32 %v3554_v4, %v3540_v22  ;;  %4347 = vst [vmem:[%s6755_s30 + $0x18] sm:$0xff] %v4323_v47   ;;  %v3518_v17 = vadd.f32 %v3517_v51, %v3503_v23  ;;  %v3541_v61 = vmul.f32 %v3503_v23, %v3503_v23 }
 0x229   : > { %v5194_v14 = vpop.eup %5193  ;;  %5205 = vrcp.f32 %v3475_v50 }
 0x22a   : > { %v3556_v25 = vadd.f32 %v3555_v58, %v3541_v61  ;;  %v3504_v41 = vmul.f32 %v5194_v14, %v6745_v63 }
 0x22b   : > { %v5196_v52 = vpop.eup %5195 }
 0x22c   : > { %v3519_v44 = vadd.f32 %v3518_v17, %v3504_v41  ;;  %v3542_v57 = vmul.f32 %v3504_v41, %v3504_v41  ;;  %v4328_v21 = vpack.c.bf16 %v3504_v41, %v3503_v23  ;;  %v3476_v29 = vadd.f32 1.0, %v5196_v52 }
 0x22d   : > { %v5198_v0 = vpop.eup %5197 }
 0x22e   : > { %v3557_v15 = vadd.f32 %v3556_v25, %v3542_v57  ;;  %4348 = vst [vmem:[%s6755_s30 + $0x20] sm:$0xff] %v4328_v21   ;;  %5207 = vrcp.f32 %v3476_v29  ;;  %v5200_v39 = vpop.eup %5199  ;;  %v3477_v46 = vadd.f32 1.0, %v5198_v0 }
 0x22f   : > { %v3505_v60 = vmul.f32 %v5200_v39, %v6758_v35 }
 0x230   : > { %5209 = vrcp.f32 %v3477_v46 }
 0x231   : > { %v3520_v11 = vadd.f32 %v3519_v44, %v3505_v60  ;;  %v3543_v38 = vmul.f32 %v3505_v60, %v3505_v60 }
 0x232   : > { %v5202_v54 = vpop.eup %5201 }
 0x233   : > { %v3506_v63 = vmul.f32 %v5202_v54, %v6766_v36  ;;  %v3558_v37 = vadd.f32 %v3557_v15, %v3543_v38 }
 0x234   : > { %v5204_v3 = vpop.eup %5203 }
 0x235   : > { %v3521_v2 = vadd.f32 %v3520_v11, %v3506_v63  ;;  %v3544_v18 = vmul.f32 %v3506_v63, %v3506_v63  ;;  %v4333_v45 = vpack.c.bf16 %v3506_v63, %v3505_v60  ;;  %v3478_v5 = vadd.f32 1.0, %v5204_v3 }
 0x236   : > { %v5206_v30 = vpop.eup %5205 }
 0x237   : > { %v3559_v43 = vadd.f32 %v3558_v37, %v3544_v18  ;;  %4349 = vst [vmem:[%s6755_s30 + $0x28] sm:$0xff] %v4333_v45   ;;  %5211 = vrcp.f32 %v3478_v5  ;;  %v3507_v24 = vmul.f32 %v5206_v30, %v6773_v26 }
 0x239   : > { %v3522_v35 = vadd.f32 %v3521_v2, %v3507_v24  ;;  %v3545_v34 = vmul.f32 %v3507_v24, %v3507_v24 }
 0x23b   : > { %v5208_v27 = vpop.eup %5207  ;;  %v3560_v10 = vadd.f32 %v3559_v43, %v3545_v34 }
 0x23c   : > { %v3508_v36 = vmul.f32 %v5208_v27, %v6781_v20 }
 0x23d   : > { %v5210_v6 = vpop.eup %5209 }
 0x23e   : > { %v3523_v8 = vadd.f32 %v3522_v35, %v3508_v36  ;;  %v3546_v16 = vmul.f32 %v3508_v36, %v3508_v36  ;;  %v4338_v49 = vpack.c.bf16 %v3508_v36, %v3507_v24  ;;  %v3509_v48 = vmul.f32 %v5210_v6, %v6788_v9 }
 0x240   : > { %v3561_v55 = vadd.f32 %v3560_v10, %v3546_v16  ;;  %4350 = vst [vmem:[%s6755_s30 + $0x30] sm:$0xff] %v4338_v49   ;;  %v3524_v33 = vadd.f32 %v3523_v8, %v3509_v48  ;;  %v3547_v26 = vmul.f32 %v3509_v48, %v3509_v48 }
 0x242   : > { %v3562_v31 = vadd.f32 %v3561_v55, %v3547_v26 }
 0x244   : > { %v5212_v42 = vpop.eup %5211 }
 0x245   : > { %v3510_v1 = vmul.f32 %v5212_v42, %v6795_v12 }
 0x247   : > { %v3525_v62 = vadd.f32 %v3524_v33, %v3510_v1  ;;  %v3548_v20 = vmul.f32 %v3510_v1, %v3510_v1  ;;  %v4343_v56 = vpack.c.bf16 %v3510_v1, %v3509_v48 }
 0x249   : > { %v3526_v19 = vrot.slane %v3525_v62, 4  ;;  %v3563_v53 = vadd.f32 %v3562_v31, %v3548_v20  ;;  %4351 = vst [vmem:[%s6755_s30 + $0x38] sm:$0xff] %v4343_v56  }
 0x24b   : > { %v3527_v40 = vadd.f32 %v3526_v19, %v3525_v62  ;;  %v3564_v4 = vrot.slane %v3563_v53, 4 }
 0x24d   : > { %v3528_v9 = vrot.slane %v3527_v40, 2  ;;  %v3565_v59 = vadd.f32 %v3564_v4, %v3563_v53 }
 0x24f   : > { %v3529_v13 = vadd.f32 %v3528_v9, %v3527_v40  ;;  %v3566_v7 = vrot.slane %v3565_v59, 2 }
 0x251   : > { %v3530_v28 = vrot.slane %v3529_v13, 1  ;;  %v3567_v51 = vadd.f32 %v3566_v7, %v3565_v59 }
 0x253   : > { %v3531_v12 = vadd.f32 %v3530_v28, %v3529_v13  ;;  %v3568_v22 = vrot.slane %v3567_v51, 1 }
 0x255   : > { %3532 = vst [vmem:[%s354_s13] sm:$0x1] %v3531_v12  ;;  %v3569_v47 = vadd.f32 %v3568_v22, %v3567_v51 }
 0x257   : > { %3570 = vst [vmem:[%s361_s15] sm:$0x1] %v3569_v47 }
 0x258 PF: > { %s17_s25 = sadd.s32 1, %s5255_s25   ;;  %s6891_s21 = smov %s5247_s23 }
 0x259   : > { %p14_p9 = scmp.ge.s32.totalorder %s17_s25, 6   ;;  %s6892_s22 = smov %s5251_s24 }
 0x25a   : > { %s6893_s23 = smov %s6896_s26  ;;  %s6894_s24 = smov %s6900_s27 }
 0x25b   :  { %16 = sbr.rel (!%p14_p9) target bundleno = 3 (0x3), region = 95 }

// kernel: unet_up_block_forward.6
= control target key start
LH: loop header
LB: loop body
LE: loop exit
PB: predicated region body
PF: predicated region fallthrough
CT: control target
= control target key end

     0   :  { %s3239_s24 = smov 0   ;;  %s3241_s25 = smov 0   ;;  %s4063_s0 = inlined_call_operand.vmem [shape: bf16[4,10,18,128], index: 0, kind: input, shape index: {}]   ;;  %s4064_s1 = inlined_call_operand.vmem [shape: f32[2,1,128], index: 1, kind: input, shape index: {}]   ;;  %s4065_s2 = inlined_call_operand.vmem [shape: f32[2,1,128], index: 2, kind: input, shape index: {}]   ;;  %s4066_s3 = inlined_call_operand.vmem [shape: bf16[3,384,128], index: 3, kind: input, shape index: {}]   ;;  %s4067_s4 = inlined_call_operand.vmem [shape: f32[1,128], index: 4, kind: input, shape index: {}]   ;;  %s4068_s5 = inlined_call_operand.vmem [shape: bf16[2,16,16,128], index: 5, kind: output, shape index: {0}]   ;;  %s4069_s6 = inlined_call_operand.vmem [shape: f32[2,2,1,128], index: 6, kind: output, shape index: {1}]   ;;  %s4070_s7 = inlined_call_operand.vmem [shape: f32[2,2,1,128], index: 7, kind: output, shape index: {2}]  }
   0x1   :  { %s3243_s26 = smov 0   ;;  %s3245_s27 = smov 0  }
   0x2   :  { %s3247_s28 = smov 0  }
   0x3 LB: > { %s27_s29 = sadd.s32 1, %s3189_s26  ;;  %s30_s30 = sadd.s32 1, %s3193_s27  ;;  %s3197_s28 = sphi %s3247_s28, %s18_s28   ;;  %s3193_s27 = sphi %s3245_s27, %s4075_s27   ;;  %s3189_s26 = sphi %s3243_s26, %s4074_s26   ;;  %s3185_s25 = sphi %s3241_s25, %s4073_s25   ;;  %s3181_s24 = sphi %s3239_s24, %s4072_s24  }
   0x4   : > { %p28_p0 = scmp.ge.s32.totalorder %s27_s29, 2  ;;  %p2361_p1 = scmp.ge.s32.totalorder %s3197_s28, 1 }
   0x5   : > { %p284_p2 = scmp.lt.s32.totalorder %s3197_s28, 5 }
   0x6   : > { %s4077_s29 = smov (%p28_p0, %s27_s29), 0  ;;  %s4079_s30 = smov (!%p28_p0, %s30_s30), %s3193_s27 }
   0x7   : > { %p285_p3 = pnand %p2361_p1, %p284_p2  ;;  %p32_p4 = scmp.ge.s32.totalorder %s4079_s30, 2 }
   0x8   : > { %s2362_s16 = sshll.u32 (!%p285_p3), %s3185_s25, 1  ;;  %p352_p6 = scmp.lt.s32.totalorder (!%p285_p3), %s3185_s25, 1 }
   0x9   : > { %s4081_s30 = smov (%p32_p4, %s4079_s30), 0  ;;  %288 = sbr.rel (%p285_p3) target bundleno = 461 (0x1cd), region = 40 }
   0xa   : > { %s344_s23 = sadd.s32 (!%p285_p3), %s3181_s24, %s2362_s16  ;;  %s2364_s11 = sshll.u32 (!%p285_p3), %s3181_s24, 3 }
   0xb   : > { %p345_p5 = scmp.lt.s32.totalorder (!%p285_p3), %s344_s23, 3  ;;  %p3935_p7 = scmp.lt.s32.totalorder (!%p285_p3), %s2364_s11, 15 }
   0xc   : > { %p371_p8 = scmp.lt.s32.totalorder (!%p285_p3), %s3181_s24, 1 }
   0xe   : > { %v3023_v0 = vld [vmem:[%s4066_s3 + $0x138] sm:$0xff]   ;;  %v3026_v3 = vld [vmem:[%s4066_s3 + $0x130] sm:$0xff]   ;;  %v3029_v6 = vld [vmem:[%s4066_s3 + $0x128] sm:$0xff]   ;;  %s4083_s23 = smov (!%p345_p5, %s344_s23), 3  ;;  %s4085_s25 = smov (!%p352_p6, %s3185_s25), 1  ;;  %vm659_vm1 = vcmask 1046528  }
   0xf   : > { %v3024_v1 = vld [vmem:[%s4066_s3 + $0x178] sm:$0xff]   ;;  %2646 = vmatprep.subr.bf16.mxu0 %v3023_v0  ;;  %v3027_v4 = vld [vmem:[%s4066_s3 + $0x170] sm:$0xff]   ;;  %v3030_v7 = vld [vmem:[%s4066_s3 + $0x168] sm:$0xff]   ;;  %s2982_s13 = smul.u32 120, %s4083_s23  ;;  %s354_s9 = scalar_lea.vmem %s4064_s1, %s4085_s25  ;;  %vm538_vm0 = vsmask.f32 7424 }
  0x10   : > { %v3025_v2 = vld [vmem:[%s4066_s3 + $0xf8] sm:$0xff]   ;;  %2886 = vmatprep.subr.bf16.mxu1 %v3024_v1  ;;  %v3028_v5 = vld [vmem:[%s4066_s3 + $0xf0] sm:$0xff]   ;;  %v3031_v8 = vld [vmem:[%s4066_s3 + $0xe8] sm:$0xff]   ;;  %s357_s15 = scalar_lea.vmem %s4065_s2, %s4085_s25  ;;  %s4087_s11 = smov (!%p3935_p7, %s2364_s11), 15 }
  0x11   : > { %2647 = vmatpush3.bf16.msra.mxu0 %v3025_v2  ;;  %2887 = vmatpush3.bf16.msra.mxu1 %v3024_v1  ;;  %v3032_v9 = vld [vmem:[%s4066_s3 + $0x120] sm:$0xff]   ;;  %v3035_v12 = vld [vmem:[%s4066_s3 + $0x118] sm:$0xff]   ;;  %v3038_v15 = vld [vmem:[%s4066_s3 + $0x110] sm:$0xff]   ;;  %s3342_s23 = scalar_lea.vmem %s4063_s0, %s2982_s13  ;;  %s2365_s14 = sshll.u32 %s4087_s11, 1 }
  0x12   : > { %2648 = vmatprep.subr.bf16.mxu0 %v3026_v3  ;;  %2888 = vmatprep.subr.bf16.mxu1 %v3027_v4  ;;  %v3033_v10 = vld [vmem:[%s4066_s3 + $0x160] sm:$0xff]   ;;  %v3036_v13 = vld [vmem:[%s4066_s3 + $0x158] sm:$0xff]   ;;  %v3039_v16 = vld [vmem:[%s4066_s3 + $0x150] sm:$0xff]   ;;  %s4089_s24 = smov (!%p371_p8, %s3181_s24), 1  ;;  %s2368_s20 = sshll.u32 %s4085_s25, 1 }
  0x13   : > { %v3034_v11 = vld [vmem:[%s4066_s3 + $0xe0] sm:$0xff]   ;;  %v3037_v14 = vld [vmem:[%s4066_s3 + $0xd8] sm:$0xff]   ;;  %v3040_v17 = vld [vmem:[%s4066_s3 + $0xd0] sm:$0xff]  }
  0x14   : > { %v3041_v18 = vld [vmem:[%s4066_s3 + $0x108] sm:$0xff]   ;;  %v3044_v21 = vld [vmem:[%s4066_s3 + $0x100] sm:$0xff]   ;;  %v389_v23 = vld [vmem:[%s3342_s23 + $0x14] sm:$0x1] }
  0x15   : > { %2649 = vmatpush3.bf16.msra.mxu0 %v3028_v5  ;;  %2889 = vmatpush3.bf16.msra.mxu1 %v3027_v4  ;;  %v3042_v19 = vld [vmem:[%s4066_s3 + $0x148] sm:$0xff]   ;;  %v3360_v24 = vld [vmem:[%s354_s9] ss:$0 sm:$0xff]  ;;  %v419_v28 = vunpack.c.l.bf16 %v389_v23  ;;  %v2635_v30 = vld [vmem:[%s3342_s23 + $0x18] sm:$0xff]  }
  0x16   : > { %2650 = vmatprep.subr.bf16.mxu0 %v3029_v6  ;;  %2890 = vmatprep.subr.bf16.mxu1 %v3030_v7  ;;  %v3043_v20 = vld [vmem:[%s4066_s3 + $0xc8] sm:$0xff]   ;;  %v3045_v25 = vld [vmem:[%s4066_s3 + $0x140] sm:$0xff]   ;;  %v2581_v31 = vunpack.c.l.bf16 %v2635_v30  ;;  %v2582_v32 = vunpack.c.h.bf16 %v2635_v30  ;;  %v3047_v41 = vld [vmem:[%s4066_s3 + $0x78] sm:$0xff]  }
  0x17   : > { %v387_v22 = vld [vmem:[%s3342_s23 + $0xc] sm:$0xff]   ;;  %v3365_v29 = vld [vmem:[%s357_s15] ss:$0 sm:$0xff]  ;;  %v456_v37 = vmul.f32 %v3360_v24, %v419_v28  ;;  %v3386_v45 = vld [vmem:[%s4066_s3 + $0xb8] sm:$0xff]   ;;  %s2366_s15 = sshll.u32 %s4085_s25, 5 }
  0x18   : > { %v417_v26 = vunpack.c.l.bf16 %v387_v22  ;;  %v418_v27 = vunpack.c.h.bf16 %v387_v22  ;;  %v392_v33 = vld [vmem:[%s3342_s23 + $0x20] sm:$0x1]  ;;  %v457_v39 = vmul.f32 %v2581_v31, %v3360_v24  ;;  %v458_v40 = vmul.f32 %v2582_v32, %v3360_v24  ;;  %v393_v51 = vld [vmem:[%s3342_s23 + $0x24] sm:$0xff]   ;;  %v395_v54 = vld [vmem:[%s3342_s23 + $0x2c] sm:$0x1]  ;;  %s3966_s16 = sadd.s32 %s2366_s15, %s2365_s14 }
  0x19   : > { %2651 = vmatpush3.bf16.msra.mxu0 %v3031_v8  ;;  %2891 = vmatpush3.bf16.msra.mxu1 %v3030_v7  ;;  %v3046_v34 = vld [vmem:[%s4066_s3 + $0xc0] sm:$0xff]   ;;  %v422_v38 = vunpack.c.l.bf16 %v392_v33  ;;  %v493_v44 = vadd.f32 %v3365_v29, %v456_v37  ;;  %v423_v55 = vunpack.c.l.bf16 %v393_v51  ;;  %v424_v56 = vunpack.c.h.bf16 %v393_v51  ;;  %v3049_v0 = vld [vmem:[%s4066_s3 + $0x38] sm:$0xff]   ;;  %v2636_v6 = vld [vmem:[%s3342_s23 + $0x30] sm:$0xff]   ;;  %s2367_s17 = sshll.u32 %s3966_s16, 2 }
  0x1a   : > { %2652 = vmatprep.subr.bf16.mxu0 %v3032_v9  ;;  %2892 = vmatprep.subr.bf16.mxu1 %v3033_v10  ;;  %v454_v35 = vmul.f32 %v3360_v24, %v417_v26  ;;  %v455_v36 = vmul.f32 %v3360_v24, %v418_v27  ;;  %v494_v47 = vadd.f32 %v3365_v29, %v457_v39  ;;  %v425_v5 = vunpack.c.l.bf16 %v395_v54  ;;  %v398_v7 = vld [vmem:[%s3342_s23 + $0x38] sm:$0x1]  ;;  %v3053_v27 = vld [vmem:[%s4066_s3 + $0xb0] sm:$0xff]   ;;  %v401_v28 = vld [vmem:[%s3342_s23 + $0x44] sm:$0x1]  ;;  %s3988_s19 = scalar_lea.vmem %s4068_s5, %s2367_s17 }
  0x1b   : > { %v459_v46 = vmul.f32 %v3360_v24, %v422_v38  ;;  %v495_v48 = vadd.f32 %v3365_v29, %v458_v40  ;;  %v521_v50 = vpack.c.bf16 %v493_v44, %v493_v44  ;;  %v3051_v30 = vld [vmem:[%s4066_s3 + $0x30] sm:$0xff]   ;;  %v2586_v31 = vunpack.c.h.bf16 %v2636_v6  ;;  %v3052_v38 = vld [vmem:[%s4066_s3 + $0x68] sm:$0xff]  }
  0x1c   : > { %v491_v42 = vadd.f32 %v3365_v29, %v454_v35  ;;  %v492_v43 = vadd.f32 %v3365_v29, %v455_v36  ;;  %v428_v32 = vunpack.c.l.bf16 %v398_v7  ;;  %v431_v44 = vunpack.c.l.bf16 %v401_v28 }
  0x1d   : > { %2653 = vmatpush3.bf16.msra.mxu0 %v3034_v11  ;;  %2893 = vmatpush3.bf16.msra.mxu1 %v3033_v10  ;;  %v496_v52 = vadd.f32 %v3365_v29, %v459_v46  ;;  %v3395_v53 = vpack.c.bf16 %v495_v48, %v494_v47  ;;  %v559_v59 = vshll.u32 %v521_v50, 16  ;;  %v664_v61 = vrot.slane %v521_v50, 1  ;;  %v3058_v46 = vld [vmem:[%s4066_s3 + $0xa8] sm:$0xff]  }
  0x1e   : > { %2654 = vmatprep.subr.bf16.mxu0 %v3035_v12  ;;  %2894 = vmatprep.subr.bf16.mxu1 %v3036_v13  ;;  %v3391_v49 = vpack.c.bf16 %v492_v43, %v491_v42  ;;  %v460_v11 = vmul.f32 %v3360_v24, %v423_v55  ;;  %v464_v40 = vmul.f32 %v2586_v31, %v3360_v24  ;;  %v3054_v43 = vld [vmem:[%s4066_s3 + $0x28] sm:$0xff]   ;;  %v3060_v31 = vld [vmem:[%s4066_s3 + $0x50] sm:$0xff]  }
  0x1f   : > { %v523_v62 = vpack.c.bf16 %v496_v52, %v496_v52  ;;  %v666_v63 = vrot.slane %v3395_v53, 1  ;;  %v564_v1 = vshrl.u32 %v3395_v53, 16  ;;  %v561_v3 = vrot.slane %v559_v59, 1 }
  0x20   : > { %v552_v57 = vshrl.u32 %v3391_v49, 16  ;;  %v554_v58 = vshll.u32 %v3391_v49, 16  ;;  %v663_v60 = vrot.slane %v3391_v49, 1  ;;  %v566_v4 = vshll.u32 %v3395_v53, 16 }
  0x21   : > { %2655 = vmatpush3.bf16.msra.mxu0 %v3037_v14  ;;  %2895 = vmatpush3.bf16.msra.mxu1 %v3036_v13  ;;  %v667_v9 = vrot.slane %v523_v62, 1  ;;  %v571_v10 = vshll.u32 %v523_v62, 16  ;;  %v3050_v13 = vld [vmem:[%s4066_s3 + $0x70] sm:$0xff]   ;;  %v501_v51 = vadd.f32 %v3365_v29, %v464_v40 }
  0x22   : > { %2656 = vmatprep.subr.bf16.mxu0 %v3038_v15  ;;  %2896 = vmatprep.subr.bf16.mxu1 %v3039_v16  ;;  %v556_v2 = vrot.slane %v554_v58, 1  ;;  %v3411_v8 = vsel %vm659_vm1, %v663_v60, %v664_v61  ;;  %v568_v14 = vrot.slane %v566_v4, 1  ;;  %v461_v15 = vmul.f32 %v3360_v24, %v424_v56  ;;  %v2637_v56 = vld [vmem:[%s3342_s23 + $0x48] sm:$0xff]   ;;  %v3055_v58 = vld [vmem:[%s4066_s3 + $0x60] sm:$0xff]   ;;  %v404_v62 = vld [vmem:[%s3342_s23 + $0x50] sm:$0x1] }
  0x23   : > { %2902 = vmatprep.mubr.bf16.mxu1 %v3411_v8  ;;  %v468_v61 = vmul.f32 %v3360_v24, %v431_v44  ;;  %v2589_v7 = vunpack.c.l.bf16 %v2637_v56 }
  0x24   : > { %v557_v12 = vor.u32 %v556_v2, %v552_v57  ;;  %v569_v23 = vor.u32 %v568_v14, %v564_v1  ;;  %v3056_v1 = vld [vmem:[%s4066_s3 + $0x20] sm:$0xff]   ;;  %v434_v14 = vunpack.c.l.bf16 %v404_v62 }
  0x25   : > { %2657 = vmatpush3.bf16.msra.mxu0 %v3040_v17  ;;  %2897 = vmatpush3.bf16.msra.mxu1 %v3039_v16  ;;  %v462_v16 = vmul.f32 %v3360_v24, %v425_v5  ;;  %v3421_v17 = vsel %vm659_vm1, %v666_v63, %v667_v9  ;;  %v3057_v9 = vld [vmem:[%s4066_s3 + $0x58] sm:$0xff]  }
  0x26   : > { %2658 = vmatprep.subr.bf16.mxu0 %v3041_v18  ;;  %2898 = vmatprep.subr.bf16.mxu1 %v3042_v19  ;;  %v573_v18 = vrot.slane %v571_v10, 1  ;;  %v3426_v22 = vsel %vm538_vm0, %v557_v12, %v561_v3  ;;  %v405_v10 = vld [vmem:[%s3342_s23 + $0x54] sm:$0xff]  }
  0x27   : > { %v499_v26 = vadd.f32 %v3365_v29, %v462_v16  ;;  %984 = vmatprep.mubr.bf16.mxu0 %v3426_v22  ;;  %v435_v40 = vunpack.c.l.bf16 %v405_v10 }
  0x28   : > { %v3442_v35 = vsel %vm538_vm0, %v569_v23, %v573_v18  ;;  %v469_v23 = vmul.f32 %v2589_v7, %v3360_v24 }
  0x29   : > { %2659 = vmatpush3.bf16.msra.mxu0 %v3043_v20  ;;  %2899 = vmatpush3.bf16.msra.mxu1 %v3042_v19  ;;  %v497_v19 = vadd.f32 %v3365_v29, %v460_v11  ;;  %v2585_v20 = vunpack.c.l.bf16 %v2636_v6  ;;  %v525_v37 = vpack.c.bf16 %v499_v26, %v499_v26  ;;  %v505_v6 = vadd.f32 %v3365_v29, %v468_v61 }
  0x2a   : > { %2660 = vmatprep.subr.bf16.mxu0 %v3044_v21  ;;  %2900 = vmatprep.subr.bf16.mxu1 %v3045_v25  ;;  %v399_v21 = vld [vmem:[%s3342_s23 + $0x3c] sm:$0xff]   ;;  %v471_v26 = vmul.f32 %v3360_v24, %v434_v14 }
  0x2b   : > { %v463_v33 = vmul.f32 %v2585_v20, %v3360_v24  ;;  %v430_v39 = vunpack.c.h.bf16 %v399_v21  ;;  %v670_v47 = vrot.slane %v525_v37, 1  ;;  %v583_v54 = vshll.u32 %v525_v37, 16  ;;  %v3063_v20 = vld [vmem:[%s4066_s3 + $0xa0] sm:$0xff]  }
  0x2c   : > { %v3496_v18 = vpack.c.bf16 %v505_v6, %v505_v6  ;;  %v506_v37 = vadd.f32 %v3365_v29, %v469_v23  ;;  %v3064_v23 = vld [vmem:[%s4066_s3 + $0x8] sm:$0xff]  }
  0x2d   : > { %2661 = vmatpush3.bf16.msra.mxu0 %v3046_v34  ;;  %2901 = vmatpush3.bf16.msra.mxu1 %v3045_v25  ;;  %v498_v25 = vadd.f32 %v3365_v29, %v461_v15  ;;  %v429_v34 = vunpack.c.l.bf16 %v399_v21  ;;  %v500_v42 = vadd.f32 %v3365_v29, %v463_v33  ;;  %v467_v60 = vmul.f32 %v3360_v24, %v430_v39 }
  0x2e   : > { %2726 = vmatprep.subr.bf16.mxu1 %v3047_v41  ;;  %2918 = vmatprep.subr.bf16.mxu0 %v3386_v45  ;;  %v465_v41 = vmul.f32 %v3360_v24, %v428_v32  ;;  %v585_v2 = vrot.slane %v583_v54, 1  ;;  %v508_v39 = vadd.f32 %v3365_v29, %v471_v26  ;;  %v3067_v54 = vld [vmem:[%s4066_s3 + $0x98] sm:$0xff]  }
  0x2f   : > { %v3444_v36 = vpack.c.bf16 %v498_v25, %v497_v19  ;;  %v466_v55 = vmul.f32 %v3360_v24, %v429_v34  ;;  %v3477_v63 = vpack.c.bf16 %v501_v51, %v500_v42  ;;  %v504_v5 = vadd.f32 %v3365_v29, %v467_v60  ;;  %v407_v34 = vld [vmem:[%s3342_s23 + $0x5c] sm:$0x1]  ;;  %v3062_v60 = vld [vmem:[%s4066_s3 + $0x48] sm:$0xff]  }
  0x30   : > { %2903 = vmatmul.mubr.bf16.vlgmr.msra.gmra.mxu1 %v3421_v17  ;;  %985 = vmatmul.mubr.bf16.vlgmr.msra.gmra.mxu0 %v3391_v49  ;;  %v502_v52 = vadd.f32 %v3365_v29, %v465_v41  ;;  %v2638_v41 = vld [vmem:[%s3342_s23 + $0x60] sm:$0xff]   ;;  %v437_v51 = vunpack.c.l.bf16 %v407_v34 }
  0x31   : > { %2727 = vmatpush3.bf16.msra.mxu1 %v3049_v0  ;;  %2919 = vmatpush3.bf16.msra.mxu0 %v3386_v45  ;;  %v669_v45 = vrot.slane %v3444_v36, 1  ;;  %v576_v48 = vshrl.u32 %v3444_v36, 16  ;;  %v578_v50 = vshll.u32 %v3444_v36, 16  ;;  %v503_v3 = vadd.f32 %v3365_v29, %v466_v55  ;;  %v3065_v34 = vld [vmem:[%s4066_s3 + $0x40] sm:$0xff]  }
  0x32   : > { %2728 = vmatprep.subr.bf16.mxu1 %v3050_v13  ;;  %992 = vmatprep.mubr.bf16.mxu0 %v3442_v35  ;;  %v527_v0 = vpack.c.bf16 %v502_v52, %v502_v52  ;;  %v672_v11 = vrot.slane %v3477_v63, 1  ;;  %v2590_v13 = vunpack.c.h.bf16 %v2637_v56  ;;  %v588_v19 = vshrl.u32 %v3477_v63, 16 }
  0x33   : > { %2920 = vmatprep.subr.bf16.mxu0 %v3053_v27  ;;  %v3468_v57 = vsel %vm659_vm1, %v669_v45, %v670_v47  ;;  %v580_v59 = vrot.slane %v578_v50, 1  ;;  %v3494_v16 = vpack.c.bf16 %v504_v5, %v503_v3  ;;  %v590_v32 = vshll.u32 %v3477_v63, 16  ;;  %v410_v45 = vld [vmem:[%s3342_s23 + $0x68] sm:$0x1]  ;;  %v3061_v50 = vld [vmem:[%s4066_s3 + $0x10] sm:$0xff]  }
  0x34   : > { %2906 = vmatprep.mubr.bf16.mxu1 %v3468_v57  ;;  %v673_v12 = vrot.slane %v527_v0, 1  ;;  %v470_v25 = vmul.f32 %v2590_v13, %v3360_v24  ;;  %v595_v33 = vshll.u32 %v527_v0, 16  ;;  %v472_v52 = vmul.f32 %v3360_v24, %v435_v40  ;;  %v3068_v3 = vld [vmem:[%s4066_s3 + $0x90] sm:$0xff]  }
  0x35   : > { %2729 = vmatpush3.bf16.msra.mxu1 %v3051_v30  ;;  %2921 = vmatpush3.bf16.msra.mxu0 %v3053_v27  ;;  %v581_v4 = vor.u32 %v580_v59, %v576_v48  ;;  %v3059_v27 = vld [vmem:[%s4066_s3 + $0x18] sm:$0xff]   ;;  %v675_v28 = vrot.slane %v3494_v16, 1  ;;  %v676_v30 = vrot.slane %v3496_v18, 1  ;;  %v3531_v48 = vpack.c.bf16 %v508_v39, %v508_v39 }
  0x36   : > { %2730 = vmatprep.subr.bf16.mxu1 %v3052_v38  ;;  %2922 = vmatprep.subr.bf16.mxu0 %v3058_v46  ;;  %v3503_v21 = vsel %vm659_vm1, %v672_v11, %v673_v12  ;;  %v507_v38 = vadd.f32 %v3365_v29, %v470_v25  ;;  %v597_v44 = vrot.slane %v595_v33, 1  ;;  %v2594_v59 = vunpack.c.h.bf16 %v2638_v41 }
  0x37   : > { %v3492_v15 = vsel %vm538_vm0, %v581_v4, %v585_v2  ;;  %v3525_v42 = vsel %vm659_vm1, %v675_v28, %v676_v30  ;;  %v679_v62 = vrot.slane %v3531_v48, 1  ;;  %v474_v0 = vmul.f32 %v3360_v24, %v437_v51  ;;  %v2576_v2 = vld [vmem:[%s3342_s23] sm:$0xff]  }
  0x38   : > { %993 = vmatmul.mubr.bf16.gmra.mxu0 %v3395_v53  ;;  %2907 = vmatmul.mubr.bf16.gmra.mxu1 %v3503_v21  ;;  %v3529_v47 = vpack.c.bf16 %v507_v38, %v506_v37  ;;  %v440_v6 = vunpack.c.l.bf16 %v410_v45  ;;  %v476_v12 = vmul.f32 %v2594_v59, %v3360_v24  ;;  %v600_v13 = vshrl.u32 %v3494_v16, 16 }
  0x39   : > { %2731 = vmatpush3.bf16.msra.mxu1 %v3054_v43  ;;  %1000 = vmatprep.mubr.bf16.mxu0 %v3492_v15  ;;  %v592_v43 = vrot.slane %v590_v32, 1  ;;  %v511_v11 = vadd.f32 %v3365_v29, %v474_v0  ;;  %v602_v25 = vshll.u32 %v3494_v16, 16  ;;  %v607_v28 = vshll.u32 %v3496_v18, 16 }
  0x3a   : > { %2732 = vmatprep.subr.bf16.mxu1 %v3055_v58  ;;  %2923 = vmatpush3.bf16.msra.mxu0 %v3058_v46  ;;  %v436_v46 = vunpack.c.h.bf16 %v405_v10  ;;  %v2593_v58 = vunpack.c.l.bf16 %v2638_v41  ;;  %v678_v61 = vrot.slane %v3529_v47, 1  ;;  %v2577_v30 = vunpack.c.l.bf16 %v2576_v2 }
  0x3b   : > { %2924 = vmatprep.subr.bf16.mxu0 %v3063_v20  ;;  %2910 = vmatprep.mubr.bf16.mxu1 %v3525_v42  ;;  %v593_v55 = vor.u32 %v592_v43, %v588_v19  ;;  %v477_v19 = vmul.f32 %v3360_v24, %v440_v6  ;;  %v3575_v26 = vpack.c.bf16 %v511_v11, %v511_v11  ;;  %v604_v37 = vrot.slane %v602_v25, 1 }
  0x3c   : > { %v473_v56 = vmul.f32 %v3360_v24, %v436_v46  ;;  %v475_v7 = vmul.f32 %v2593_v58, %v3360_v24  ;;  %v3560_v10 = vsel %vm659_vm1, %v678_v61, %v679_v62  ;;  %v2578_v38 = vunpack.c.h.bf16 %v2576_v2  ;;  %v3071_v2 = vld [vmem:[%s4066_s3 + $0x238] sm:$0xff]  }
  0x3d   : > { %2733 = vmatpush3.bf16.msra.mxu1 %v3056_v1  ;;  %v509_v1 = vadd.f32 %v3365_v29, %v472_v52  ;;  %v3554_v4 = vsel %vm538_vm0, %v593_v55, %v597_v44  ;;  %v514_v33 = vadd.f32 %v3365_v29, %v477_v19  ;;  %v682_v39 = vrot.slane %v3575_v26, 1 }
  0x3e   : > { %2734 = vmatprep.subr.bf16.mxu1 %v3057_v9  ;;  %2925 = vmatpush3.bf16.msra.mxu0 %v3063_v20  ;;  %v510_v5 = vadd.f32 %v3365_v29, %v473_v56  ;;  %v386_v9 = vld [vmem:[%s3342_s23 + $0x8] sm:$0x1]  ;;  %v512_v20 = vadd.f32 %v3365_v29, %v475_v7  ;;  %v609_v40 = vrot.slane %v607_v28, 1  ;;  %v605_v44 = vor.u32 %v604_v37, %v600_v13  ;;  %v3066_v56 = vld [vmem:[%s4066_s3] sm:$0xff]  }
  0x3f   : > { %2926 = vmatprep.subr.bf16.mxu0 %v3067_v54  ;;  %v416_v41 = vunpack.c.l.bf16 %v386_v9  ;;  %v3590_v43 = vpack.c.bf16 %v514_v33, %v514_v33  ;;  %v451_v46 = vmul.f32 %v2577_v30, %v3360_v24  ;;  %v452_v45 = vmul.f32 %v2578_v38, %v3360_v24  ;;  %v3076_v33 = vld [vmem:[%s4066_s3 + $0x230] sm:$0xff]  }
  0x40   : > { %1001 = vmatmul.mubr.bf16.gmra.mxu0 %v3444_v36  ;;  %2911 = vmatmul.mubr.bf16.gmra.mxu1 %v3560_v10  ;;  %v3567_v14 = vpack.c.bf16 %v510_v5, %v509_v1  ;;  %v3609_v58 = vsel %vm538_vm0, %v605_v44, %v609_v40  ;;  %v612_v62 = vshrl.u32 %v3529_v47, 16  ;;  %v614_v0 = vshll.u32 %v3529_v47, 16  ;;  %v3079_v40 = vld [vmem:[%s4066_s3 + $0x228] sm:$0xff]  }
  0x41   : > { %2735 = vmatpush3.bf16.msra.mxu1 %v3059_v27  ;;  %1008 = vmatprep.mubr.bf16.mxu0 %v3554_v4  ;;  %v513_v27 = vadd.f32 %v3365_v29, %v476_v12  ;;  %v453_v52 = vmul.f32 %v3360_v24, %v416_v41  ;;  %v756_v55 = vrot.slane %v3590_v43, 1  ;;  %v488_v59 = vadd.f32 %v3365_v29, %v451_v46 }
  0x42   : > { %2736 = vmatprep.subr.bf16.mxu1 %v3060_v31  ;;  %2927 = vmatpush3.bf16.msra.mxu0 %v3067_v54  ;;  %v3069_v31 = vld [vmem:[%s4066_s3 + $0x88] sm:$0xff]   ;;  %v681_v32 = vrot.slane %v3567_v14, 1  ;;  %v3070_v54 = vld [vmem:[%s4066_s3 + $0x80] sm:$0xff]   ;;  %v619_v1 = vshll.u32 %v3531_v48, 16  ;;  %v626_v6 = vshll.u32 %v3567_v14, 16  ;;  %v616_v9 = vrot.slane %v614_v0, 1 }
  0x43   : > { %2928 = vmatprep.subr.bf16.mxu0 %v3068_v3  ;;  %v3588_v18 = vpack.c.bf16 %v513_v27, %v512_v20  ;;  %v490_v61 = vadd.f32 %v3365_v29, %v453_v52  ;;  %v3072_v48 = vld [vmem:[%s4066_s3 + $0x1f8] sm:$0xff]   ;;  %v624_v25 = vshrl.u32 %v3567_v14, 16  ;;  %v631_v28 = vshll.u32 %v3575_v26, 16  ;;  %v411_v52 = vld [vmem:[%s3342_s23 + $0x6c] sm:$0xff]  }
  0x44   : > { %v621_v11 = vrot.slane %v619_v1, 1  ;;  %v617_v20 = vor.u32 %v616_v9, %v612_v62  ;;  %v628_v27 = vrot.slane %v626_v6, 1  ;;  %v748_v46 = vshll.u32 %v3590_v43, 16 }
  0x45   : > { %2737 = vmatpush3.bf16.msra.mxu1 %v3061_v50  ;;  %v3595_v50 = vsel %vm659_vm1, %v681_v32, %v682_v39  ;;  %v755_v51 = vrot.slane %v3588_v18, 1  ;;  %v3628_v7 = vpack.c.bf16 %v490_v61, %v490_v61  ;;  %v633_v38 = vrot.slane %v631_v28, 1 }
  0x46   : > { %2738 = vmatprep.subr.bf16.mxu1 %v3062_v60  ;;  %2929 = vmatpush3.bf16.msra.mxu0 %v3068_v3  ;;  %v489_v60 = vadd.f32 %v3365_v29, %v452_v45  ;;  %v629_v37 = vor.u32 %v628_v27, %v624_v25  ;;  %v743_v26 = vshll.u32 %v3588_v18, 16  ;;  %v741_v39 = vshrl.u32 %v3588_v18, 16 }
  0x47   : > { %2930 = vmatprep.subr.bf16.mxu0 %v3069_v31  ;;  %2914 = vmatprep.mubr.bf16.mxu1 %v3595_v50  ;;  %v3622_v3 = vsel %vm659_vm1, %v755_v51, %v756_v55  ;;  %v547_v19 = vshll.u32 %v3628_v7, 16  ;;  %v750_v45 = vrot.slane %v748_v46, 1  ;;  %v3082_v51 = vld [vmem:[%s4066_s3 + $0x220] sm:$0xff]   ;;  %v441_v55 = vunpack.c.l.bf16 %v411_v52  ;;  %v3086_v46 = vld [vmem:[%s4066_s3 + $0x1d0] sm:$0xff]  }
  0x48   : > { %1009 = vmatmul.mubr.bf16.gmra.mxu0 %v3477_v63  ;;  %v3624_v5 = vpack.c.bf16 %v489_v60, %v488_v59  ;;  %2915 = vmatmul.mubr.bf16.gmra.mxu1 %v3622_v3  ;;  %v3655_v41 = vsel %vm538_vm0, %v629_v37, %v633_v38  ;;  %v745_v44 = vrot.slane %v743_v26, 1  ;;  %v3085_v60 = vld [vmem:[%s4066_s3 + $0x218] sm:$0xff]   ;;  %v661_v9 = vrot.slane %v3628_v7, 1  ;;  %v3075_v37 = vld [vmem:[%s4066_s3 + $0x1b0] sm:$0xff]   ;;  %v3077_v38 = vld [vmem:[%s4066_s3 + $0x1e8] sm:$0xff]  }
  0x49   : > { %2739 = vmatpush3.bf16.msra.mxu1 %v3064_v23  ;;  %1016 = vmatprep.mubr.bf16.mxu0 %v3609_v58  ;;  %v549_v30 = vrot.slane %v547_v19, 1  ;;  %v478_v61 = vmul.f32 %v3360_v24, %v441_v55  ;;  %v3080_v26 = vld [vmem:[%s4066_s3 + $0x1e0] sm:$0xff]  }
  0x4a   : > { %2740 = vmatprep.subr.bf16.mxu1 %v3065_v34  ;;  %2931 = vmatpush3.bf16.msra.mxu0 %v3069_v31  ;;  %v540_v12 = vshrl.u32 %v3624_v5, 16  ;;  %v542_v13 = vshll.u32 %v3624_v5, 16  ;;  %v3639_v31 = vsel %vm538_vm0, %v617_v20, %v621_v11  ;;  %v660_v6 = vrot.slane %v3624_v5, 1  ;;  %v3091_v20 = vld [vmem:[%s4066_s3 + $0x208] sm:$0xff]  }
  0x4b   : > { %2932 = vmatprep.subr.bf16.mxu0 %v3070_v54  ;;  %v515_v0 = vadd.f32 %v3365_v29, %v478_v61 }
  0x4c   : > { %v544_v23 = vrot.slane %v542_v13, 1  ;;  %v662_v19 = vsel %vm659_vm1, %v660_v6, %v661_v9 }
  0x4d   : > { %2741 = vmatpush3.bf16.msra.mxu1 %v3066_v56  ;;  %v442_v56 = vunpack.c.h.bf16 %v411_v52  ;;  %v3092_v52 = vld [vmem:[%s4066_s3 + $0x1c0] sm:$0xff]  }
  0x4e   : > { %2950 = vmatprep.subr.bf16.mxu1 %v3071_v2  ;;  %2933 = vmatpush3.bf16.msra.mxu0 %v3070_v54  ;;  %v545_v32 = vor.u32 %v544_v23, %v540_v12  ;;  %v413_v54 = vld [vmem:[%s3342_s23 + $0x74] sm:$0x1]  ;;  %s374_s23 = sadd.s32 %s2368_s20, %s4089_s24 }
  0x4f   : > { %2806 = vmatprep.subr.bf16.mxu0 %v3072_v48  ;;  %v443_v43 = vunpack.c.l.bf16 %v413_v54  ;;  %v479_v62 = vmul.f32 %v3360_v24, %v442_v56  ;;  %v3093_v54 = vld [vmem:[%s4066_s3 + $0x180] sm:$0xff]   ;;  %s375_s8 = scalar_lea.vmem %s4069_s6, %s374_s23  ;;  %s382_s11 = scalar_lea.vmem %s4070_s7, %s374_s23 }
  0x50   : > { %1017 = vmatmul.mubr.bf16.gmra.mxu0 %v3494_v16  ;;  %v550_v34 = vsel %vm538_vm0, %v545_v32, %v549_v30  ;;  %v3094_v30 = vld [vmem:[%s4066_s3 + $0x200] sm:$0xff]  }
  0x51   : > { %1024 = vmatprep.mubr.bf16.mxu0 %v3639_v31  ;;  %1322 = vmatprep.mubr.bf16.mxu1 %v550_v34  ;;  %v516_v1 = vadd.f32 %v3365_v29, %v479_v62  ;;  %v3074_v34 = vld [vmem:[%s4066_s3 + $0x1f0] sm:$0xff]  }
  0x52   : > { %1323 = vmatmul.mubr.bf16.vlgmr.msra.gmra.mxu1 %v3624_v5 }
  0x53   : > { %1330 = vmatprep.mubr.bf16.mxu1 %v3426_v22  ;;  %2951 = vmatpush3.bf16.msra.mxu1 %v3071_v2  ;;  %v746_v22 = vor.u32 %v745_v44, %v741_v39  ;;  %v3686_v11 = vpack.c.bf16 %v516_v1, %v515_v0  ;;  %v3081_v39 = vld [vmem:[%s4066_s3 + $0x1a0] sm:$0xff]   ;;  %v3084_v44 = vld [vmem:[%s4066_s3 + $0x198] sm:$0xff]  }
  0x54   : > { %2952 = vmatprep.subr.bf16.mxu1 %v3076_v33 }
  0x55   : > { %v3668_v59 = vsel %vm538_vm0, %v746_v22, %v750_v45  ;;  %v1499_v12 = vrot.slane %v3686_v11, 1  ;;  %v1485_v13 = vshrl.u32 %v3686_v11, 16  ;;  %v3087_v22 = vld [vmem:[%s4066_s3 + $0x190] sm:$0xff]   ;;  %v3089_v45 = vld [vmem:[%s4066_s3 + $0x1c8] sm:$0xff]  }
  0x57   : > { %2953 = vmatpush3.bf16.msra.mxu1 %v3076_v33  ;;  %v3073_v33 = vld [vmem:[%s4066_s3 + $0x1b8] sm:$0xff]  }
  0x58   : > { %1025 = vmatmul.mubr.bf16.gmra.mxu0 %v3529_v47  ;;  %2954 = vmatprep.subr.bf16.mxu1 %v3079_v40 }
  0x59   : > { %1032 = vmatprep.mubr.bf16.mxu0 %v3655_v41 }
  0x5a   : > { %1331 = vmatmul.mubr.bf16.gmra.mxu1 %v3391_v49  ;;  %v480_v49 = vmul.f32 %v3360_v24, %v443_v43  ;;  %v3088_v24 = vld [vmem:[%s4066_s3 + $0x210] sm:$0xff]  }
  0x5b   : > { %1338 = vmatprep.mubr.bf16.mxu1 %v3442_v35  ;;  %2955 = vmatpush3.bf16.msra.mxu1 %v3079_v40  ;;  %v3083_v40 = vld [vmem:[%s4066_s3 + $0x1d8] sm:$0xff]  }
  0x5c   : > { %2956 = vmatprep.subr.bf16.mxu1 %v3082_v51  ;;  %v517_v2 = vadd.f32 %v3365_v29, %v480_v49  ;;  %v1487_v29 = vshll.u32 %v3686_v11, 16 }
  0x5e   : > { %v537_v48 = vpack.c.bf16 %v517_v2, %v517_v2  ;;  %v1489_v23 = vrot.slane %v1487_v29, 1 }
  0x5f   : > { %2957 = vmatpush3.bf16.msra.mxu1 %v3082_v51  ;;  %v3090_v51 = vld [vmem:[%s4066_s3 + $0x188] sm:$0xff]  }
  0x60   : > { %1033 = vmatmul.mubr.bf16.gmra.mxu0 %v3567_v14  ;;  %2958 = vmatprep.subr.bf16.mxu1 %v3085_v60  ;;  %v1500_v5 = vrot.slane %v537_v48, 1  ;;  %v1492_v7 = vshll.u32 %v537_v48, 16  ;;  %v1490_v28 = vor.u32 %v1489_v23, %v1485_v13 }
  0x61   : > { %1040 = vmatprep.mubr.bf16.mxu0 %v3668_v59 }
  0x62   : > { %1339 = vmatmul.mubr.bf16.gmra.mxu1 %v3395_v53  ;;  %v3698_v25 = vsel %vm659_vm1, %v1499_v12, %v1500_v5  ;;  %v1494_v27 = vrot.slane %v1492_v7, 1 }
  0x63   : > { %1346 = vmatprep.mubr.bf16.mxu1 %v3492_v15  ;;  %2959 = vmatpush3.bf16.msra.mxu1 %v3085_v60 }
  0x64   : > { %2960 = vmatprep.subr.bf16.mxu1 %v3088_v24  ;;  %v3705_v32 = vsel %vm538_vm0, %v1490_v28, %v1494_v27 }
  0x67   : > { %2961 = vmatpush3.bf16.msra.mxu1 %v3088_v24 }
  0x68   : > { %1041 = vmatmul.mubr.bf16.gmra.mxu0 %v3588_v18  ;;  %2962 = vmatprep.subr.bf16.mxu1 %v3091_v20 }
  0x69   : > { %2934 = vmatprep.mubr.bf16.mxu0 %v662_v19 }
  0x6a   : > { %1347 = vmatmul.mubr.bf16.gmra.mxu1 %v3444_v36 }
  0x6b   : > { %1354 = vmatprep.mubr.bf16.mxu1 %v3554_v4  ;;  %2963 = vmatpush3.bf16.msra.mxu1 %v3091_v20 }
  0x6c   : > { %2964 = vmatprep.subr.bf16.mxu1 %v3094_v30 }
  0x6f   : > { %2965 = vmatpush3.bf16.msra.mxu1 %v3094_v30 }
  0x70   : > { %2935 = vmatmul.mubr.bf16.vlgmr.msra.gmra.mxu0 %v3411_v8  ;;  %v3078_v8 = vld [vmem:[%s4066_s3 + $0x1a8] sm:$0xff]  }
  0x71   : > { %2807 = vmatpush3.bf16.msra.mxu0 %v3073_v33  ;;  %2938 = vmatprep.mubr.bf16.mxu0 %v3421_v17 }
  0x72   : > { %2808 = vmatprep.subr.bf16.mxu0 %v3074_v34  ;;  %1355 = vmatmul.mubr.bf16.gmra.mxu1 %v3477_v63 }
  0x73   : > { %1362 = vmatprep.mubr.bf16.mxu1 %v3609_v58 }
  0x75   : > { %2809 = vmatpush3.bf16.msra.mxu0 %v3075_v37 }
  0x76   : > { %2810 = vmatprep.subr.bf16.mxu0 %v3077_v38 }
  0x78   : > { %2939 = vmatmul.mubr.bf16.gmra.mxu0 %v3468_v57 }
  0x79   : > { %2811 = vmatpush3.bf16.msra.mxu0 %v3078_v8  ;;  %2942 = vmatprep.mubr.bf16.mxu0 %v3503_v21 }
  0x7a   : > { %2812 = vmatprep.subr.bf16.mxu0 %v3080_v26  ;;  %1363 = vmatmul.mubr.bf16.gmra.mxu1 %v3494_v16 }
  0x7b   : > { %1370 = vmatprep.mubr.bf16.mxu1 %v3639_v31 }
  0x7d   : > { %2813 = vmatpush3.bf16.msra.mxu0 %v3081_v39 }
  0x7e   : > { %2814 = vmatprep.subr.bf16.mxu0 %v3083_v40 }
  0x80   : > { %2943 = vmatmul.mubr.bf16.gmra.mxu0 %v3525_v42 }
  0x81   : > { %2815 = vmatpush3.bf16.msra.mxu0 %v3084_v44  ;;  %2946 = vmatprep.mubr.bf16.mxu0 %v3560_v10 }
  0x82   : > { %2816 = vmatprep.subr.bf16.mxu0 %v3086_v46  ;;  %1371 = vmatmul.mubr.bf16.gmra.mxu1 %v3529_v47 }
  0x83   : > { %1378 = vmatprep.mubr.bf16.mxu1 %v3655_v41 }
  0x85   : > { %2817 = vmatpush3.bf16.msra.mxu0 %v3087_v22 }
  0x86   : > { %2818 = vmatprep.subr.bf16.mxu0 %v3089_v45 }
  0x88   : > { %2947 = vmatmul.mubr.bf16.gmra.mxu0 %v3595_v50 }
  0x89   : > { %2819 = vmatpush3.bf16.msra.mxu0 %v3090_v51  ;;  %1728 = vmatprep.mubr.bf16.mxu0 %v3442_v35 }
  0x8a   : > { %2820 = vmatprep.subr.bf16.mxu0 %v3092_v52  ;;  %1379 = vmatmul.mubr.bf16.gmra.mxu1 %v3567_v14 }
  0x8b   : > { %2966 = vmatprep.mubr.bf16.mxu1 %v3421_v17 }
  0x8d   : > { %2821 = vmatpush3.bf16.msra.mxu0 %v3093_v54 }
  0x90   : > { %1729 = vmatmul.mubr.bf16.vlgmr.msra.gmra.mxu0 %v3395_v53 }
  0x91   : > { %1736 = vmatprep.mubr.bf16.mxu0 %v3492_v15 }
  0x92   : > { %2967 = vmatmul.mubr.bf16.vlgmr.msra.gmra.mxu1 %v3468_v57 }
  0x93   : > { %2970 = vmatprep.mubr.bf16.mxu1 %v3503_v21 }
  0x98   : > { %1737 = vmatmul.mubr.bf16.gmra.mxu0 %v3444_v36 }
  0x99   : > { %1744 = vmatprep.mubr.bf16.mxu0 %v3554_v4 }
  0x9a   : > { %2971 = vmatmul.mubr.bf16.gmra.mxu1 %v3525_v42 }
  0x9b   : > { %2974 = vmatprep.mubr.bf16.mxu1 %v3560_v10 }
  0xa0   : > { %1745 = vmatmul.mubr.bf16.gmra.mxu0 %v3477_v63 }
  0xa1   : > { %1752 = vmatprep.mubr.bf16.mxu0 %v3609_v58 }
  0xa2   : > { %2975 = vmatmul.mubr.bf16.gmra.mxu1 %v3595_v50 }
  0xa3   : > { %2978 = vmatprep.mubr.bf16.mxu1 %v3622_v3 }
  0xa8   : > { %1753 = vmatmul.mubr.bf16.gmra.mxu0 %v3494_v16 }
  0xa9   : > { %1760 = vmatprep.mubr.bf16.mxu0 %v3639_v31 }
  0xaa   : > { %2979 = vmatmul.mubr.bf16.gmra.mxu1 %v3698_v25 }
  0xb0   : > { %1761 = vmatmul.mubr.bf16.gmra.mxu0 %v3529_v47 }
  0xb1   : > { %1768 = vmatprep.mubr.bf16.mxu0 %v3655_v41 }
  0xb8   : > { %1769 = vmatmul.mubr.bf16.gmra.mxu0 %v3567_v14 }
  0xb9   : > { %1776 = vmatprep.mubr.bf16.mxu0 %v3668_v59 }
  0xc0   : > { %1777 = vmatmul.mubr.bf16.gmra.mxu0 %v3588_v18 }
  0xc1   : > { %1784 = vmatprep.mubr.bf16.mxu0 %v3705_v32 }
  0xc8   : > { %1785 = vmatmul.mubr.bf16.gmra.mxu0 %v3686_v11 }
  0xf0   : > { %v2904_v53 = vpop.f32.mrf.mxu1  ;;  %v2662_v17 = vpop.f32.mrf.mxu0 }
  0xf2   : > { %v1083_v35 = vpop.f32.mrf.mxu1  ;;  %v2663_v36 = vpop.f32.mrf.mxu0 }
  0xf3   : > { %v2664_v63 = vadd.f32 %v2663_v36, %v2662_v17 }
  0xf4   : > { %v2905_v57 = vpop.f32.mrf.mxu1  ;;  %v2665_v15 = vpop.f32.mrf.mxu0 }
  0xf5   : > { %v1084_v16 = vadd.f32 %v2664_v63, %v1083_v35 }
  0xf6   : > { %v2666_v21 = vpop.f32.mrf.mxu0  ;;  %v1086_v42 = vpop.f32.mrf.mxu1 }
  0xf7   : > { %v2667_v47 = vadd.f32 %v2666_v21, %v2665_v15 }
  0xf8   : > { %v2668_v4 = vpop.f32.mrf.mxu0  ;;  %v2908_v14 = vpop.f32.mrf.mxu1 }
  0xf9   : > { %v3792_v10 = vadd.f32 %v2667_v47, %v1086_v42 }
  0xfa   : > { %v2669_v18 = vpop.f32.mrf.mxu0  ;;  %v1099_v58 = vpop.f32.mrf.mxu1 }
  0xfb   : > { %v2670_v50 = vadd.f32 %v2669_v18, %v2668_v4 }
  0xfc   : > { %v2671_v3 = vpop.f32.mrf.mxu0  ;;  %v2909_v41 = vpop.f32.mrf.mxu1 }
  0xfd   : > { %v1092_v31 = vadd.f32 %v2904_v53, %v2670_v50 }
  0xfe   : > { %v2672_v55 = vpop.f32.mrf.mxu0  ;;  %v1102_v43 = vpop.f32.mrf.mxu1 }
  0xff   : > { %v2673_v56 = vadd.f32 %v2672_v55, %v2671_v3 }
 0x100   : > { %v2674_v59 = vpop.f32.mrf.mxu0  ;;  %v2912_v61 = vpop.f32.mrf.mxu1 }
 0x101   : > { %v3794_v60 = vadd.f32 %v2905_v57, %v2673_v56 }
 0x102   : > { %v2675_v62 = vpop.f32.mrf.mxu0  ;;  %v1115_v0 = vpop.f32.mrf.mxu1 }
 0x103   : > { %v2676_v49 = vadd.f32 %v2675_v62, %v2674_v59 }
 0x104   : > { %v2677_v1 = vpop.f32.mrf.mxu0  ;;  %v2913_v6 = vpop.f32.mrf.mxu1 }
 0x105   : > { %v1100_v2 = vadd.f32 %v2676_v49, %v1099_v58 }
 0x106   : > { %v2678_v9 = vpop.f32.mrf.mxu0  ;;  %v1118_v11 = vpop.f32.mrf.mxu1 }
 0x107   : > { %v2679_v24 = vadd.f32 %v2678_v9, %v2677_v1 }
 0x108   : > { %v2680_v48 = vpop.f32.mrf.mxu0  ;;  %v2916_v29 = vpop.f32.mrf.mxu1 }
 0x109   : > { %v3796_v12 = vadd.f32 %v2679_v24, %v1102_v43 }
 0x10a   : > { %v2681_v13 = vpop.f32.mrf.mxu0  ;;  %v1131_v20 = vpop.f32.mrf.mxu1 }
 0x10b   : > { %v2682_v5 = vadd.f32 %v2681_v13, %v2680_v48 }
 0x10c   : > { %v2683_v7 = vpop.f32.mrf.mxu0  ;;  %v2917_v25 = vpop.f32.mrf.mxu1 }
 0x10d   : > { %v1108_v19 = vadd.f32 %v2908_v14, %v2682_v5 }
 0x10e   : > { %v2684_v23 = vpop.f32.mrf.mxu0  ;;  %v1134_v32 = vpop.f32.mrf.mxu1 }
 0x10f   : > { %v2685_v27 = vadd.f32 %v2684_v23, %v2683_v7 }
 0x110   : > { %v2686_v28 = vpop.f32.mrf.mxu0 }
 0x111   : > { %v3798_v30 = vadd.f32 %v2909_v41, %v2685_v27 }
 0x112   : > { %v2687_v33 = vpop.f32.mrf.mxu0  ;;  %v2742_v37 = vpop.f32.mrf.mxu1 }
 0x113   : > { %v2688_v34 = vadd.f32 %v2687_v33, %v2686_v28 }
 0x114   : > { %v2689_v38 = vpop.f32.mrf.mxu0  ;;  %v2743_v26 = vpop.f32.mrf.mxu1 }
 0x115   : > { %v1116_v8 = vadd.f32 %v2688_v34, %v1115_v0  ;;  %v2744_v40 = vadd.f32 %v2743_v26, %v2742_v37 }
 0x116   : > { %v2690_v39 = vpop.f32.mrf.mxu0  ;;  %v3800_v46 = vpop.f32.mrf.mxu1 }
 0x117   : > { %v2691_v44 = vadd.f32 %v2690_v39, %v2689_v38  ;;  %v3804_v51 = vadd.f32 %v2744_v40, %v1084_v16 }
 0x118   : > { %v2692_v22 = vpop.f32.mrf.mxu0  ;;  %v3806_v52 = vpop.f32.mrf.mxu1 }
 0x119   : > { %v3802_v45 = vadd.f32 %v2691_v44, %v1118_v11 }
 0x11a   : > { %v2693_v54 = vpop.f32.mrf.mxu0  ;;  %v2748_v17 = vpop.f32.mrf.mxu1 }
 0x11b   : > { %v2694_v53 = vadd.f32 %v2693_v54, %v2692_v22 }
 0x11c   : > { %v2695_v35 = vpop.f32.mrf.mxu0  ;;  %v2749_v57 = vpop.f32.mrf.mxu1 }
 0x11d   : > { %v1124_v36 = vadd.f32 %v2912_v61, %v2694_v53  ;;  %v2750_v15 = vadd.f32 %v2749_v57, %v2748_v17 }
 0x11e   : > { %v2696_v63 = vpop.f32.mrf.mxu0  ;;  %v3808_v42 = vpop.f32.mrf.mxu1 }
 0x11f   : > { %v2697_v21 = vadd.f32 %v2696_v63, %v2695_v35  ;;  %v3812_v14 = vadd.f32 %v2750_v15, %v1092_v31 }
 0x120   : > { %v2698_v47 = vpop.f32.mrf.mxu0  ;;  %v3814_v16 = vpop.f32.mrf.mxu1 }
 0x121   : > { %v3810_v4 = vadd.f32 %v2913_v6, %v2697_v21 }
 0x122   : > { %v2699_v18 = vpop.f32.mrf.mxu0  ;;  %v2754_v58 = vpop.f32.mrf.mxu1 }
 0x123   : > { %v2700_v50 = vadd.f32 %v2699_v18, %v2698_v47 }
 0x124   : > { %v2701_v3 = vpop.f32.mrf.mxu0  ;;  %v2755_v55 = vpop.f32.mrf.mxu1 }
 0x125   : > { %v1132_v41 = vadd.f32 %v2700_v50, %v1131_v20  ;;  %v2756_v43 = vadd.f32 %v2755_v55, %v2754_v58 }
 0x126   : > { %v2702_v56 = vpop.f32.mrf.mxu0  ;;  %v3816_v61 = vpop.f32.mrf.mxu1 }
 0x127   : > { %v2703_v59 = vadd.f32 %v2702_v56, %v2701_v3  ;;  %v3820_v0 = vadd.f32 %v2756_v43, %v1100_v2 }
 0x128   : > { %v2704_v62 = vpop.f32.mrf.mxu0  ;;  %v3822_v31 = vpop.f32.mrf.mxu1 }
 0x129   : > { %v3818_v49 = vadd.f32 %v2703_v59, %v1134_v32 }
 0x12a   : > { %v2705_v1 = vpop.f32.mrf.mxu0  ;;  %v2760_v9 = vpop.f32.mrf.mxu1 }
 0x12b   : > { %v2706_v6 = vadd.f32 %v2705_v1, %v2704_v62 }
 0x12c   : > { %v2707_v24 = vpop.f32.mrf.mxu0  ;;  %v2761_v48 = vpop.f32.mrf.mxu1 }
 0x12d   : > { %v1140_v11 = vadd.f32 %v2916_v29, %v2706_v6  ;;  %v2762_v5 = vadd.f32 %v2761_v48, %v2760_v9 }
 0x12e   : > { %v2708_v13 = vpop.f32.mrf.mxu0  ;;  %v3824_v20 = vpop.f32.mrf.mxu1 }
 0x12f   : > { %v2709_v7 = vadd.f32 %v2708_v13, %v2707_v24  ;;  %v3828_v28 = vadd.f32 %v2762_v5, %v1108_v19 }
 0x130   : > { %v3826_v23 = vpop.f32.mrf.mxu0  ;;  %v3830_v2 = vpop.f32.mrf.mxu1 }
 0x131   : > { %v1143_v27 = vadd.f32 %v2917_v25, %v2709_v7 }
 0x132   : > { %v1421_v32 = vpop.f32.mrf.mxu0  ;;  %v2766_v33 = vpop.f32.mrf.mxu1 }
 0x134   : > { %v3832_v34 = vpop.f32.mrf.mxu0  ;;  %v2767_v37 = vpop.f32.mrf.mxu1 }
 0x135   : > { %v2768_v29 = vadd.f32 %v2767_v37, %v2766_v33 }
 0x136   : > { %v1424_v38 = vpop.f32.mrf.mxu0  ;;  %v3834_v26 = vpop.f32.mrf.mxu1 }
 0x137   : > { %v3838_v40 = vadd.f32 %v2768_v29, %v1116_v8 }
 0x138   : > { %v3836_v39 = vpop.f32.mrf.mxu0  ;;  %v3840_v44 = vpop.f32.mrf.mxu1 }
 0x13a   : > { %v3842_v25 = vpop.f32.mrf.mxu0  ;;  %v2772_v19 = vpop.f32.mrf.mxu1 }
 0x13c   : > { %v3844_v22 = vpop.f32.mrf.mxu0  ;;  %v2773_v54 = vpop.f32.mrf.mxu1 }
 0x13d   : > { %v2774_v17 = vadd.f32 %v2773_v54, %v2772_v19 }
 0x13e   : > { %v3846_v53 = vpop.f32.mrf.mxu0  ;;  %v3848_v35 = vpop.f32.mrf.mxu1 }
 0x13f   : > { %v1365_v63 = vadd.f32 %v2774_v17, %v1124_v36  ;;  %v2747_v17 = vadd.f32 %v3806_v52, %v3800_v46  ;;  %v2753_v46 = vadd.f32 %v3814_v16, %v3808_v42 }
 0x140   : > { %v2944_v57 = vpop.f32.mrf.mxu0  ;;  %v3850_v15 = vpop.f32.mrf.mxu1 }
 0x141   : > { %v3854_v8 = vadd.f32 %v2944_v57, %v1365_v63 }
 0x142   : > { %v3852_v21 = vpop.f32.mrf.mxu0  ;;  %v2778_v47 = vpop.f32.mrf.mxu1 }
 0x144   : > { %v3856_v18 = vpop.f32.mrf.mxu0  ;;  %v2779_v50 = vpop.f32.mrf.mxu1 }
 0x145   : > { %v2780_v3 = vadd.f32 %v2779_v50, %v2778_v47  ;;  %v1422_v50 = vadd.f32 %v1421_v32, %v3804_v51 }
 0x146   : > { %v3858_v58 = vpop.f32.mrf.mxu0  ;;  %v3860_v55 = vpop.f32.mrf.mxu1 }
 0x147   : > { %v3862_v43 = vadd.f32 %v2780_v3, %v1132_v41 }
 0x148   : > { %v2948_v56 = vpop.f32.mrf.mxu0  ;;  %v3864_v59 = vpop.f32.mrf.mxu1 }
 0x14a   : > { %v3866_v36 = vpop.f32.mrf.mxu0  ;;  %v2784_v62 = vpop.f32.mrf.mxu1 }
 0x14c   : > { %v2949_v1 = vpop.f32.mrf.mxu0  ;;  %v2785_v6 = vpop.f32.mrf.mxu1 }
 0x14d   : > { %v2786_v24 = vadd.f32 %v2785_v6, %v2784_v62 }
 0x14e   : > { %v3868_v9 = vpop.f32.mrf.mxu0  ;;  %v2787_v48 = vpop.f32.mrf.mxu1 }
 0x14f   : > { %v1381_v5 = vadd.f32 %v2786_v24, %v1140_v11 }
 0x150   : > { %v2822_v13 = vpop.f32.mrf.mxu0  ;;  %v2788_v7 = vpop.f32.mrf.mxu1 }
 0x151   : > { %v3870_v37 = vadd.f32 %v2948_v56, %v1381_v5  ;;  %v2789_v29 = vadd.f32 %v2788_v7, %v2787_v48  ;;  %v3880_v56 = vld [vmem:[%s4067_s4] ss:$0 sm:$0xff]  ;;  %v1328_v48 = vadd.f32 %v2747_v17, %v3792_v10  ;;  %v1336_v17 = vadd.f32 %v2753_v46, %v3794_v60 }
 0x152   : > { %v2823_v33 = vpop.f32.mrf.mxu0  ;;  %v2968_v19 = vpop.f32.mrf.mxu1  ;;  %v2759_v60 = vadd.f32 %v3822_v31, %v3816_v61 }
 0x153   : > { %v2824_v41 = vadd.f32 %v2823_v33, %v2822_v13  ;;  %v1384_v57 = vadd.f32 %v2789_v29, %v1143_v27  ;;  %v1425_v51 = vadd.f32 %v1424_v38, %v1328_v48  ;;  %v1430_v29 = vadd.f32 %v3826_v23, %v3812_v14 }
 0x154   : > { %v2825_v54 = vpop.f32.mrf.mxu0  ;;  %v1827_v63 = vpop.f32.mrf.mxu1 }
 0x155   : > { %v3875_v3 = vadd.f32 %v2949_v1, %v1384_v57  ;;  %v1828_v62 = vadd.f32 %v2824_v41, %v1827_v63 }
 0x156   : > { %v2826_v47 = vpop.f32.mrf.mxu0  ;;  %v2969_v6 = vpop.f32.mrf.mxu1 }
 0x157   : > { %v2827_v11 = vadd.f32 %v2826_v47, %v2825_v54  ;;  %v1890_v13 = vadd.f32 %v1828_v62, %v1422_v50  ;;  %v1433_v50 = vadd.f32 %v3832_v34, %v1336_v17  ;;  %v1438_v34 = vadd.f32 %v3842_v25, %v3820_v0 }
 0x158   : > { %v2828_v24 = vpop.f32.mrf.mxu0  ;;  %v1830_v52 = vpop.f32.mrf.mxu1 }
 0x159   : > { %v3886_v32 = vadd.f32 %v3880_v56, %v1890_v13  ;;  %v1831_v1 = vadd.f32 %v2827_v11, %v1830_v52 }
 0x15a   : > { %v2829_v27 = vpop.f32.mrf.mxu0  ;;  %v2972_v33 = vpop.f32.mrf.mxu1 }
 0x15b   : > { %v2830_v5 = vadd.f32 %v2829_v27, %v2828_v24  ;;  %v1929_v41 = vsub.f32 0.0, %v3886_v32  ;;  %v1891_v10 = vadd.f32 %v1831_v1, %v1425_v51 }
 0x15c   : > { %v2831_v7 = vpop.f32.mrf.mxu0  ;;  %v1843_v16 = vpop.f32.mrf.mxu1 }
 0x15d   : > { %v1836_v54 = vadd.f32 %v2968_v19, %v2830_v5  ;;  %v1945_v57 = vmul.f32 1.442695, %v1929_v41  ;;  %v3893_v38 = vadd.f32 %v3880_v56, %v1891_v10  ;;  %v1344_v5 = vadd.f32 %v2759_v60, %v3796_v12 }
 0x15e   : > { %v2832_v42 = vpop.f32.mrf.mxu0  ;;  %v2973_v24 = vpop.f32.mrf.mxu1 }
 0x15f   : > { %v1892_v63 = vadd.f32 %v1836_v54, %v1430_v29  ;;  %v2833_v47 = vadd.f32 %v2832_v42, %v2831_v7  ;;  %3095 = vpow2.f32 %v1945_v57  ;;  %v1930_v14 = vsub.f32 0.0, %v3893_v38 }
 0x160   : > { %v2834_v62 = vpop.f32.mrf.mxu0  ;;  %v1846_v31 = vpop.f32.mrf.mxu1  ;;  %v1441_v54 = vadd.f32 %v3846_v53, %v1344_v5  ;;  %v1446_v53 = vadd.f32 %v3836_v39, %v3828_v28 }
 0x161   : > { %v3898_v23 = vadd.f32 %v3880_v56, %v1892_v63  ;;  %v1839_v19 = vadd.f32 %v2969_v6, %v2833_v47  ;;  %v1947_v48 = vmul.f32 1.442695, %v1930_v14  ;;  %v2765_v47 = vadd.f32 %v3830_v2, %v3824_v20 }
 0x162   : > { %v2835_v11 = vpop.f32.mrf.mxu0  ;;  %v3914_v57 = vpop.f32.mrf.mxu1 }
 0x163   : > { %v1931_v13 = vsub.f32 0.0, %v3898_v23  ;;  %v1893_v46 = vadd.f32 %v1839_v19, %v1433_v50  ;;  %v2836_v52 = vadd.f32 %v2835_v11, %v2834_v62  ;;  %3097 = vpow2.f32 %v1947_v48 }
 0x164   : > { %v2837_v27 = vpop.f32.mrf.mxu0  ;;  %v1859_v48 = vpop.f32.mrf.mxu1 }
 0x165   : > { %v1949_v51 = vmul.f32 1.442695, %v1931_v13  ;;  %v3906_v1 = vadd.f32 %v3880_v56, %v1893_v46  ;;  %v1844_v6 = vadd.f32 %v2836_v52, %v1843_v16 }
 0x166   : > { %v2838_v61 = vpop.f32.mrf.mxu0 }
 0x167   : > { %3099 = vpow2.f32 %v1949_v51  ;;  %v1932_v7 = vsub.f32 0.0, %v3906_v1  ;;  %v1894_v29 = vadd.f32 %v1844_v6, %v1438_v34  ;;  %v2839_v41 = vadd.f32 %v2838_v61, %v2837_v27  ;;  %v3933_v61 = vpop.f32.mrf.mxu1 }
 0x168   : > { %v2840_v10 = vpop.f32.mrf.mxu0  ;;  %v1352_v34 = vadd.f32 %v2765_v47, %v3798_v30 }
 0x169   : > { %v1951_v0 = vmul.f32 1.442695, %v1932_v7  ;;  %v3912_v25 = vadd.f32 %v3880_v56, %v1894_v29  ;;  %v1847_v17 = vadd.f32 %v2839_v41, %v1846_v31 }
 0x16a   : > { %v2841_v42 = vpop.f32.mrf.mxu0  ;;  %v1449_v51 = vadd.f32 %v3844_v22, %v1352_v34 }
 0x16b   : > { %3101 = vpow2.f32 %v1951_v0  ;;  %v1933_v12 = vsub.f32 0.0, %v3912_v25  ;;  %v1895_v16 = vadd.f32 %v1847_v17, %v1441_v54  ;;  %v2842_v63 = vadd.f32 %v2841_v42, %v2840_v10  ;;  %v1862_v17 = vpop.f32.mrf.mxu1 }
 0x16c   : > { %v2843_v50 = vpop.f32.mrf.mxu0  ;;  %v3096_v60 = vpop.eup %3095 }
 0x16d   : > { %v1953_v62 = vmul.f32 1.442695, %v1933_v12  ;;  %v3922_v14 = vadd.f32 %v3880_v56, %v1895_v16  ;;  %v1852_v19 = vadd.f32 %v2972_v33, %v2842_v63  ;;  %v1977_v13 = vadd.f32 1.0, %v3096_v60 }
 0x16e   : > { %v2844_v11 = vpop.f32.mrf.mxu0  ;;  %v2771_v33 = vadd.f32 %v3840_v44, %v3834_v26  ;;  %v1454_v26 = vadd.f32 %v3852_v21, %v3838_v40 }
 0x16f   : > { %3103 = vpow2.f32 %v1953_v62  ;;  %v1934_v46 = vsub.f32 0.0, %v3922_v14  ;;  %v1896_v52 = vadd.f32 %v1852_v19, %v1446_v53  ;;  %v2845_v20 = vadd.f32 %v2844_v11, %v2843_v50 }
 0x170   : > { %v2846_v2 = vpop.f32.mrf.mxu0  ;;  %3105 = vrcp.f32 %v1977_v13  ;;  %v3098_v27 = vpop.eup %3097  ;;  %v1360_v42 = vadd.f32 %v2771_v33, %v3802_v45  ;;  %v2777_v62 = vadd.f32 %v3850_v15, %v3848_v35 }
 0x171   : > { %v1955_v28 = vmul.f32 1.442695, %v1934_v46  ;;  %v3928_v39 = vadd.f32 %v3880_v56, %v1896_v52  ;;  %v1855_v6 = vadd.f32 %v2973_v24, %v2845_v20  ;;  %v1978_v30 = vadd.f32 1.0, %v3098_v27  ;;  %v3960_v52 = vpop.f32.mrf.mxu1 }
 0x172   : > { %v2847_v5 = vpop.f32.mrf.mxu0  ;;  %v1457_v47 = vadd.f32 %v3858_v58, %v1360_v42  ;;  %v1368_v27 = vadd.f32 %v2777_v62, %v3810_v4 }
 0x173   : > { %3107 = vpow2.f32 %v1955_v28  ;;  %v1935_v31 = vsub.f32 0.0, %v3928_v39  ;;  %v2848_v7 = vadd.f32 %v2847_v5, %v2846_v2  ;;  %v1897_v44 = vadd.f32 %v1855_v6, %v1449_v51 }
 0x174   : > { %v3100_v29 = vpop.eup %3099  ;;  %v2849_v22 = vpop.f32.mrf.mxu0  ;;  %3109 = vrcp.f32 %v1978_v30  ;;  %v2783_v5 = vadd.f32 %v3864_v59, %v3860_v55 }
 0x175   : > { %v1979_v24 = vadd.f32 1.0, %v3100_v29  ;;  %v1957_v41 = vmul.f32 1.442695, %v1935_v31  ;;  %v1860_v10 = vadd.f32 %v2848_v7, %v1859_v48  ;;  %v3943_v54 = vadd.f32 %v3880_v56, %v1897_v44  ;;  %v1875_v7 = vpop.f32.mrf.mxu1 }
 0x176   : > { %v2850_v0 = vpop.f32.mrf.mxu0 }
 0x177   : > { %3111 = vrcp.f32 %v1979_v24  ;;  %v1898_v40 = vadd.f32 %v1860_v10, %v1454_v26  ;;  %v2851_v21 = vadd.f32 %v2850_v0, %v2849_v22  ;;  %v1936_v16 = vsub.f32 0.0, %v3943_v54 }
 0x178   : > { %v3102_v12 = vpop.eup %3101  ;;  %3113 = vpow2.f32 %v1957_v41  ;;  %v2852_v63 = vpop.f32.mrf.mxu0  ;;  %v1465_v22 = vadd.f32 %v3856_v18, %v1368_v27  ;;  %v1376_v0 = vadd.f32 %v2783_v5, %v3818_v49 }
 0x179   : > { %v1980_v50 = vadd.f32 1.0, %v3102_v12  ;;  %v3953_v53 = vadd.f32 %v3880_v56, %v1898_v40  ;;  %v1863_v45 = vadd.f32 %v2851_v21, %v1862_v17  ;;  %v1959_v19 = vmul.f32 1.442695, %v1936_v16 }
 0x17a   : > { %v2853_v60 = vpop.f32.mrf.mxu0 }
 0x17b   : > { %3115 = vrcp.f32 %v1980_v50  ;;  %v1937_v11 = vsub.f32 0.0, %v3953_v53  ;;  %v1899_v48 = vadd.f32 %v1863_v45, %v1457_v47  ;;  %v2854_v13 = vadd.f32 %v2853_v60, %v2852_v63 }
 0x17c   : > { %v3104_v46 = vpop.eup %3103  ;;  %3117 = vpow2.f32 %v1959_v19  ;;  %v2855_v58 = vpop.f32.mrf.mxu0 }
 0x17d   : > { %v1981_v34 = vadd.f32 1.0, %v3104_v46  ;;  %v1961_v20 = vmul.f32 1.442695, %v1937_v11  ;;  %v3963_v2 = vadd.f32 %v3880_v56, %v1899_v48  ;;  %v1868_v35 = vadd.f32 %v3914_v57, %v2854_v13  ;;  %v3106_v15 = vpop.eup %3105 }
 0x17e   : > { %v2856_v28 = vpop.f32.mrf.mxu0  ;;  %v2009_v30 = vmul.f32 %v3106_v15, %v3886_v32  ;;  %v1473_v11 = vadd.f32 %v3868_v9, %v1376_v0 }
 0x17f   : > { %3119 = vrcp.f32 %v1981_v34  ;;  %v1938_v33 = vsub.f32 0.0, %v3963_v2  ;;  %v1900_v51 = vadd.f32 %v1868_v35, %v3854_v8  ;;  %v2857_v57 = vadd.f32 %v2856_v28, %v2855_v58 }
 0x180   : > { %v3108_v6 = vpop.eup %3107  ;;  %3121 = vpow2.f32 %v1961_v20  ;;  %v2858_v31 = vpop.f32.mrf.mxu0  ;;  %v1470_v8 = vadd.f32 %v3866_v36, %v3862_v43  ;;  %v2047_v17 = vmul.f32 %v2009_v30, %v2009_v30 }
 0x181   : > { %v1982_v29 = vadd.f32 1.0, %v3108_v6  ;;  %v1963_v26 = vmul.f32 1.442695, %v1938_v33  ;;  %v3976_v4 = vadd.f32 %v3880_v56, %v1900_v51  ;;  %v3110_v44 = vpop.eup %3109  ;;  %v1871_v55 = vadd.f32 %v3933_v61, %v2857_v57  ;;  %v3990_v36 = vpop.f32.mrf.mxu1 }
 0x182   : > { %v2859_v59 = vpop.f32.mrf.mxu0  ;;  %v2010_v32 = vmul.f32 %v3110_v44, %v3893_v38 }
 0x183   : > { %3123 = vrcp.f32 %v1982_v29  ;;  %v1939_v24 = vsub.f32 0.0, %v3976_v4  ;;  %v2860_v41 = vadd.f32 %v2859_v59, %v2858_v31  ;;  %v1901_v18 = vadd.f32 %v1871_v55, %v1465_v22 }
 0x184   : > { %v3112_v10 = vpop.eup %3111  ;;  %3125 = vpow2.f32 %v1963_v26  ;;  %v2861_v43 = vpop.f32.mrf.mxu0  ;;  %v2025_v61 = vadd.f32 %v2010_v32, %v2009_v30  ;;  %v2048_v42 = vmul.f32 %v2010_v32, %v2010_v32  ;;  %v2598_v40 = vpack.c.bf16 %v2010_v32, %v2009_v30 }
 0x185   : > { %v3114_v38 = vpop.eup %3113  ;;  %v2011_v21 = vmul.f32 %v3112_v10, %v3898_v23  ;;  %v1965_v49 = vmul.f32 1.442695, %v1939_v24  ;;  %v3994_v16 = vadd.f32 %v3880_v56, %v1901_v18  ;;  %v1876_v63 = vadd.f32 %v2860_v41, %v1875_v7  ;;  %v1878_v23 = vpop.f32.mrf.mxu1 }
 0x186   : > { %v1983_v12 = vadd.f32 1.0, %v3114_v38  ;;  %v2862_v47 = vpop.f32.mrf.mxu0  ;;  %v2063_v50 = vadd.f32 %v2048_v42, %v2047_v17  ;;  %2599 = vst [vmem:[%s3988_s19] sm:$0xff] %v2598_v40  }
 0x187   : > { %v2026_v45 = vadd.f32 %v2025_v61, %v2011_v21  ;;  %v2049_v62 = vmul.f32 %v2011_v21, %v2011_v21  ;;  %v2863_v19 = vadd.f32 %v2862_v47, %v2861_v43  ;;  %v1940_v48 = vsub.f32 0.0, %v3994_v16 }
 0x188   : > { %v3116_v60 = vpop.eup %3115  ;;  %3127 = vrcp.f32 %v1983_v12  ;;  %v1902_v13 = vadd.f32 %v1876_v63, %v1470_v8  ;;  %v2864_v46 = vpop.f32.mrf.mxu0 }
 0x189   : > { %v3118_v58 = vpop.eup %3117  ;;  %v2064_v34 = vadd.f32 %v2063_v50, %v2049_v62  ;;  %v2012_v20 = vmul.f32 %v3116_v60, %v3906_v1  ;;  %3129 = vpow2.f32 %v1965_v49  ;;  %v1879_v35 = vadd.f32 %v2863_v19, %v1878_v23 }
 0x18a   : > { %v1984_v15 = vadd.f32 1.0, %v3118_v58  ;;  %v1967_v28 = vmul.f32 1.442695, %v1940_v48  ;;  %v4001_v27 = vadd.f32 %v3880_v56, %v1902_v13  ;;  %v2865_v33 = vpop.f32.mrf.mxu0 }
 0x18b   : > { %v2050_v9 = vmul.f32 %v2012_v20, %v2012_v20  ;;  %v2603_v51 = vpack.c.bf16 %v2012_v20, %v2011_v21  ;;  %v2027_v6 = vadd.f32 %v2026_v45, %v2012_v20  ;;  %v1903_v5 = vadd.f32 %v1879_v35, %v1473_v11 }
 0x18c   : > { %v3120_v30 = vpop.eup %3119  ;;  %3131 = vrcp.f32 %v1984_v15  ;;  %v1941_v57 = vsub.f32 0.0, %v4001_v27  ;;  %v2866_v31 = vadd.f32 %v2865_v33, %v2864_v46  ;;  %v2867_v7 = vpop.f32.mrf.mxu0 }
 0x18d   : > { %v3122_v1 = vpop.eup %3121  ;;  %2639 = vst [vmem:[%s3988_s19 + $0x8] sm:$0xff] %v2603_v51   ;;  %v2013_v29 = vmul.f32 %v3120_v30, %v3912_v25  ;;  %v2065_v26 = vadd.f32 %v2064_v34, %v2050_v9  ;;  %3133 = vpow2.f32 %v1967_v28  ;;  %v4007_v44 = vadd.f32 %v3880_v56, %v1903_v5 }
 0x18e   : > { %v1985_v22 = vadd.f32 1.0, %v3122_v1  ;;  %v1969_v8 = vmul.f32 1.442695, %v1941_v57  ;;  %v1884_v55 = vadd.f32 %v3960_v52, %v2866_v31  ;;  %v2868_v59 = vpop.f32.mrf.mxu0 }
 0x18f   : > { %v2028_v32 = vadd.f32 %v2027_v6, %v2013_v29  ;;  %v2051_v24 = vmul.f32 %v2013_v29, %v2013_v29  ;;  %v1942_v41 = vsub.f32 0.0, %v4007_v44  ;;  %v2869_v10 = vadd.f32 %v2868_v59, %v2867_v7 }
 0x190   : > { %v3124_v0 = vpop.eup %3123  ;;  %3135 = vrcp.f32 %v1985_v22  ;;  %v1904_v17 = vadd.f32 %v1884_v55, %v3870_v37 }
 0x191   : > { %v3126_v25 = vpop.eup %3125  ;;  %v2066_v18 = vadd.f32 %v2065_v26, %v2051_v24  ;;  %v2014_v43 = vmul.f32 %v3124_v0, %v3922_v14  ;;  %3137 = vpow2.f32 %v1969_v8  ;;  %v1971_v38 = vmul.f32 1.442695, %v1942_v41 }
 0x192   : > { %v1986_v61 = vadd.f32 1.0, %v3126_v25  ;;  %v4014_v52 = vadd.f32 %v3880_v56, %v1904_v17  ;;  %v1887_v42 = vadd.f32 %v3990_v36, %v2869_v10 }
 0x193   : > { %v2029_v40 = vadd.f32 %v2028_v32, %v2014_v43  ;;  %v2052_v21 = vmul.f32 %v2014_v43, %v2014_v43  ;;  %v2608_v12 = vpack.c.bf16 %v2014_v43, %v2013_v29  ;;  %3139 = vpow2.f32 %v1971_v38 }
 0x194   : > { %3141 = vrcp.f32 %v1986_v61  ;;  %v1943_v37 = vsub.f32 0.0, %v4014_v52  ;;  %v1905_v49 = vadd.f32 %v1887_v42, %v3875_v3 }
 0x195   : > { %v3128_v63 = vpop.eup %3127  ;;  %v2067_v47 = vadd.f32 %v2066_v18, %v2052_v21  ;;  %2640 = vst [vmem:[%s3988_s19 + $0x10] sm:$0xff] %v2608_v12  }
 0x196   : > { %v3130_v14 = vpop.eup %3129  ;;  %v2015_v50 = vmul.f32 %v3128_v63, %v3928_v39  ;;  %v1973_v45 = vmul.f32 1.442695, %v1943_v37  ;;  %v4022_v62 = vadd.f32 %v3880_v56, %v1905_v49 }
 0x197   : > { %v1987_v36 = vadd.f32 1.0, %v3130_v14 }
 0x198   : > { %v2030_v19 = vadd.f32 %v2029_v40, %v2015_v50  ;;  %v2053_v60 = vmul.f32 %v2015_v50, %v2015_v50  ;;  %3143 = vpow2.f32 %v1973_v45  ;;  %v1944_v11 = vsub.f32 0.0, %v4022_v62 }
 0x199   : > { %v3132_v48 = vpop.eup %3131  ;;  %3145 = vrcp.f32 %v1987_v36 }
 0x19a   : > { %v3134_v3 = vpop.eup %3133  ;;  %v2068_v13 = vadd.f32 %v2067_v47, %v2053_v60  ;;  %v2016_v23 = vmul.f32 %v3132_v48, %v3943_v54  ;;  %v1975_v46 = vmul.f32 1.442695, %v1944_v11 }
 0x19b   : > { %v1988_v58 = vadd.f32 1.0, %v3134_v3 }
 0x19c   : > { %v2054_v39 = vmul.f32 %v2016_v23, %v2016_v23  ;;  %v2613_v34 = vpack.c.bf16 %v2016_v23, %v2015_v50  ;;  %v2031_v20 = vadd.f32 %v2030_v19, %v2016_v23  ;;  %3147 = vpow2.f32 %v1975_v46 }
 0x19d   : > { %v3136_v56 = vpop.eup %3135  ;;  %3149 = vrcp.f32 %v1988_v58 }
 0x19e   : > { %v3138_v35 = vpop.eup %3137  ;;  %2641 = vst [vmem:[%s3988_s19 + $0x18] sm:$0xff] %v2613_v34   ;;  %v2017_v15 = vmul.f32 %v3136_v56, %v3953_v53  ;;  %v2069_v28 = vadd.f32 %v2068_v13, %v2054_v39 }
 0x19f   : > { %v1989_v33 = vadd.f32 1.0, %v3138_v35 }
 0x1a0   : > { %v3140_v9 = vpop.eup %3139  ;;  %v2032_v51 = vadd.f32 %v2031_v20, %v2017_v15  ;;  %v2055_v6 = vmul.f32 %v2017_v15, %v2017_v15 }
 0x1a1   : > { %v3142_v5 = vpop.eup %3141  ;;  %3151 = vrcp.f32 %v1989_v33  ;;  %v1990_v54 = vadd.f32 1.0, %v3140_v9 }
 0x1a2   : > { %v2070_v30 = vadd.f32 %v2069_v28, %v2055_v6  ;;  %v2018_v57 = vmul.f32 %v3142_v5, %v3963_v2 }
 0x1a3   : > { %3153 = vrcp.f32 %v1990_v54 }
 0x1a4   : > { %v2033_v31 = vadd.f32 %v2032_v51, %v2018_v57  ;;  %v2056_v7 = vmul.f32 %v2018_v57, %v2018_v57  ;;  %v2618_v1 = vpack.c.bf16 %v2018_v57, %v2017_v15 }
 0x1a5   : > { %v3144_v29 = vpop.eup %3143 }
 0x1a6   : > { %v3146_v26 = vpop.eup %3145  ;;  %v2071_v22 = vadd.f32 %v2070_v30, %v2056_v7  ;;  %2642 = vst [vmem:[%s3988_s19 + $0x20] sm:$0xff] %v2618_v1   ;;  %v1991_v53 = vadd.f32 1.0, %v3144_v29 }
 0x1a7   : > { %v2019_v8 = vmul.f32 %v3146_v26, %v3976_v4 }
 0x1a8   : > { %3155 = vrcp.f32 %v1991_v53 }
 0x1a9   : > { %v3148_v55 = vpop.eup %3147  ;;  %v2034_v59 = vadd.f32 %v2033_v31, %v2019_v8  ;;  %v2057_v32 = vmul.f32 %v2019_v8, %v2019_v8 }
 0x1aa   : > { %v3150_v24 = vpop.eup %3149  ;;  %v1992_v41 = vadd.f32 1.0, %v3148_v55 }
 0x1ab   : > { %v2072_v10 = vadd.f32 %v2071_v22, %v2057_v32  ;;  %v2020_v2 = vmul.f32 %v3150_v24, %v3994_v16 }
 0x1ac   : > { %3157 = vrcp.f32 %v1992_v41 }
 0x1ad   : > { %v2058_v0 = vmul.f32 %v2020_v2, %v2020_v2  ;;  %v2623_v17 = vpack.c.bf16 %v2020_v2, %v2019_v8  ;;  %v2035_v25 = vadd.f32 %v2034_v59, %v2020_v2 }
 0x1ae   : > { %v3152_v18 = vpop.eup %3151 }
 0x1af   : > { %2643 = vst [vmem:[%s3988_s19 + $0x28] sm:$0xff] %v2623_v17   ;;  %v2021_v43 = vmul.f32 %v3152_v18, %v4001_v27  ;;  %v2073_v38 = vadd.f32 %v2072_v10, %v2058_v0 }
 0x1b0   : > { %v3154_v4 = vpop.eup %3153 }
 0x1b1   : > { %v2036_v61 = vadd.f32 %v2035_v25, %v2021_v43  ;;  %v2059_v42 = vmul.f32 %v2021_v43, %v2021_v43  ;;  %v2022_v40 = vmul.f32 %v3154_v4, %v4007_v44 }
 0x1b3   : > { %v2074_v21 = vadd.f32 %v2073_v38, %v2059_v42  ;;  %v2037_v12 = vadd.f32 %v2036_v61, %v2022_v40  ;;  %v2060_v37 = vmul.f32 %v2022_v40, %v2022_v40  ;;  %v2628_v16 = vpack.c.bf16 %v2022_v40, %v2021_v43 }
 0x1b5   : > { %v3156_v49 = vpop.eup %3155  ;;  %v2075_v63 = vadd.f32 %v2074_v21, %v2060_v37  ;;  %2644 = vst [vmem:[%s3988_s19 + $0x30] sm:$0xff] %v2628_v16  }
 0x1b6   : > { %v2023_v47 = vmul.f32 %v3156_v49, %v4014_v52 }
 0x1b8   : > { %v2038_v27 = vadd.f32 %v2037_v12, %v2023_v47  ;;  %v2061_v14 = vmul.f32 %v2023_v47, %v2023_v47 }
 0x1b9   : > { %v3158_v50 = vpop.eup %3157 }
 0x1ba   : > { %v2076_v45 = vadd.f32 %v2075_v63, %v2061_v14  ;;  %v2024_v36 = vmul.f32 %v3158_v50, %v4022_v62 }
 0x1bc   : > { %v2039_v44 = vadd.f32 %v2038_v27, %v2024_v36  ;;  %v2062_v19 = vmul.f32 %v2024_v36, %v2024_v36  ;;  %v2633_v60 = vpack.c.bf16 %v2024_v36, %v2023_v47 }
 0x1be   : > { %v2040_v11 = vrot.slane %v2039_v44, 4  ;;  %v2077_v48 = vadd.f32 %v2076_v45, %v2062_v19  ;;  %2645 = vst [vmem:[%s3988_s19 + $0x38] sm:$0xff] %v2633_v60  }
 0x1c0   : > { %v2041_v3 = vadd.f32 %v2040_v11, %v2039_v44  ;;  %v2078_v13 = vrot.slane %v2077_v48, 4 }
 0x1c2   : > { %v2042_v23 = vrot.slane %v2041_v3, 2  ;;  %v2079_v52 = vadd.f32 %v2078_v13, %v2077_v48 }
 0x1c4   : > { %v2043_v46 = vadd.f32 %v2042_v23, %v2041_v3  ;;  %v2080_v58 = vrot.slane %v2079_v52, 2 }
 0x1c6   : > { %v2044_v39 = vrot.slane %v2043_v46, 1  ;;  %v2081_v34 = vadd.f32 %v2080_v58, %v2079_v52 }
 0x1c8   : > { %v2045_v62 = vadd.f32 %v2044_v39, %v2043_v46  ;;  %v2082_v20 = vrot.slane %v2081_v34, 1 }
 0x1ca   : > { %2046 = vst [vmem:[%s375_s8] sm:$0x1] %v2045_v62  ;;  %v2083_v56 = vadd.f32 %v2082_v20, %v2081_v34 }
 0x1cc   : > { %2084 = vst [vmem:[%s382_s11] sm:$0x1] %v2083_v56 }
 0x1cd PF: > { %s18_s28 = sadd.s32 1, %s3197_s28   ;;  %s4072_s24 = smov %s3189_s26 }
 0x1ce   : > { %p15_p9 = scmp.ge.s32.totalorder %s18_s28, 6   ;;  %s4073_s25 = smov %s3193_s27 }
 0x1cf   : > { %s4074_s26 = smov %s4077_s29  ;;  %s4075_s27 = smov %s4081_s30 }
 0x1d0   :  { %17 = sbr.rel (!%p15_p9) target bundleno = 3 (0x3), region = 102 }

// kernel: unet_up_block_forward.7
= control target key start
LH: loop header
LB: loop body
LE: loop exit
PB: predicated region body
PF: predicated region fallthrough
CT: control target
= control target key end

     0   :  { %s610_s12 = smov 0   ;;  %s612_s13 = smov 0   ;;  %s695_s0 = inlined_call_operand.vmem [shape: bf16[2,16,16,128], index: 0, kind: input, shape index: {}]   ;;  %s696_s1 = inlined_call_operand.vmem [shape: f32[2,1,128], index: 1, kind: input, shape index: {}]   ;;  %s697_s2 = inlined_call_operand.vmem [shape: f32[2,1,128], index: 2, kind: input, shape index: {}]   ;;  %s698_s3 = inlined_call_operand.vmem [shape: f32[2,16,16,128], index: 3, kind: output, shape index: {}]  }
   0x1   :  { %s614_s14 = smov 0   ;;  %s616_s15 = smov 0  }
   0x2   :  { %s618_s16 = smov 0  }
   0x3 LB: > { %s22_s17 = sadd.s32 1, %s580_s14  ;;  %s25_s18 = sadd.s32 1, %s584_s15  ;;  %s588_s16 = sphi %s618_s16, %s13_s16   ;;  %s584_s15 = sphi %s616_s15, %s702_s15   ;;  %s580_s14 = sphi %s614_s14, %s701_s14   ;;  %s576_s13 = sphi %s612_s13, %s700_s13   ;;  %s572_s12 = sphi %s610_s12, %s699_s12  }
   0x4   : > { %p23_p0 = scmp.ge.s32.totalorder %s22_s17, 2  ;;  %p458_p1 = scmp.ge.s32.totalorder %s588_s16, 1 }
   0x5   : > { %p175_p2 = scmp.lt.s32.totalorder %s588_s16, 5 }
   0x6   : > { %s704_s17 = smov (%p23_p0, %s22_s17), 0  ;;  %s706_s18 = smov (!%p23_p0, %s25_s18), %s584_s15 }
   0x7   : > { %p176_p3 = pnand %p458_p1, %p175_p2  ;;  %p27_p4 = scmp.ge.s32.totalorder %s706_s18, 2 }
   0x8   : > { %s459_s19 = sshll.u32 (!%p176_p3), %s572_s12, 3  ;;  %p216_p5 = scmp.lt.s32.totalorder (!%p176_p3), %s576_s13, 1 }
   0x9   : > { %s708_s18 = smov (%p27_p4, %s706_s18), 0  ;;  %179 = sbr.rel (%p176_p3) target bundleno = 36 (0x24), region = 32 }
   0xa   : > { %p218_p6 = scmp.lt.s32.totalorder (!%p176_p3), %s459_s19, 15 }
   0xe   : > { %s710_s13 = smov (!%p216_p5, %s576_s13), 1  ;;  %s712_s19 = smov (!%p218_p6, %s459_s19), 15 }
   0xf   : > { %s461_s20 = sshll.u32 %s710_s13, 5  ;;  %s460_s21 = sshll.u32 %s712_s19, 1 }
  0x10   : > { %s228_s24 = scalar_lea.vmem %s696_s1, %s710_s13  ;;  %s222_s25 = sadd.s32 %s461_s20, %s460_s21 }
  0x11   : > { %s462_s26 = sshll.u32 %s222_s25, 2  ;;  %s231_s5 = scalar_lea.vmem %s697_s2, %s710_s13  ;;  %v467_v0 = vld [vmem:[%s228_s24] ss:$0 sm:$0xff] }
  0x12   : > { %s646_s29 = scalar_lea.vmem %s695_s0, %s462_s26  ;;  %s466_s6 = sshll.u32 %s222_s25, 3  ;;  %v468_v9 = vld [vmem:[%s231_s5] ss:$0 sm:$0xff] }
  0x13   : > { %v472_v1 = vld [vmem:[%s646_s29] sm:$0xff]   ;;  %v503_v2 = vld [vmem:[%s646_s29 + $0x8] sm:$0xff]   ;;  %v504_v3 = vld [vmem:[%s646_s29 + $0x10] sm:$0xff]   ;;  %s658_s9 = scalar_lea.vmem %s698_s3, %s466_s6 }
  0x14   : > { %v473_v4 = vunpack.c.l.bf16 %v472_v1  ;;  %v474_v5 = vunpack.c.h.bf16 %v472_v1  ;;  %v477_v6 = vunpack.c.l.bf16 %v503_v2  ;;  %v478_v7 = vunpack.c.h.bf16 %v503_v2  ;;  %v505_v8 = vld [vmem:[%s646_s29 + $0x18] sm:$0xff]   ;;  %v506_v22 = vld [vmem:[%s646_s29 + $0x20] sm:$0xff]   ;;  %v507_v23 = vld [vmem:[%s646_s29 + $0x28] sm:$0xff]  }
  0x15   : > { %v481_v10 = vunpack.c.l.bf16 %v504_v3  ;;  %v482_v11 = vunpack.c.h.bf16 %v504_v3  ;;  %v485_v12 = vunpack.c.l.bf16 %v505_v8  ;;  %v486_v13 = vunpack.c.h.bf16 %v505_v8  ;;  %v508_v28 = vld [vmem:[%s646_s29 + $0x30] sm:$0xff]   ;;  %v509_v29 = vld [vmem:[%s646_s29 + $0x38] sm:$0xff]  }
  0x16   : > { %v282_v14 = vmul.f32 %v473_v4, %v467_v0  ;;  %v283_v15 = vmul.f32 %v474_v5, %v467_v0  ;;  %v284_v16 = vmul.f32 %v477_v6, %v467_v0  ;;  %v285_v17 = vmul.f32 %v478_v7, %v467_v0 }
  0x17   : > { %v286_v18 = vmul.f32 %v481_v10, %v467_v0  ;;  %v287_v19 = vmul.f32 %v482_v11, %v467_v0  ;;  %v288_v20 = vmul.f32 %v485_v12, %v467_v0  ;;  %v289_v21 = vmul.f32 %v486_v13, %v467_v0 }
  0x18   : > { %v305_v24 = vadd.f32 %v468_v9, %v282_v14  ;;  %v306_v25 = vadd.f32 %v468_v9, %v283_v15  ;;  %v307_v26 = vadd.f32 %v468_v9, %v284_v16  ;;  %v308_v27 = vadd.f32 %v468_v9, %v285_v17 }
  0x19   : > { %v309_v30 = vadd.f32 %v468_v9, %v286_v18  ;;  %v310_v31 = vadd.f32 %v468_v9, %v287_v19  ;;  %v311_v32 = vadd.f32 %v468_v9, %v288_v20  ;;  %v312_v33 = vadd.f32 %v468_v9, %v289_v21 }
  0x1a   : > { %321 = vst [vmem:[%s658_s9] sm:$0xff] %v305_v24  ;;  %322 = vst [vmem:[%s658_s9 + $0x8] sm:$0xff] %v306_v25  ;;  %v489_v34 = vunpack.c.l.bf16 %v506_v22  ;;  %v490_v35 = vunpack.c.h.bf16 %v506_v22  ;;  %v493_v36 = vunpack.c.l.bf16 %v507_v23  ;;  %v494_v37 = vunpack.c.h.bf16 %v507_v23 }
  0x1b   : > { %323 = vst [vmem:[%s658_s9 + $0x10] sm:$0xff] %v307_v26  ;;  %324 = vst [vmem:[%s658_s9 + $0x18] sm:$0xff] %v308_v27  ;;  %v497_v38 = vunpack.c.l.bf16 %v508_v28  ;;  %v498_v39 = vunpack.c.h.bf16 %v508_v28  ;;  %v501_v40 = vunpack.c.l.bf16 %v509_v29  ;;  %v502_v41 = vunpack.c.h.bf16 %v509_v29 }
  0x1c   : > { %325 = vst [vmem:[%s658_s9 + $0x20] sm:$0xff] %v309_v30  ;;  %326 = vst [vmem:[%s658_s9 + $0x28] sm:$0xff] %v310_v31  ;;  %v290_v42 = vmul.f32 %v489_v34, %v467_v0  ;;  %v291_v43 = vmul.f32 %v490_v35, %v467_v0  ;;  %v292_v44 = vmul.f32 %v493_v36, %v467_v0 }
  0x1d   : > { %327 = vst [vmem:[%s658_s9 + $0x30] sm:$0xff] %v311_v32  ;;  %328 = vst [vmem:[%s658_s9 + $0x38] sm:$0xff] %v312_v33  ;;  %v293_v45 = vmul.f32 %v494_v37, %v467_v0  ;;  %v294_v46 = vmul.f32 %v497_v38, %v467_v0  ;;  %v295_v47 = vmul.f32 %v498_v39, %v467_v0 }
  0x1e   : > { %v296_v48 = vmul.f32 %v501_v40, %v467_v0  ;;  %v297_v49 = vmul.f32 %v502_v41, %v467_v0  ;;  %v313_v50 = vadd.f32 %v468_v9, %v290_v42  ;;  %v314_v51 = vadd.f32 %v468_v9, %v291_v43 }
  0x1f   : > { %v315_v52 = vadd.f32 %v468_v9, %v292_v44  ;;  %v316_v53 = vadd.f32 %v468_v9, %v293_v45  ;;  %v317_v54 = vadd.f32 %v468_v9, %v294_v46  ;;  %v318_v55 = vadd.f32 %v468_v9, %v295_v47 }
  0x20   : > { %v319_v56 = vadd.f32 %v468_v9, %v296_v48  ;;  %v320_v57 = vadd.f32 %v468_v9, %v297_v49  ;;  %329 = vst [vmem:[%s658_s9 + $0x40] sm:$0xff] %v313_v50  ;;  %330 = vst [vmem:[%s658_s9 + $0x48] sm:$0xff] %v314_v51 }
  0x21   : > { %331 = vst [vmem:[%s658_s9 + $0x50] sm:$0xff] %v315_v52  ;;  %332 = vst [vmem:[%s658_s9 + $0x58] sm:$0xff] %v316_v53 }
  0x22   : > { %333 = vst [vmem:[%s658_s9 + $0x60] sm:$0xff] %v317_v54  ;;  %334 = vst [vmem:[%s658_s9 + $0x68] sm:$0xff] %v318_v55 }
  0x23   : > { %335 = vst [vmem:[%s658_s9 + $0x70] sm:$0xff] %v319_v56  ;;  %336 = vst [vmem:[%s658_s9 + $0x78] sm:$0xff] %v320_v57 }
  0x24 PF: > { %s13_s16 = sadd.s32 1, %s588_s16   ;;  %s699_s12 = smov %s580_s14 }
  0x25   : > { %p10_p7 = scmp.ge.s32.totalorder %s13_s16, 6   ;;  %s700_s13 = smov %s584_s15 }
  0x26   : > { %s701_s14 = smov %s704_s17  ;;  %s702_s15 = smov %s708_s18 }
  0x27   :  { %12 = sbr.rel (!%p10_p7) target bundleno = 3 (0x3), region = 68 }

</bundles_post_ra>
